<compile_context>
chip_gen: v5e
topology: v5e:2x2
jax: 0.10.0
libtpu: 0.0.40
codegen_flags: <defaults>
</compile_context>

<pallas_src>
import functools

import jax
import jax.numpy as jnp
from jax import lax
from jax.experimental import pallas as pl
from jax.experimental.pallas import tpu as pltpu


def _round_up(x, m):
    return ((x + m - 1) // m) * m


# ----------------------------- Pallas kernel ------------------------------- #
def _bilstm_mlp_kernel(xs_ref,     # (T, TB, E)   embedded tokens, time-major, bf16
                       wih_ref,    # (E, 8H)      [W_ih_f^T | W_ih_b^T], gates (i,f,o,g), bf16
                       bih_ref,    # (1, 8H)      [b_f | b_b], gates (i,f,o,g), f32
                       whh_ref,    # (2H, 8H) block-diag if 2H<=128 else (2H, 4H) stacked, bf16
                       w1_ref,     # (2H, H)      l1 weight^T, bf16
                       b1_ref,     # (1, H)       f32
                       w2_ref,     # (H, Cp)      l2 weight^T (lane padded), bf16
                       b2_ref,     # (1, Cp)      f32
                       out_ref,    # (TB, Cp)     f32
                       projf_ref,  # scratch (T, TB, 4H) bf16 : forward input proj
                       projb_ref,  # scratch (T, TB, 4H) bf16 : backward input proj
                       *, seq_len, hidden_size, proj_chunk):
    H = hidden_size
    T = seq_len
    TB = xs_ref.shape[1]
    E = xs_ref.shape[2]
    fuse_rec = (2 * H) <= 128      # block-diag fusion only while it is MXU-free

    wih = wih_ref[...]             # (E, 8H) bf16
    bih = bih_ref[...]             # (1, 8H) f32

    # ---- Hoisted input projection (both directions, all timesteps).
    # Chunked over time: M = proj_chunk*TB keeps the MXU fed while the f32
    # temporary stays small.  Stored as bf16 (added to an f32 hdot later).
    for t0 in range(0, T, proj_chunk):                      # static Python loop
        t1 = min(t0 + proj_chunk, T)
        rows = (t1 - t0) * TB
        x_chunk = xs_ref[t0:t1].reshape(rows, E)
        proj = jnp.dot(x_chunk, wih, preferred_element_type=jnp.float32) + bih
        projf_ref[t0:t1] = proj[:, : 4 * H].reshape(t1 - t0, TB, 4 * H).astype(jnp.bfloat16)
        projb_ref[t0:t1] = proj[:, 4 * H:].reshape(t1 - t0, TB, 4 * H).astype(jnp.bfloat16)

    whh = whh_ref[...]                                      # bf16

    # ---- Fwd/bwd recurrence.  Gate order inside each direction: i, f, o, g.
    def step(t, carry):
        h_f, h_b, c_f, c_b = carry                          # f32 carries
        if fuse_rec:
            h_cat = jnp.concatenate([h_f, h_b], axis=-1).astype(jnp.bfloat16)
            hdot = jnp.dot(h_cat, whh, preferred_element_type=jnp.float32)  # (TB, 8H)
            hdot_f = hdot[:, : 4 * H]
            hdot_b = hdot[:, 4 * H:]
        else:
            hdot_f = jnp.dot(h_f.astype(jnp.bfloat16), whh[:H],
                             preferred_element_type=jnp.float32)             # (TB, 4H)
            hdot_b = jnp.dot(h_b.astype(jnp.bfloat16), whh[H:],
                             preferred_element_type=jnp.float32)
        gf = hdot_f + projf_ref[t]                           # forward gates @ t
        gb = hdot_b + projb_ref[seq_len - 1 - t]             # backward gates @ T-1-t
        # sigmoid only on i,f,o lanes; tanh on g lanes (no discarded EUP work)
        sf = jax.nn.sigmoid(gf[:, : 3 * H])
        sb = jax.nn.sigmoid(gb[:, : 3 * H])
        gg_f = jnp.tanh(gf[:, 3 * H:])
        gg_b = jnp.tanh(gb[:, 3 * H:])
        c_f = sf[:, H:2 * H] * c_f + sf[:, :H] * gg_f
        c_b = sb[:, H:2 * H] * c_b + sb[:, :H] * gg_b
        h_f = sf[:, 2 * H:] * jnp.tanh(c_f)
        h_b = sb[:, 2 * H:] * jnp.tanh(c_b)
        return (h_f, h_b, c_f, c_b)

    z0 = jnp.zeros((TB, H), jnp.float32)
    unroll = True if T <= 64 else 8        # full unroll only for short sequences
    h_f, h_b, _, _ = lax.fori_loop(0, seq_len, step, (z0, z0, z0, z0),
                                   unroll=unroll)

    # ---- Head: hidden == cat(ht[-2], ht[-1]) == [h_f | h_b] (single concat).
    hidden = jnp.concatenate([h_f, h_b], axis=-1).astype(jnp.bfloat16)
    z = jnp.dot(hidden, w1_ref[...], preferred_element_type=jnp.float32) + b1_ref[...]
    z = jnp.maximum(z, 0.0)                                  # ReLU
    out = jnp.dot(z.astype(jnp.bfloat16), w2_ref[...],
                  preferred_element_type=jnp.float32) + b2_ref[...]
    out_ref[...] = out.astype(out_ref.dtype)


# ------------------------------- Params ------------------------------------- #
def init_params(key, total_words, embed_dim, hidden_size, no_class):
    H, E, C = hidden_size, embed_dim, no_class
    ks = jax.random.split(key, 13)
    bound_lstm = 1.0 / jnp.sqrt(H)

    embed = jax.random.normal(ks[0], (total_words, E), jnp.float32)
    embed = embed.at[0].set(0.0)   # padding_idx=0

    def u(k, shape, bound):
        return jax.random.uniform(k, shape, jnp.float32, -bound, bound)

    params = dict(
        embed=embed,
        # forward direction (stored transposed: (in, 4H)), gate order i,f,g,o
        wih_f=u(ks[1], (E, 4 * H), bound_lstm),
        whh_f=u(ks[2], (H, 4 * H), bound_lstm),
        b_f=(u(ks[3], (1, 4 * H), bound_lstm) + u(ks[4], (1, 4 * H), bound_lstm)),
        # backward direction
        wih_b=u(ks[5], (E, 4 * H), bound_lstm),
        whh_b=u(ks[6], (H, 4 * H), bound_lstm),
        b_b=(u(ks[7], (1, 4 * H), bound_lstm) + u(ks[8], (1, 4 * H), bound_lstm)),
        # l1: Linear(2H -> H), stored transposed
        w1=u(ks[9], (2 * H, H), 1.0 / jnp.sqrt(2 * H)),
        b1=u(ks[10], (1, H), 1.0 / jnp.sqrt(2 * H)),
        # l2: Linear(H -> C), stored transposed
        w2=u(ks[11], (H, C), 1.0 / jnp.sqrt(H)),
        b2=u(ks[12], (1, C), 1.0 / jnp.sqrt(H)),
    )
    return params


def _reorder_gates(w, axis):
    """Reorder gate blocks (i, f, g, o) -> (i, f, o, g) along `axis`."""
    i, f, g, o = jnp.split(w, 4, axis=axis)
    return jnp.concatenate([i, f, o, g], axis=axis)


# ------------------------------- Wrapper ------------------------------------ #
@functools.partial(jax.jit, static_argnames=("hidden_size", "no_class"))
def neural_net_forward(x_tokens, params, *, hidden_size, no_class):
    H, C = hidden_size, no_class
    B, T = x_tokens.shape
    E = params["embed"].shape[1]

    # ---- Batch tile: large M for the MXU; multiple of 16 (bf16 sublane pack);
    # capped for small batches; split into >=2 tiles when possible (megacore).
    TB = min(128, _round_up(max(B, 1), 16))
    if B >= 32 and _round_up(B, TB) // TB < 2:
        TB = _round_up(-(-B // 2), 16)
    Bp = _round_up(B, TB)                    # padded batch (multiple of TB)
    Cp = _round_up(C, 128)                   # lane-dense output width
    proj_chunk = max(1, min(T, max(1, 512 // TB)))   # rows-per-matmul ~512
    fuse_rec = (2 * H) <= 128

    # Glue: pad batch with padding-idx tokens, gather embedding directly in
    # time-major order (no materialized transpose of the activations).
    tokens_p = jnp.pad(x_tokens, ((0, Bp - B), (0, 0)))            # (Bp, T)
    xs = jnp.take(params["embed"], tokens_p.T, axis=0)             # (T, Bp, E)
    xs = xs.astype(jnp.bfloat16)

    # Fused / padded kernel operands (bf16 matmul operands, f32 biases),
    # gate columns reordered (i,f,g,o) -> (i,f,o,g).
    wih_f = _reorder_gates(params["wih_f"], axis=1)
    wih_b = _reorder_gates(params["wih_b"], axis=1)
    whh_f = _reorder_gates(params["whh_f"], axis=1)
    whh_b = _reorder_gates(params["whh_b"], axis=1)
    b_f = _reorder_gates(params["b_f"], axis=1)
    b_b = _reorder_gates(params["b_b"], axis=1)

    wih_cat = jnp.concatenate([wih_f, wih_b], axis=1).astype(jnp.bfloat16)   # (E, 8H)
    b_cat = jnp.concatenate([b_f, b_b], axis=1)                              # (1, 8H) f32
    if fuse_rec:
        whh = jnp.zeros((2 * H, 8 * H), jnp.float32)
        whh = whh.at[:H, : 4 * H].set(whh_f).at[H:, 4 * H:].set(whh_b)       # block-diag
    else:
        whh = jnp.concatenate([whh_f, whh_b], axis=0)                        # (2H, 4H) stacked
    whh = whh.astype(jnp.bfloat16)
    w1 = params["w1"].astype(jnp.bfloat16)                                   # (2H, H)
    b1 = params["b1"]                                                        # (1, H)
    w2p = jnp.zeros((H, Cp), jnp.float32).at[:, :C].set(params["w2"])
    w2p = w2p.astype(jnp.bfloat16)                                           # (H, Cp)
    b2p = jnp.zeros((1, Cp), jnp.float32).at[:, :C].set(params["b2"])        # (1, Cp)

    kernel = functools.partial(_bilstm_mlp_kernel, seq_len=T, hidden_size=H,
                               proj_chunk=proj_chunk)

    # ---- VMEM budget (explicit limit: v7x 64 MiB physical, v5e 16 MiB scoped
    # default) and advisory cost estimate.
    whh_rows, whh_cols = whh.shape
    weight_bytes = (E * 8 * H * 2 + whh_rows * whh_cols * 2 + 2 * H * H * 2
                    + H * Cp * 2 + (8 * H + H + Cp) * 4)
    vmem_need = (2 * T * TB * E * 2              # xs, double-buffered
                 + 2 * T * TB * 4 * H * 2        # two bf16 projection scratches
                 + 2 * TB * Cp * 4               # output, double-buffered
                 + 2 * weight_bytes              # resident weights / biases
                 + proj_chunk * TB * 8 * H * 4   # f32 projection temporary
                 + 8 * TB * 8 * H * 4)           # loop temporaries / spill headroom
    vmem_limit = int(min(max(2 * vmem_need, 32 << 20), 56 << 20))

    rec_flops = (2 * T * Bp * 2 * H * 8 * H) if fuse_rec else (2 * 2 * T * Bp * H * 4 * H)
    cost = pl.CostEstimate(
        flops=int(2 * T * Bp * E * 8 * H + rec_flops
                  + 2 * Bp * 2 * H * H + 2 * Bp * H * Cp),
        transcendentals=int(10 * H * Bp * T),
        bytes_accessed=int(xs.size * 2 + Bp * Cp * 4 + weight_bytes),
    )

    grid_spec = pltpu.PrefetchScalarGridSpec(
        num_scalar_prefetch=0,
        grid=(Bp // TB,),
        in_specs=[
            pl.BlockSpec((T, TB, E), lambda i: (0, i, 0)),            # xs (batch-tiled)
            pl.BlockSpec((E, 8 * H), lambda i: (0, 0)),               # wih_cat
            pl.BlockSpec((1, 8 * H), lambda i: (0, 0)),               # b_cat
            pl.BlockSpec((whh_rows, whh_cols), lambda i: (0, 0)),     # whh
            pl.BlockSpec((2 * H, H), lambda i: (0, 0)),               # w1
            pl.BlockSpec((1, H), lambda i: (0, 0)),                   # b1
            pl.BlockSpec((H, Cp), lambda i: (0, 0)),                  # w2 (padded)
            pl.BlockSpec((1, Cp), lambda i: (0, 0)),                  # b2 (padded)
        ],
        out_specs=pl.BlockSpec((TB, Cp), lambda i: (i, 0)),
        scratch_shapes=[
            pltpu.VMEM((T, TB, 4 * H), jnp.bfloat16),                 # fwd input proj
            pltpu.VMEM((T, TB, 4 * H), jnp.bfloat16),                 # bwd input proj
        ],
    )

    out = pl.pallas_call(
        kernel,
        out_shape=jax.ShapeDtypeStruct((Bp, Cp), jnp.float32),
        grid_spec=grid_spec,
        compiler_params=pltpu.CompilerParams(
            dimension_semantics=("parallel",),
            vmem_limit_bytes=vmem_limit),
        cost_estimate=cost,
    )(xs, wih_cat, b_cat, whh, w1, b1, w2p, b2p)

    return out[:B, :C]


# --------------------------- Pure-JAX reference ------------------------------ #
def reference_forward(x_tokens, params, hidden_size):
    H = hidden_size
    B = x_tokens.shape[0]
    emb = jnp.take(params["embed"], x_tokens, axis=0)              # (B, T, E)
    xs = jnp.transpose(emb, (1, 0, 2))                              # (T, B, E)
    z0 = jnp.zeros((B, H), jnp.float32)

    def run(seq, wih, whh, b):
        def step(carry, x_t):
            h, c = carry
            g = x_t @ wih + h @ whh + b
            i = jax.nn.sigmoid(g[:, :H])
            f = jax.nn.sigmoid(g[:, H:2 * H])
            gg = jnp.tanh(g[:, 2 * H:3 * H])
            o = jax.nn.sigmoid(g[:, 3 * H:4 * H])
            c = f * c + i * gg
            h = o * jnp.tanh(c)
            return (h, c), None
        (h, _), _ = lax.scan(step, (z0, z0), seq)
        return h

    h_f = run(xs, params["wih_f"], params["whh_f"], params["b_f"])
    h_b = run(xs[::-1], params["wih_b"], params["whh_b"], params["b_b"])
    hidden = jnp.concatenate([h_f, h_b], axis=1)
    z = jnp.maximum(hidden @ params["w1"] + params["b1"], 0.0)
    return z @ params["w2"] + params["b2"]


if __name__ == "__main__":
    TOTAL_WORDS = 100
    EMBED_DIM = 32
    HIDDEN_SIZE = 32
    NO_CLASS = 4
    BATCH = 2
    SEQ = 8

    key = jax.random.PRNGKey(0)
    k_tok, k_param = jax.random.split(key)

    params = init_params(k_param, TOTAL_WORDS, EMBED_DIM, HIDDEN_SIZE, NO_CLASS)
    x = jax.random.randint(k_tok, (BATCH, SEQ), 0, TOTAL_WORDS, dtype=jnp.int32)

    out = neural_net_forward(x, params, hidden_size=HIDDEN_SIZE, no_class=NO_CLASS)
    out = jax.block_until_ready(out)
    assert out.shape == (BATCH, NO_CLASS)

    ref = reference_forward(x, params, HIDDEN_SIZE)
    max_err = float(jnp.max(jnp.abs(out - ref)))
    assert max_err < 1e-1, f"mismatch vs reference: {max_err}"

    print("KERNEL_OK")
</pallas_src>

<mosaic_0001>
module attributes {stable_mosaic.version = 11 : i64} {
  func.func @_bilstm_mlp_kernel(%arg0: i32, %arg1: memref<8x16x32xbf16, #tpu.memory_space<vmem>>, %arg2: memref<32x256xbf16, #tpu.memory_space<vmem>>, %arg3: memref<1x256xf32, #tpu.memory_space<vmem>>, %arg4: memref<64x256xbf16, #tpu.memory_space<vmem>>, %arg5: memref<64x32xbf16, #tpu.memory_space<vmem>>, %arg6: memref<1x32xf32, #tpu.memory_space<vmem>>, %arg7: memref<32x128xbf16, #tpu.memory_space<vmem>>, %arg8: memref<1x128xf32, #tpu.memory_space<vmem>>, %arg9: memref<16x128xf32, #tpu.memory_space<vmem>>, %arg10: memref<8x16x128xbf16, #tpu.memory_space<vmem>>, %arg11: memref<8x16x128xbf16, #tpu.memory_space<vmem>>) attributes {dimension_semantics = [#tpu.dimension_semantics<parallel>], iteration_bounds = array<i64: 1>, scalar_prefetch = 0 : i64, scratch_operands = 2 : i64, tpu.core_type = #tpu.core_type<tc>, window_params = [{transform_indices = @transform_0, window_bounds = array<i64: 8, 16, 32>}, {pipeline_mode = #tpu.pipeline_mode<synchronous>, transform_indices = @transform_1, window_bounds = array<i64: 32, 256>}, {pipeline_mode = #tpu.pipeline_mode<synchronous>, transform_indices = @transform_2, window_bounds = array<i64: 1, 256>}, {pipeline_mode = #tpu.pipeline_mode<synchronous>, transform_indices = @transform_3, window_bounds = array<i64: 64, 256>}, {pipeline_mode = #tpu.pipeline_mode<synchronous>, transform_indices = @transform_4, window_bounds = array<i64: 64, 32>}, {pipeline_mode = #tpu.pipeline_mode<synchronous>, transform_indices = @transform_5, window_bounds = array<i64: 1, 32>}, {pipeline_mode = #tpu.pipeline_mode<synchronous>, transform_indices = @transform_6, window_bounds = array<i64: 32, 128>}, {pipeline_mode = #tpu.pipeline_mode<synchronous>, transform_indices = @transform_7, window_bounds = array<i64: 1, 128>}, {transform_indices = @transform_8, window_bounds = array<i64: 16, 128>}]} {
    %c0 = arith.constant 0 : index
    %c0_0 = arith.constant 0 : index
    %0 = vector.load %arg2[%c0, %c0_0] : memref<32x256xbf16, #tpu.memory_space<vmem>>, vector<32x256xbf16>
    %c0_1 = arith.constant 0 : index
    %c0_2 = arith.constant 0 : index
    %1 = vector.load %arg3[%c0_1, %c0_2] : memref<1x256xf32, #tpu.memory_space<vmem>>, vector<1x256xf32>
    %c0_3 = arith.constant 0 : index
    %c0_4 = arith.constant 0 : index
    %c0_5 = arith.constant 0 : index
    %2 = vector.load %arg1[%c0_3, %c0_4, %c0_5] : memref<8x16x32xbf16, #tpu.memory_space<vmem>>, vector<8x16x32xbf16>
    %3 = vector.shape_cast %2 : vector<8x16x32xbf16> to vector<128x32xbf16>
    %cst = arith.constant dense<0.000000e+00> : vector<128x256xf32>
    %4 = tpu.matmul %3, %0, %cst {dimension_numbers = #tpu.dot_dimension_numbers<[1], [0], [0], [1], [0, 0, 1, 1], [], []>} : vector<128x32xbf16>, vector<32x256xbf16>, vector<128x256xf32> -> vector<128x256xf32>
    %5 = vector.broadcast %1 : vector<1x256xf32> to vector<128x256xf32>
    %6 = arith.addf %4, %5 : vector<128x256xf32>
    %7 = vector.extract_strided_slice %6 {offsets = [0, 0], sizes = [128, 128], strides = [1, 1]} : vector<128x256xf32> to vector<128x128xf32>
    %8 = vector.shape_cast %7 : vector<128x128xf32> to vector<8x16x128xf32>
    %9 = arith.truncf %8 : vector<8x16x128xf32> to vector<8x16x128xbf16>
    %c0_6 = arith.constant 0 : index
    %c0_7 = arith.constant 0 : index
    %c0_8 = arith.constant 0 : index
    %10 = vector.load %arg10[%c0_6, %c0_7, %c0_8] : memref<8x16x128xbf16, #tpu.memory_space<vmem>>, vector<8x16x128xbf16>
    tpu.vector_store %arg10[%c0_6, %c0_7, %c0_8], %9 {strides = array<i32>} : memref<8x16x128xbf16, #tpu.memory_space<vmem>>, vector<8x16x128xbf16>,
    %11 = vector.extract_strided_slice %6 {offsets = [0, 128], sizes = [128, 128], strides = [1, 1]} : vector<128x256xf32> to vector<128x128xf32>
    %12 = vector.shape_cast %11 : vector<128x128xf32> to vector<8x16x128xf32>
    %13 = arith.truncf %12 : vector<8x16x128xf32> to vector<8x16x128xbf16>
    %c0_9 = arith.constant 0 : index
    %c0_10 = arith.constant 0 : index
    %c0_11 = arith.constant 0 : index
    %14 = vector.load %arg11[%c0_9, %c0_10, %c0_11] : memref<8x16x128xbf16, #tpu.memory_space<vmem>>, vector<8x16x128xbf16>
    tpu.vector_store %arg11[%c0_9, %c0_10, %c0_11], %13 {strides = array<i32>} : memref<8x16x128xbf16, #tpu.memory_space<vmem>>, vector<8x16x128xbf16>,
    %c0_12 = arith.constant 0 : index
    %c0_13 = arith.constant 0 : index
    %15 = vector.load %arg4[%c0_12, %c0_13] : memref<64x256xbf16, #tpu.memory_space<vmem>>, vector<64x256xbf16>
    %cst_14 = arith.constant 0.000000e+00 : f32
    %16 = vector.broadcast %cst_14 : f32 to vector<16x32xf32>
    %c0_i32 = arith.constant 0 : i32
    %17 = tpu.concatenate %16, %16 in 1 : vector<16x32xf32>, vector<16x32xf32> -> vector<16x64xf32>
    %18 = arith.truncf %17 : vector<16x64xf32> to vector<16x64xbf16>
    %cst_15 = arith.constant dense<0.000000e+00> : vector<16x256xf32>
    %19 = tpu.matmul %18, %15, %cst_15 {dimension_numbers = #tpu.dot_dimension_numbers<[1], [0], [0], [1], [0, 0, 1, 1], [], []>} : vector<16x64xbf16>, vector<64x256xbf16>, vector<16x256xf32> -> vector<16x256xf32>
    %20 = vector.extract_strided_slice %19 {offsets = [0, 0], sizes = [16, 128], strides = [1, 1]} : vector<16x256xf32> to vector<16x128xf32>
    %21 = vector.extract_strided_slice %19 {offsets = [0, 128], sizes = [16, 128], strides = [1, 1]} : vector<16x256xf32> to vector<16x128xf32>
    %22 = arith.index_cast %c0_i32 : i32 to index
    %c0_16 = arith.constant 0 : index
    %c0_17 = arith.constant 0 : index
    %23 = vector.load %arg10[%22, %c0_16, %c0_17] : memref<8x16x128xbf16, #tpu.memory_space<vmem>>, vector<1x16x128xbf16>
    %24 = vector.shape_cast %23 : vector<1x16x128xbf16> to vector<16x128xbf16>
    %25 = arith.extf %24 : vector<16x128xbf16> to vector<16x128xf32>
    %26 = arith.addf %20, %25 : vector<16x128xf32>
    %c7_i32 = arith.constant 7 : i32
    %27 = arith.subi %c7_i32, %c0_i32 : i32
    %28 = arith.index_cast %27 : i32 to index
    %c0_18 = arith.constant 0 : index
    %c0_19 = arith.constant 0 : index
    %29 = vector.load %arg11[%28, %c0_18, %c0_19] : memref<8x16x128xbf16, #tpu.memory_space<vmem>>, vector<1x16x128xbf16>
    %30 = vector.shape_cast %29 : vector<1x16x128xbf16> to vector<16x128xbf16>
    %31 = arith.extf %30 : vector<16x128xbf16> to vector<16x128xf32>
    %32 = arith.addf %21, %31 : vector<16x128xf32>
    %33 = vector.extract_strided_slice %26 {offsets = [0, 0], sizes = [16, 96], strides = [1, 1]} : vector<16x128xf32> to vector<16x96xf32>
    %34 = arith.negf %33 : vector<16x96xf32>
    %35 = math.exp %34 : vector<16x96xf32>
    %cst_20 = arith.constant 1.000000e+00 : f32
    %36 = vector.broadcast %cst_20 : f32 to vector<16x96xf32>
    %37 = arith.addf %36, %35 : vector<16x96xf32>
    %38 = arith.divf %36, %37 : vector<16x96xf32>
    %39 = vector.extract_strided_slice %32 {offsets = [0, 0], sizes = [16, 96], strides = [1, 1]} : vector<16x128xf32> to vector<16x96xf32>
    %40 = arith.negf %39 : vector<16x96xf32>
    %41 = math.exp %40 : vector<16x96xf32>
    %cst_21 = arith.constant 1.000000e+00 : f32
    %42 = vector.broadcast %cst_21 : f32 to vector<16x96xf32>
    %43 = arith.addf %42, %41 : vector<16x96xf32>
    %44 = arith.divf %42, %43 : vector<16x96xf32>
    %45 = vector.extract_strided_slice %26 {offsets = [0, 96], sizes = [16, 32], strides = [1, 1]} : vector<16x128xf32> to vector<16x32xf32>
    %46 = math.tanh %45 : vector<16x32xf32>
    %47 = vector.extract_strided_slice %32 {offsets = [0, 96], sizes = [16, 32], strides = [1, 1]} : vector<16x128xf32> to vector<16x32xf32>
    %48 = math.tanh %47 : vector<16x32xf32>
    %49 = vector.extract_strided_slice %38 {offsets = [0, 32], sizes = [16, 32], strides = [1, 1]} : vector<16x96xf32> to vector<16x32xf32>
    %50 = arith.mulf %49, %16 : vector<16x32xf32>
    %51 = vector.extract_strided_slice %38 {offsets = [0, 0], sizes = [16, 32], strides = [1, 1]} : vector<16x96xf32> to vector<16x32xf32>
    %52 = arith.mulf %51, %46 : vector<16x32xf32>
    %53 = arith.addf %50, %52 : vector<16x32xf32>
    %54 = vector.extract_strided_slice %44 {offsets = [0, 32], sizes = [16, 32], strides = [1, 1]} : vector<16x96xf32> to vector<16x32xf32>
    %55 = arith.mulf %54, %16 : vector<16x32xf32>
    %56 = vector.extract_strided_slice %44 {offsets = [0, 0], sizes = [16, 32], strides = [1, 1]} : vector<16x96xf32> to vector<16x32xf32>
    %57 = arith.mulf %56, %48 : vector<16x32xf32>
    %58 = arith.addf %55, %57 : vector<16x32xf32>
    %59 = vector.extract_strided_slice %38 {offsets = [0, 64], sizes = [16, 32], strides = [1, 1]} : vector<16x96xf32> to vector<16x32xf32>
    %60 = math.tanh %53 : vector<16x32xf32>
    %61 = arith.mulf %59, %60 : vector<16x32xf32>
    %62 = vector.extract_strided_slice %44 {offsets = [0, 64], sizes = [16, 32], strides = [1, 1]} : vector<16x96xf32> to vector<16x32xf32>
    %63 = math.tanh %58 : vector<16x32xf32>
    %64 = arith.mulf %62, %63 : vector<16x32xf32>
    %c1_i32 = arith.constant 1 : i32
    %65 = tpu.concatenate %61, %64 in 1 : vector<16x32xf32>, vector<16x32xf32> -> vector<16x64xf32>
    %66 = arith.truncf %65 : vector<16x64xf32> to vector<16x64xbf16>
    %cst_22 = arith.constant dense<0.000000e+00> : vector<16x256xf32>
    %67 = tpu.matmul %66, %15, %cst_22 {dimension_numbers = #tpu.dot_dimension_numbers<[1], [0], [0], [1], [0, 0, 1, 1], [], []>} : vector<16x64xbf16>, vector<64x256xbf16>, vector<16x256xf32> -> vector<16x256xf32>
    %68 = vector.extract_strided_slice %67 {offsets = [0, 0], sizes = [16, 128], strides = [1, 1]} : vector<16x256xf32> to vector<16x128xf32>
    %69 = vector.extract_strided_slice %67 {offsets = [0, 128], sizes = [16, 128], strides = [1, 1]} : vector<16x256xf32> to vector<16x128xf32>
    %70 = arith.index_cast %c1_i32 : i32 to index
    %c0_23 = arith.constant 0 : index
    %c0_24 = arith.constant 0 : index
    %71 = vector.load %arg10[%70, %c0_23, %c0_24] : memref<8x16x128xbf16, #tpu.memory_space<vmem>>, vector<1x16x128xbf16>
    %72 = vector.shape_cast %71 : vector<1x16x128xbf16> to vector<16x128xbf16>
    %73 = arith.extf %72 : vector<16x128xbf16> to vector<16x128xf32>
    %74 = arith.addf %68, %73 : vector<16x128xf32>
    %c7_i32_25 = arith.constant 7 : i32
    %75 = arith.subi %c7_i32_25, %c1_i32 : i32
    %76 = arith.index_cast %75 : i32 to index
    %c0_26 = arith.constant 0 : index
    %c0_27 = arith.constant 0 : index
    %77 = vector.load %arg11[%76, %c0_26, %c0_27] : memref<8x16x128xbf16, #tpu.memory_space<vmem>>, vector<1x16x128xbf16>
    %78 = vector.shape_cast %77 : vector<1x16x128xbf16> to vector<16x128xbf16>
    %79 = arith.extf %78 : vector<16x128xbf16> to vector<16x128xf32>
    %80 = arith.addf %69, %79 : vector<16x128xf32>
    %81 = vector.extract_strided_slice %74 {offsets = [0, 0], sizes = [16, 96], strides = [1, 1]} : vector<16x128xf32> to vector<16x96xf32>
    %82 = arith.negf %81 : vector<16x96xf32>
    %83 = math.exp %82 : vector<16x96xf32>
    %cst_28 = arith.constant 1.000000e+00 : f32
    %84 = vector.broadcast %cst_28 : f32 to vector<16x96xf32>
    %85 = arith.addf %84, %83 : vector<16x96xf32>
    %86 = arith.divf %84, %85 : vector<16x96xf32>
    %87 = vector.extract_strided_slice %80 {offsets = [0, 0], sizes = [16, 96], strides = [1, 1]} : vector<16x128xf32> to vector<16x96xf32>
    %88 = arith.negf %87 : vector<16x96xf32>
    %89 = math.exp %88 : vector<16x96xf32>
    %cst_29 = arith.constant 1.000000e+00 : f32
    %90 = vector.broadcast %cst_29 : f32 to vector<16x96xf32>
    %91 = arith.addf %90, %89 : vector<16x96xf32>
    %92 = arith.divf %90, %91 : vector<16x96xf32>
    %93 = vector.extract_strided_slice %74 {offsets = [0, 96], sizes = [16, 32], strides = [1, 1]} : vector<16x128xf32> to vector<16x32xf32>
    %94 = math.tanh %93 : vector<16x32xf32>
    %95 = vector.extract_strided_slice %80 {offsets = [0, 96], sizes = [16, 32], strides = [1, 1]} : vector<16x128xf32> to vector<16x32xf32>
    %96 = math.tanh %95 : vector<16x32xf32>
    %97 = vector.extract_strided_slice %86 {offsets = [0, 32], sizes = [16, 32], strides = [1, 1]} : vector<16x96xf32> to vector<16x32xf32>
    %98 = arith.mulf %97, %53 : vector<16x32xf32>
    %99 = vector.extract_strided_slice %86 {offsets = [0, 0], sizes = [16, 32], strides = [1, 1]} : vector<16x96xf32> to vector<16x32xf32>
    %100 = arith.mulf %99, %94 : vector<16x32xf32>
    %101 = arith.addf %98, %100 : vector<16x32xf32>
    %102 = vector.extract_strided_slice %92 {offsets = [0, 32], sizes = [16, 32], strides = [1, 1]} : vector<16x96xf32> to vector<16x32xf32>
    %103 = arith.mulf %102, %58 : vector<16x32xf32>
    %104 = vector.extract_strided_slice %92 {offsets = [0, 0], sizes = [16, 32], strides = [1, 1]} : vector<16x96xf32> to vector<16x32xf32>
    %105 = arith.mulf %104, %96 : vector<16x32xf32>
    %106 = arith.addf %103, %105 : vector<16x32xf32>
    %107 = vector.extract_strided_slice %86 {offsets = [0, 64], sizes = [16, 32], strides = [1, 1]} : vector<16x96xf32> to vector<16x32xf32>
    %108 = math.tanh %101 : vector<16x32xf32>
    %109 = arith.mulf %107, %108 : vector<16x32xf32>
    %110 = vector.extract_strided_slice %92 {offsets = [0, 64], sizes = [16, 32], strides = [1, 1]} : vector<16x96xf32> to vector<16x32xf32>
    %111 = math.tanh %106 : vector<16x32xf32>
    %112 = arith.mulf %110, %111 : vector<16x32xf32>
    %c2_i32 = arith.constant 2 : i32
    %113 = tpu.concatenate %109, %112 in 1 : vector<16x32xf32>, vector<16x32xf32> -> vector<16x64xf32>
    %114 = arith.truncf %113 : vector<16x64xf32> to vector<16x64xbf16>
    %cst_30 = arith.constant dense<0.000000e+00> : vector<16x256xf32>
    %115 = tpu.matmul %114, %15, %cst_30 {dimension_numbers = #tpu.dot_dimension_numbers<[1], [0], [0], [1], [0, 0, 1, 1], [], []>} : vector<16x64xbf16>, vector<64x256xbf16>, vector<16x256xf32> -> vector<16x256xf32>
    %116 = vector.extract_strided_slice %115 {offsets = [0, 0], sizes = [16, 128], strides = [1, 1]} : vector<16x256xf32> to vector<16x128xf32>
    %117 = vector.extract_strided_slice %115 {offsets = [0, 128], sizes = [16, 128], strides = [1, 1]} : vector<16x256xf32> to vector<16x128xf32>
    %118 = arith.index_cast %c2_i32 : i32 to index
    %c0_31 = arith.constant 0 : index
    %c0_32 = arith.constant 0 : index
    %119 = vector.load %arg10[%118, %c0_31, %c0_32] : memref<8x16x128xbf16, #tpu.memory_space<vmem>>, vector<1x16x128xbf16>
    %120 = vector.shape_cast %119 : vector<1x16x128xbf16> to vector<16x128xbf16>
    %121 = arith.extf %120 : vector<16x128xbf16> to vector<16x128xf32>
    %122 = arith.addf %116, %121 : vector<16x128xf32>
    %c7_i32_33 = arith.constant 7 : i32
    %123 = arith.subi %c7_i32_33, %c2_i32 : i32
    %124 = arith.index_cast %123 : i32 to index
    %c0_34 = arith.constant 0 : index
    %c0_35 = arith.constant 0 : index
    %125 = vector.load %arg11[%124, %c0_34, %c0_35] : memref<8x16x128xbf16, #tpu.memory_space<vmem>>, vector<1x16x128xbf16>
    %126 = vector.shape_cast %125 : vector<1x16x128xbf16> to vector<16x128xbf16>
    %127 = arith.extf %126 : vector<16x128xbf16> to vector<16x128xf32>
    %128 = arith.addf %117, %127 : vector<16x128xf32>
    %129 = vector.extract_strided_slice %122 {offsets = [0, 0], sizes = [16, 96], strides = [1, 1]} : vector<16x128xf32> to vector<16x96xf32>
    %130 = arith.negf %129 : vector<16x96xf32>
    %131 = math.exp %130 : vector<16x96xf32>
    %cst_36 = arith.constant 1.000000e+00 : f32
    %132 = vector.broadcast %cst_36 : f32 to vector<16x96xf32>
    %133 = arith.addf %132, %131 : vector<16x96xf32>
    %134 = arith.divf %132, %133 : vector<16x96xf32>
    %135 = vector.extract_strided_slice %128 {offsets = [0, 0], sizes = [16, 96], strides = [1, 1]} : vector<16x128xf32> to vector<16x96xf32>
    %136 = arith.negf %135 : vector<16x96xf32>
    %137 = math.exp %136 : vector<16x96xf32>
    %cst_37 = arith.constant 1.000000e+00 : f32
    %138 = vector.broadcast %cst_37 : f32 to vector<16x96xf32>
    %139 = arith.addf %138, %137 : vector<16x96xf32>
    %140 = arith.divf %138, %139 : vector<16x96xf32>
    %141 = vector.extract_strided_slice %122 {offsets = [0, 96], sizes = [16, 32], strides = [1, 1]} : vector<16x128xf32> to vector<16x32xf32>
    %142 = math.tanh %141 : vector<16x32xf32>
    %143 = vector.extract_strided_slice %128 {offsets = [0, 96], sizes = [16, 32], strides = [1, 1]} : vector<16x128xf32> to vector<16x32xf32>
    %144 = math.tanh %143 : vector<16x32xf32>
    %145 = vector.extract_strided_slice %134 {offsets = [0, 32], sizes = [16, 32], strides = [1, 1]} : vector<16x96xf32> to vector<16x32xf32>
    %146 = arith.mulf %145, %101 : vector<16x32xf32>
    %147 = vector.extract_strided_slice %134 {offsets = [0, 0], sizes = [16, 32], strides = [1, 1]} : vector<16x96xf32> to vector<16x32xf32>
    %148 = arith.mulf %147, %142 : vector<16x32xf32>
    %149 = arith.addf %146, %148 : vector<16x32xf32>
    %150 = vector.extract_strided_slice %140 {offsets = [0, 32], sizes = [16, 32], strides = [1, 1]} : vector<16x96xf32> to vector<16x32xf32>
    %151 = arith.mulf %150, %106 : vector<16x32xf32>
    %152 = vector.extract_strided_slice %140 {offsets = [0, 0], sizes = [16, 32], strides = [1, 1]} : vector<16x96xf32> to vector<16x32xf32>
    %153 = arith.mulf %152, %144 : vector<16x32xf32>
    %154 = arith.addf %151, %153 : vector<16x32xf32>
    %155 = vector.extract_strided_slice %134 {offsets = [0, 64], sizes = [16, 32], strides = [1, 1]} : vector<16x96xf32> to vector<16x32xf32>
    %156 = math.tanh %149 : vector<16x32xf32>
    %157 = arith.mulf %155, %156 : vector<16x32xf32>
    %158 = vector.extract_strided_slice %140 {offsets = [0, 64], sizes = [16, 32], strides = [1, 1]} : vector<16x96xf32> to vector<16x32xf32>
    %159 = math.tanh %154 : vector<16x32xf32>
    %160 = arith.mulf %158, %159 : vector<16x32xf32>
    %c3_i32 = arith.constant 3 : i32
    %161 = tpu.concatenate %157, %160 in 1 : vector<16x32xf32>, vector<16x32xf32> -> vector<16x64xf32>
    %162 = arith.truncf %161 : vector<16x64xf32> to vector<16x64xbf16>
    %cst_38 = arith.constant dense<0.000000e+00> : vector<16x256xf32>
    %163 = tpu.matmul %162, %15, %cst_38 {dimension_numbers = #tpu.dot_dimension_numbers<[1], [0], [0], [1], [0, 0, 1, 1], [], []>} : vector<16x64xbf16>, vector<64x256xbf16>, vector<16x256xf32> -> vector<16x256xf32>
    %164 = vector.extract_strided_slice %163 {offsets = [0, 0], sizes = [16, 128], strides = [1, 1]} : vector<16x256xf32> to vector<16x128xf32>
    %165 = vector.extract_strided_slice %163 {offsets = [0, 128], sizes = [16, 128], strides = [1, 1]} : vector<16x256xf32> to vector<16x128xf32>
    %166 = arith.index_cast %c3_i32 : i32 to index
    %c0_39 = arith.constant 0 : index
    %c0_40 = arith.constant 0 : index
    %167 = vector.load %arg10[%166, %c0_39, %c0_40] : memref<8x16x128xbf16, #tpu.memory_space<vmem>>, vector<1x16x128xbf16>
    %168 = vector.shape_cast %167 : vector<1x16x128xbf16> to vector<16x128xbf16>
    %169 = arith.extf %168 : vector<16x128xbf16> to vector<16x128xf32>
    %170 = arith.addf %164, %169 : vector<16x128xf32>
    %c7_i32_41 = arith.constant 7 : i32
    %171 = arith.subi %c7_i32_41, %c3_i32 : i32
    %172 = arith.index_cast %171 : i32 to index
    %c0_42 = arith.constant 0 : index
    %c0_43 = arith.constant 0 : index
    %173 = vector.load %arg11[%172, %c0_42, %c0_43] : memref<8x16x128xbf16, #tpu.memory_space<vmem>>, vector<1x16x128xbf16>
    %174 = vector.shape_cast %173 : vector<1x16x128xbf16> to vector<16x128xbf16>
    %175 = arith.extf %174 : vector<16x128xbf16> to vector<16x128xf32>
    %176 = arith.addf %165, %175 : vector<16x128xf32>
    %177 = vector.extract_strided_slice %170 {offsets = [0, 0], sizes = [16, 96], strides = [1, 1]} : vector<16x128xf32> to vector<16x96xf32>
    %178 = arith.negf %177 : vector<16x96xf32>
    %179 = math.exp %178 : vector<16x96xf32>
    %cst_44 = arith.constant 1.000000e+00 : f32
    %180 = vector.broadcast %cst_44 : f32 to vector<16x96xf32>
    %181 = arith.addf %180, %179 : vector<16x96xf32>
    %182 = arith.divf %180, %181 : vector<16x96xf32>
    %183 = vector.extract_strided_slice %176 {offsets = [0, 0], sizes = [16, 96], strides = [1, 1]} : vector<16x128xf32> to vector<16x96xf32>
    %184 = arith.negf %183 : vector<16x96xf32>
    %185 = math.exp %184 : vector<16x96xf32>
    %cst_45 = arith.constant 1.000000e+00 : f32
    %186 = vector.broadcast %cst_45 : f32 to vector<16x96xf32>
    %187 = arith.addf %186, %185 : vector<16x96xf32>
    %188 = arith.divf %186, %187 : vector<16x96xf32>
    %189 = vector.extract_strided_slice %170 {offsets = [0, 96], sizes = [16, 32], strides = [1, 1]} : vector<16x128xf32> to vector<16x32xf32>
    %190 = math.tanh %189 : vector<16x32xf32>
    %191 = vector.extract_strided_slice %176 {offsets = [0, 96], sizes = [16, 32], strides = [1, 1]} : vector<16x128xf32> to vector<16x32xf32>
    %192 = math.tanh %191 : vector<16x32xf32>
    %193 = vector.extract_strided_slice %182 {offsets = [0, 32], sizes = [16, 32], strides = [1, 1]} : vector<16x96xf32> to vector<16x32xf32>
    %194 = arith.mulf %193, %149 : vector<16x32xf32>
    %195 = vector.extract_strided_slice %182 {offsets = [0, 0], sizes = [16, 32], strides = [1, 1]} : vector<16x96xf32> to vector<16x32xf32>
    %196 = arith.mulf %195, %190 : vector<16x32xf32>
    %197 = arith.addf %194, %196 : vector<16x32xf32>
    %198 = vector.extract_strided_slice %188 {offsets = [0, 32], sizes = [16, 32], strides = [1, 1]} : vector<16x96xf32> to vector<16x32xf32>
    %199 = arith.mulf %198, %154 : vector<16x32xf32>
    %200 = vector.extract_strided_slice %188 {offsets = [0, 0], sizes = [16, 32], strides = [1, 1]} : vector<16x96xf32> to vector<16x32xf32>
    %201 = arith.mulf %200, %192 : vector<16x32xf32>
    %202 = arith.addf %199, %201 : vector<16x32xf32>
    %203 = vector.extract_strided_slice %182 {offsets = [0, 64], sizes = [16, 32], strides = [1, 1]} : vector<16x96xf32> to vector<16x32xf32>
    %204 = math.tanh %197 : vector<16x32xf32>
    %205 = arith.mulf %203, %204 : vector<16x32xf32>
    %206 = vector.extract_strided_slice %188 {offsets = [0, 64], sizes = [16, 32], strides = [1, 1]} : vector<16x96xf32> to vector<16x32xf32>
    %207 = math.tanh %202 : vector<16x32xf32>
    %208 = arith.mulf %206, %207 : vector<16x32xf32>
    %c4_i32 = arith.constant 4 : i32
    %209 = tpu.concatenate %205, %208 in 1 : vector<16x32xf32>, vector<16x32xf32> -> vector<16x64xf32>
    %210 = arith.truncf %209 : vector<16x64xf32> to vector<16x64xbf16>
    %cst_46 = arith.constant dense<0.000000e+00> : vector<16x256xf32>
    %211 = tpu.matmul %210, %15, %cst_46 {dimension_numbers = #tpu.dot_dimension_numbers<[1], [0], [0], [1], [0, 0, 1, 1], [], []>} : vector<16x64xbf16>, vector<64x256xbf16>, vector<16x256xf32> -> vector<16x256xf32>
    %212 = vector.extract_strided_slice %211 {offsets = [0, 0], sizes = [16, 128], strides = [1, 1]} : vector<16x256xf32> to vector<16x128xf32>
    %213 = vector.extract_strided_slice %211 {offsets = [0, 128], sizes = [16, 128], strides = [1, 1]} : vector<16x256xf32> to vector<16x128xf32>
    %214 = arith.index_cast %c4_i32 : i32 to index
    %c0_47 = arith.constant 0 : index
    %c0_48 = arith.constant 0 : index
    %215 = vector.load %arg10[%214, %c0_47, %c0_48] : memref<8x16x128xbf16, #tpu.memory_space<vmem>>, vector<1x16x128xbf16>
    %216 = vector.shape_cast %215 : vector<1x16x128xbf16> to vector<16x128xbf16>
    %217 = arith.extf %216 : vector<16x128xbf16> to vector<16x128xf32>
    %218 = arith.addf %212, %217 : vector<16x128xf32>
    %c7_i32_49 = arith.constant 7 : i32
    %219 = arith.subi %c7_i32_49, %c4_i32 : i32
    %220 = arith.index_cast %219 : i32 to index
    %c0_50 = arith.constant 0 : index
    %c0_51 = arith.constant 0 : index
    %221 = vector.load %arg11[%220, %c0_50, %c0_51] : memref<8x16x128xbf16, #tpu.memory_space<vmem>>, vector<1x16x128xbf16>
    %222 = vector.shape_cast %221 : vector<1x16x128xbf16> to vector<16x128xbf16>
    %223 = arith.extf %222 : vector<16x128xbf16> to vector<16x128xf32>
    %224 = arith.addf %213, %223 : vector<16x128xf32>
    %225 = vector.extract_strided_slice %218 {offsets = [0, 0], sizes = [16, 96], strides = [1, 1]} : vector<16x128xf32> to vector<16x96xf32>
    %226 = arith.negf %225 : vector<16x96xf32>
    %227 = math.exp %226 : vector<16x96xf32>
    %cst_52 = arith.constant 1.000000e+00 : f32
    %228 = vector.broadcast %cst_52 : f32 to vector<16x96xf32>
    %229 = arith.addf %228, %227 : vector<16x96xf32>
    %230 = arith.divf %228, %229 : vector<16x96xf32>
    %231 = vector.extract_strided_slice %224 {offsets = [0, 0], sizes = [16, 96], strides = [1, 1]} : vector<16x128xf32> to vector<16x96xf32>
    %232 = arith.negf %231 : vector<16x96xf32>
    %233 = math.exp %232 : vector<16x96xf32>
    %cst_53 = arith.constant 1.000000e+00 : f32
    %234 = vector.broadcast %cst_53 : f32 to vector<16x96xf32>
    %235 = arith.addf %234, %233 : vector<16x96xf32>
    %236 = arith.divf %234, %235 : vector<16x96xf32>
    %237 = vector.extract_strided_slice %218 {offsets = [0, 96], sizes = [16, 32], strides = [1, 1]} : vector<16x128xf32> to vector<16x32xf32>
    %238 = math.tanh %237 : vector<16x32xf32>
    %239 = vector.extract_strided_slice %224 {offsets = [0, 96], sizes = [16, 32], strides = [1, 1]} : vector<16x128xf32> to vector<16x32xf32>
    %240 = math.tanh %239 : vector<16x32xf32>
    %241 = vector.extract_strided_slice %230 {offsets = [0, 32], sizes = [16, 32], strides = [1, 1]} : vector<16x96xf32> to vector<16x32xf32>
    %242 = arith.mulf %241, %197 : vector<16x32xf32>
    %243 = vector.extract_strided_slice %230 {offsets = [0, 0], sizes = [16, 32], strides = [1, 1]} : vector<16x96xf32> to vector<16x32xf32>
    %244 = arith.mulf %243, %238 : vector<16x32xf32>
    %245 = arith.addf %242, %244 : vector<16x32xf32>
    %246 = vector.extract_strided_slice %236 {offsets = [0, 32], sizes = [16, 32], strides = [1, 1]} : vector<16x96xf32> to vector<16x32xf32>
    %247 = arith.mulf %246, %202 : vector<16x32xf32>
    %248 = vector.extract_strided_slice %236 {offsets = [0, 0], sizes = [16, 32], strides = [1, 1]} : vector<16x96xf32> to vector<16x32xf32>
    %249 = arith.mulf %248, %240 : vector<16x32xf32>
    %250 = arith.addf %247, %249 : vector<16x32xf32>
    %251 = vector.extract_strided_slice %230 {offsets = [0, 64], sizes = [16, 32], strides = [1, 1]} : vector<16x96xf32> to vector<16x32xf32>
    %252 = math.tanh %245 : vector<16x32xf32>
    %253 = arith.mulf %251, %252 : vector<16x32xf32>
    %254 = vector.extract_strided_slice %236 {offsets = [0, 64], sizes = [16, 32], strides = [1, 1]} : vector<16x96xf32> to vector<16x32xf32>
    %255 = math.tanh %250 : vector<16x32xf32>
    %256 = arith.mulf %254, %255 : vector<16x32xf32>
    %c5_i32 = arith.constant 5 : i32
    %257 = tpu.concatenate %253, %256 in 1 : vector<16x32xf32>, vector<16x32xf32> -> vector<16x64xf32>
    %258 = arith.truncf %257 : vector<16x64xf32> to vector<16x64xbf16>
    %cst_54 = arith.constant dense<0.000000e+00> : vector<16x256xf32>
    %259 = tpu.matmul %258, %15, %cst_54 {dimension_numbers = #tpu.dot_dimension_numbers<[1], [0], [0], [1], [0, 0, 1, 1], [], []>} : vector<16x64xbf16>, vector<64x256xbf16>, vector<16x256xf32> -> vector<16x256xf32>
    %260 = vector.extract_strided_slice %259 {offsets = [0, 0], sizes = [16, 128], strides = [1, 1]} : vector<16x256xf32> to vector<16x128xf32>
    %261 = vector.extract_strided_slice %259 {offsets = [0, 128], sizes = [16, 128], strides = [1, 1]} : vector<16x256xf32> to vector<16x128xf32>
    %262 = arith.index_cast %c5_i32 : i32 to index
    %c0_55 = arith.constant 0 : index
    %c0_56 = arith.constant 0 : index
    %263 = vector.load %arg10[%262, %c0_55, %c0_56] : memref<8x16x128xbf16, #tpu.memory_space<vmem>>, vector<1x16x128xbf16>
    %264 = vector.shape_cast %263 : vector<1x16x128xbf16> to vector<16x128xbf16>
    %265 = arith.extf %264 : vector<16x128xbf16> to vector<16x128xf32>
    %266 = arith.addf %260, %265 : vector<16x128xf32>
    %c7_i32_57 = arith.constant 7 : i32
    %267 = arith.subi %c7_i32_57, %c5_i32 : i32
    %268 = arith.index_cast %267 : i32 to index
    %c0_58 = arith.constant 0 : index
    %c0_59 = arith.constant 0 : index
    %269 = vector.load %arg11[%268, %c0_58, %c0_59] : memref<8x16x128xbf16, #tpu.memory_space<vmem>>, vector<1x16x128xbf16>
    %270 = vector.shape_cast %269 : vector<1x16x128xbf16> to vector<16x128xbf16>
    %271 = arith.extf %270 : vector<16x128xbf16> to vector<16x128xf32>
    %272 = arith.addf %261, %271 : vector<16x128xf32>
    %273 = vector.extract_strided_slice %266 {offsets = [0, 0], sizes = [16, 96], strides = [1, 1]} : vector<16x128xf32> to vector<16x96xf32>
    %274 = arith.negf %273 : vector<16x96xf32>
    %275 = math.exp %274 : vector<16x96xf32>
    %cst_60 = arith.constant 1.000000e+00 : f32
    %276 = vector.broadcast %cst_60 : f32 to vector<16x96xf32>
    %277 = arith.addf %276, %275 : vector<16x96xf32>
    %278 = arith.divf %276, %277 : vector<16x96xf32>
    %279 = vector.extract_strided_slice %272 {offsets = [0, 0], sizes = [16, 96], strides = [1, 1]} : vector<16x128xf32> to vector<16x96xf32>
    %280 = arith.negf %279 : vector<16x96xf32>
    %281 = math.exp %280 : vector<16x96xf32>
    %cst_61 = arith.constant 1.000000e+00 : f32
    %282 = vector.broadcast %cst_61 : f32 to vector<16x96xf32>
    %283 = arith.addf %282, %281 : vector<16x96xf32>
    %284 = arith.divf %282, %283 : vector<16x96xf32>
    %285 = vector.extract_strided_slice %266 {offsets = [0, 96], sizes = [16, 32], strides = [1, 1]} : vector<16x128xf32> to vector<16x32xf32>
    %286 = math.tanh %285 : vector<16x32xf32>
    %287 = vector.extract_strided_slice %272 {offsets = [0, 96], sizes = [16, 32], strides = [1, 1]} : vector<16x128xf32> to vector<16x32xf32>
    %288 = math.tanh %287 : vector<16x32xf32>
    %289 = vector.extract_strided_slice %278 {offsets = [0, 32], sizes = [16, 32], strides = [1, 1]} : vector<16x96xf32> to vector<16x32xf32>
    %290 = arith.mulf %289, %245 : vector<16x32xf32>
    %291 = vector.extract_strided_slice %278 {offsets = [0, 0], sizes = [16, 32], strides = [1, 1]} : vector<16x96xf32> to vector<16x32xf32>
    %292 = arith.mulf %291, %286 : vector<16x32xf32>
    %293 = arith.addf %290, %292 : vector<16x32xf32>
    %294 = vector.extract_strided_slice %284 {offsets = [0, 32], sizes = [16, 32], strides = [1, 1]} : vector<16x96xf32> to vector<16x32xf32>
    %295 = arith.mulf %294, %250 : vector<16x32xf32>
    %296 = vector.extract_strided_slice %284 {offsets = [0, 0], sizes = [16, 32], strides = [1, 1]} : vector<16x96xf32> to vector<16x32xf32>
    %297 = arith.mulf %296, %288 : vector<16x32xf32>
    %298 = arith.addf %295, %297 : vector<16x32xf32>
    %299 = vector.extract_strided_slice %278 {offsets = [0, 64], sizes = [16, 32], strides = [1, 1]} : vector<16x96xf32> to vector<16x32xf32>
    %300 = math.tanh %293 : vector<16x32xf32>
    %301 = arith.mulf %299, %300 : vector<16x32xf32>
    %302 = vector.extract_strided_slice %284 {offsets = [0, 64], sizes = [16, 32], strides = [1, 1]} : vector<16x96xf32> to vector<16x32xf32>
    %303 = math.tanh %298 : vector<16x32xf32>
    %304 = arith.mulf %302, %303 : vector<16x32xf32>
    %c6_i32 = arith.constant 6 : i32
    %305 = tpu.concatenate %301, %304 in 1 : vector<16x32xf32>, vector<16x32xf32> -> vector<16x64xf32>
    %306 = arith.truncf %305 : vector<16x64xf32> to vector<16x64xbf16>
    %cst_62 = arith.constant dense<0.000000e+00> : vector<16x256xf32>
    %307 = tpu.matmul %306, %15, %cst_62 {dimension_numbers = #tpu.dot_dimension_numbers<[1], [0], [0], [1], [0, 0, 1, 1], [], []>} : vector<16x64xbf16>, vector<64x256xbf16>, vector<16x256xf32> -> vector<16x256xf32>
    %308 = vector.extract_strided_slice %307 {offsets = [0, 0], sizes = [16, 128], strides = [1, 1]} : vector<16x256xf32> to vector<16x128xf32>
    %309 = vector.extract_strided_slice %307 {offsets = [0, 128], sizes = [16, 128], strides = [1, 1]} : vector<16x256xf32> to vector<16x128xf32>
    %310 = arith.index_cast %c6_i32 : i32 to index
    %c0_63 = arith.constant 0 : index
    %c0_64 = arith.constant 0 : index
    %311 = vector.load %arg10[%310, %c0_63, %c0_64] : memref<8x16x128xbf16, #tpu.memory_space<vmem>>, vector<1x16x128xbf16>
    %312 = vector.shape_cast %311 : vector<1x16x128xbf16> to vector<16x128xbf16>
    %313 = arith.extf %312 : vector<16x128xbf16> to vector<16x128xf32>
    %314 = arith.addf %308, %313 : vector<16x128xf32>
    %c7_i32_65 = arith.constant 7 : i32
    %315 = arith.subi %c7_i32_65, %c6_i32 : i32
    %316 = arith.index_cast %315 : i32 to index
    %c0_66 = arith.constant 0 : index
    %c0_67 = arith.constant 0 : index
    %317 = vector.load %arg11[%316, %c0_66, %c0_67] : memref<8x16x128xbf16, #tpu.memory_space<vmem>>, vector<1x16x128xbf16>
    %318 = vector.shape_cast %317 : vector<1x16x128xbf16> to vector<16x128xbf16>
    %319 = arith.extf %318 : vector<16x128xbf16> to vector<16x128xf32>
    %320 = arith.addf %309, %319 : vector<16x128xf32>
    %321 = vector.extract_strided_slice %314 {offsets = [0, 0], sizes = [16, 96], strides = [1, 1]} : vector<16x128xf32> to vector<16x96xf32>
    %322 = arith.negf %321 : vector<16x96xf32>
    %323 = math.exp %322 : vector<16x96xf32>
    %cst_68 = arith.constant 1.000000e+00 : f32
    %324 = vector.broadcast %cst_68 : f32 to vector<16x96xf32>
    %325 = arith.addf %324, %323 : vector<16x96xf32>
    %326 = arith.divf %324, %325 : vector<16x96xf32>
    %327 = vector.extract_strided_slice %320 {offsets = [0, 0], sizes = [16, 96], strides = [1, 1]} : vector<16x128xf32> to vector<16x96xf32>
    %328 = arith.negf %327 : vector<16x96xf32>
    %329 = math.exp %328 : vector<16x96xf32>
    %cst_69 = arith.constant 1.000000e+00 : f32
    %330 = vector.broadcast %cst_69 : f32 to vector<16x96xf32>
    %331 = arith.addf %330, %329 : vector<16x96xf32>
    %332 = arith.divf %330, %331 : vector<16x96xf32>
    %333 = vector.extract_strided_slice %314 {offsets = [0, 96], sizes = [16, 32], strides = [1, 1]} : vector<16x128xf32> to vector<16x32xf32>
    %334 = math.tanh %333 : vector<16x32xf32>
    %335 = vector.extract_strided_slice %320 {offsets = [0, 96], sizes = [16, 32], strides = [1, 1]} : vector<16x128xf32> to vector<16x32xf32>
    %336 = math.tanh %335 : vector<16x32xf32>
    %337 = vector.extract_strided_slice %326 {offsets = [0, 32], sizes = [16, 32], strides = [1, 1]} : vector<16x96xf32> to vector<16x32xf32>
    %338 = arith.mulf %337, %293 : vector<16x32xf32>
    %339 = vector.extract_strided_slice %326 {offsets = [0, 0], sizes = [16, 32], strides = [1, 1]} : vector<16x96xf32> to vector<16x32xf32>
    %340 = arith.mulf %339, %334 : vector<16x32xf32>
    %341 = arith.addf %338, %340 : vector<16x32xf32>
    %342 = vector.extract_strided_slice %332 {offsets = [0, 32], sizes = [16, 32], strides = [1, 1]} : vector<16x96xf32> to vector<16x32xf32>
    %343 = arith.mulf %342, %298 : vector<16x32xf32>
    %344 = vector.extract_strided_slice %332 {offsets = [0, 0], sizes = [16, 32], strides = [1, 1]} : vector<16x96xf32> to vector<16x32xf32>
    %345 = arith.mulf %344, %336 : vector<16x32xf32>
    %346 = arith.addf %343, %345 : vector<16x32xf32>
    %347 = vector.extract_strided_slice %326 {offsets = [0, 64], sizes = [16, 32], strides = [1, 1]} : vector<16x96xf32> to vector<16x32xf32>
    %348 = math.tanh %341 : vector<16x32xf32>
    %349 = arith.mulf %347, %348 : vector<16x32xf32>
    %350 = vector.extract_strided_slice %332 {offsets = [0, 64], sizes = [16, 32], strides = [1, 1]} : vector<16x96xf32> to vector<16x32xf32>
    %351 = math.tanh %346 : vector<16x32xf32>
    %352 = arith.mulf %350, %351 : vector<16x32xf32>
    %c7_i32_70 = arith.constant 7 : i32
    %353 = tpu.concatenate %349, %352 in 1 : vector<16x32xf32>, vector<16x32xf32> -> vector<16x64xf32>
    %354 = arith.truncf %353 : vector<16x64xf32> to vector<16x64xbf16>
    %cst_71 = arith.constant dense<0.000000e+00> : vector<16x256xf32>
    %355 = tpu.matmul %354, %15, %cst_71 {dimension_numbers = #tpu.dot_dimension_numbers<[1], [0], [0], [1], [0, 0, 1, 1], [], []>} : vector<16x64xbf16>, vector<64x256xbf16>, vector<16x256xf32> -> vector<16x256xf32>
    %356 = vector.extract_strided_slice %355 {offsets = [0, 0], sizes = [16, 128], strides = [1, 1]} : vector<16x256xf32> to vector<16x128xf32>
    %357 = vector.extract_strided_slice %355 {offsets = [0, 128], sizes = [16, 128], strides = [1, 1]} : vector<16x256xf32> to vector<16x128xf32>
    %358 = arith.index_cast %c7_i32_70 : i32 to index
    %c0_72 = arith.constant 0 : index
    %c0_73 = arith.constant 0 : index
    %359 = vector.load %arg10[%358, %c0_72, %c0_73] : memref<8x16x128xbf16, #tpu.memory_space<vmem>>, vector<1x16x128xbf16>
    %360 = vector.shape_cast %359 : vector<1x16x128xbf16> to vector<16x128xbf16>
    %361 = arith.extf %360 : vector<16x128xbf16> to vector<16x128xf32>
    %362 = arith.addf %356, %361 : vector<16x128xf32>
    %c7_i32_74 = arith.constant 7 : i32
    %363 = arith.subi %c7_i32_74, %c7_i32_70 : i32
    %364 = arith.index_cast %363 : i32 to index
    %c0_75 = arith.constant 0 : index
    %c0_76 = arith.constant 0 : index
    %365 = vector.load %arg11[%364, %c0_75, %c0_76] : memref<8x16x128xbf16, #tpu.memory_space<vmem>>, vector<1x16x128xbf16>
    %366 = vector.shape_cast %365 : vector<1x16x128xbf16> to vector<16x128xbf16>
    %367 = arith.extf %366 : vector<16x128xbf16> to vector<16x128xf32>
    %368 = arith.addf %357, %367 : vector<16x128xf32>
    %369 = vector.extract_strided_slice %362 {offsets = [0, 0], sizes = [16, 96], strides = [1, 1]} : vector<16x128xf32> to vector<16x96xf32>
    %370 = arith.negf %369 : vector<16x96xf32>
    %371 = math.exp %370 : vector<16x96xf32>
    %cst_77 = arith.constant 1.000000e+00 : f32
    %372 = vector.broadcast %cst_77 : f32 to vector<16x96xf32>
    %373 = arith.addf %372, %371 : vector<16x96xf32>
    %374 = arith.divf %372, %373 : vector<16x96xf32>
    %375 = vector.extract_strided_slice %368 {offsets = [0, 0], sizes = [16, 96], strides = [1, 1]} : vector<16x128xf32> to vector<16x96xf32>
    %376 = arith.negf %375 : vector<16x96xf32>
    %377 = math.exp %376 : vector<16x96xf32>
    %cst_78 = arith.constant 1.000000e+00 : f32
    %378 = vector.broadcast %cst_78 : f32 to vector<16x96xf32>
    %379 = arith.addf %378, %377 : vector<16x96xf32>
    %380 = arith.divf %378, %379 : vector<16x96xf32>
    %381 = vector.extract_strided_slice %362 {offsets = [0, 96], sizes = [16, 32], strides = [1, 1]} : vector<16x128xf32> to vector<16x32xf32>
    %382 = math.tanh %381 : vector<16x32xf32>
    %383 = vector.extract_strided_slice %368 {offsets = [0, 96], sizes = [16, 32], strides = [1, 1]} : vector<16x128xf32> to vector<16x32xf32>
    %384 = math.tanh %383 : vector<16x32xf32>
    %385 = vector.extract_strided_slice %374 {offsets = [0, 32], sizes = [16, 32], strides = [1, 1]} : vector<16x96xf32> to vector<16x32xf32>
    %386 = arith.mulf %385, %341 : vector<16x32xf32>
    %387 = vector.extract_strided_slice %374 {offsets = [0, 0], sizes = [16, 32], strides = [1, 1]} : vector<16x96xf32> to vector<16x32xf32>
    %388 = arith.mulf %387, %382 : vector<16x32xf32>
    %389 = arith.addf %386, %388 : vector<16x32xf32>
    %390 = vector.extract_strided_slice %380 {offsets = [0, 32], sizes = [16, 32], strides = [1, 1]} : vector<16x96xf32> to vector<16x32xf32>
    %391 = arith.mulf %390, %346 : vector<16x32xf32>
    %392 = vector.extract_strided_slice %380 {offsets = [0, 0], sizes = [16, 32], strides = [1, 1]} : vector<16x96xf32> to vector<16x32xf32>
    %393 = arith.mulf %392, %384 : vector<16x32xf32>
    %394 = arith.addf %391, %393 : vector<16x32xf32>
    %395 = vector.extract_strided_slice %374 {offsets = [0, 64], sizes = [16, 32], strides = [1, 1]} : vector<16x96xf32> to vector<16x32xf32>
    %396 = math.tanh %389 : vector<16x32xf32>
    %397 = arith.mulf %395, %396 : vector<16x32xf32>
    %398 = vector.extract_strided_slice %380 {offsets = [0, 64], sizes = [16, 32], strides = [1, 1]} : vector<16x96xf32> to vector<16x32xf32>
    %399 = math.tanh %394 : vector<16x32xf32>
    %400 = arith.mulf %398, %399 : vector<16x32xf32>
    %c8_i32 = arith.constant 8 : i32
    %401 = tpu.concatenate %397, %400 in 1 : vector<16x32xf32>, vector<16x32xf32> -> vector<16x64xf32>
    %402 = arith.truncf %401 : vector<16x64xf32> to vector<16x64xbf16>
    %c0_79 = arith.constant 0 : index
    %c0_80 = arith.constant 0 : index
    %403 = vector.load %arg5[%c0_79, %c0_80] : memref<64x32xbf16, #tpu.memory_space<vmem>>, vector<64x32xbf16>
    %cst_81 = arith.constant dense<0.000000e+00> : vector<16x32xf32>
    %404 = tpu.matmul %402, %403, %cst_81 {dimension_numbers = #tpu.dot_dimension_numbers<[1], [0], [0], [1], [0, 0, 1, 1], [], []>} : vector<16x64xbf16>, vector<64x32xbf16>, vector<16x32xf32> -> vector<16x32xf32>
    %c0_82 = arith.constant 0 : index
    %c0_83 = arith.constant 0 : index
    %405 = vector.load %arg6[%c0_82, %c0_83] : memref<1x32xf32, #tpu.memory_space<vmem>>, vector<1x32xf32>
    %406 = vector.broadcast %405 : vector<1x32xf32> to vector<16x32xf32>
    %407 = arith.addf %404, %406 : vector<16x32xf32>
    %cst_84 = arith.constant 0.000000e+00 : f32
    %408 = vector.broadcast %cst_84 : f32 to vector<16x32xf32>
    %409 = arith.maximumf %407, %408 : vector<16x32xf32>
    %410 = arith.truncf %409 : vector<16x32xf32> to vector<16x32xbf16>
    %c0_85 = arith.constant 0 : index
    %c0_86 = arith.constant 0 : index
    %411 = vector.load %arg7[%c0_85, %c0_86] : memref<32x128xbf16, #tpu.memory_space<vmem>>, vector<32x128xbf16>
    %cst_87 = arith.constant dense<0.000000e+00> : vector<16x128xf32>
    %412 = tpu.matmul %410, %411, %cst_87 {dimension_numbers = #tpu.dot_dimension_numbers<[1], [0], [0], [1], [0, 0, 1, 1], [], []>} : vector<16x32xbf16>, vector<32x128xbf16>, vector<16x128xf32> -> vector<16x128xf32>
    %c0_88 = arith.constant 0 : index
    %c0_89 = arith.constant 0 : index
    %413 = vector.load %arg8[%c0_88, %c0_89] : memref<1x128xf32, #tpu.memory_space<vmem>>, vector<1x128xf32>
    %414 = vector.broadcast %413 : vector<1x128xf32> to vector<16x128xf32>
    %415 = arith.addf %412, %414 : vector<16x128xf32>
    %c0_90 = arith.constant 0 : index
    %c0_91 = arith.constant 0 : index
    %416 = vector.load %arg9[%c0_90, %c0_91] : memref<16x128xf32, #tpu.memory_space<vmem>>, vector<16x128xf32>
    tpu.vector_store %arg9[%c0_90, %c0_91], %415 {strides = array<i32>} : memref<16x128xf32, #tpu.memory_space<vmem>>, vector<16x128xf32>,
    return
  }
  func.func @transform_0(%arg0: i32) -> (i32, i32, i32) {
    %c0_i32 = arith.constant 0 : i32
    %c0_i32_0 = arith.constant 0 : i32
    %c0_i32_1 = arith.constant 0 : i32
    return %c0_i32, %arg0, %c0_i32_0 : i32, i32, i32
  }
  func.func @transform_1(%arg0: i32) -> (i32, i32) {
    %c0_i32 = arith.constant 0 : i32
    %c0_i32_0 = arith.constant 0 : i32
    %c0_i32_1 = arith.constant 0 : i32
    return %c0_i32, %c0_i32_0 : i32, i32
  }
  func.func @transform_2(%arg0: i32) -> (i32, i32) {
    %c0_i32 = arith.constant 0 : i32
    %c0_i32_0 = arith.constant 0 : i32
    %c0_i32_1 = arith.constant 0 : i32
    return %c0_i32, %c0_i32_0 : i32, i32
  }
  func.func @transform_3(%arg0: i32) -> (i32, i32) {
    %c0_i32 = arith.constant 0 : i32
    %c0_i32_0 = arith.constant 0 : i32
    %c0_i32_1 = arith.constant 0 : i32
    return %c0_i32, %c0_i32_0 : i32, i32
  }
  func.func @transform_4(%arg0: i32) -> (i32, i32) {
    %c0_i32 = arith.constant 0 : i32
    %c0_i32_0 = arith.constant 0 : i32
    %c0_i32_1 = arith.constant 0 : i32
    return %c0_i32, %c0_i32_0 : i32, i32
  }
  func.func @transform_5(%arg0: i32) -> (i32, i32) {
    %c0_i32 = arith.constant 0 : i32
    %c0_i32_0 = arith.constant 0 : i32
    %c0_i32_1 = arith.constant 0 : i32
    return %c0_i32, %c0_i32_0 : i32, i32
  }
  func.func @transform_6(%arg0: i32) -> (i32, i32) {
    %c0_i32 = arith.constant 0 : i32
    %c0_i32_0 = arith.constant 0 : i32
    %c0_i32_1 = arith.constant 0 : i32
    return %c0_i32, %c0_i32_0 : i32, i32
  }
  func.func @transform_7(%arg0: i32) -> (i32, i32) {
    %c0_i32 = arith.constant 0 : i32
    %c0_i32_0 = arith.constant 0 : i32
    %c0_i32_1 = arith.constant 0 : i32
    return %c0_i32, %c0_i32_0 : i32, i32
  }
  func.func @transform_8(%arg0: i32) -> (i32, i32) {
    %c0_i32 = arith.constant 0 : i32
    %c0_i32_0 = arith.constant 0 : i32
    return %arg0, %c0_i32 : i32, i32
  }
}

</mosaic_0001>

<bundles_post_ra>
// kernel: neural_net_forward.1
= control target key start
LH: loop header
LB: loop body
LE: loop exit
PB: predicated region body
PF: predicated region fallthrough
CT: control target
= control target key end

     0   :  { %vm116_vm0 = vcmask 261120   ;;  %v2840_v25 = vmov 0.0|0.0   ;;  %s2843_s24 = smov 96   ;;  %s3494_s1 = inlined_call_operand.vmem [shape: bf16[32,256], index: 1, kind: input, shape index: {}]   ;;  %s3495_s3 = inlined_call_operand.vmem [shape: bf16[64,256], index: 3, kind: input, shape index: {}]   ;;  %s3496_s0 = inlined_call_operand.vmem [shape: bf16[8,16,32], index: 0, kind: input, shape index: {}]   ;;  %s3497_s2 = inlined_call_operand.vmem [shape: f32[1,256], index: 2, kind: input, shape index: {}]   ;;  %s3498_s4 = inlined_call_operand.vmem [shape: bf16[64,32], index: 4, kind: input, shape index: {}]   ;;  %s3499_s5 = inlined_call_operand.vmem [shape: f32[1,32], index: 5, kind: input, shape index: {}]   ;;  %s3500_s6 = inlined_call_operand.vmem [shape: bf16[32,128], index: 6, kind: input, shape index: {}]   ;;  %s3501_s7 = inlined_call_operand.vmem [shape: f32[1,128], index: 7, kind: input, shape index: {}]   ;;  %s3502_s8 = inlined_call_operand.vmem [shape: f32[16,128], index: 8, kind: output, shape index: {}]  }
   0x1   :  { %v2188_v0 = vld [vmem:[%s3494_s1 + $0x10] sm:$0xf]  ;;  %v2317_v1 = vld [vmem:[%s3494_s1 + $0x14] sm:$0xf0]  ;;  %v2316_v2 = vld [vmem:[%s3494_s1 + $0x14] sm:$0xf] }
   0x2   :  { %v2189_v3 = vor.u32 %v2317_v1, %v2188_v0  ;;  %v2190_v4 = vld [vmem:[%s3494_s1 + $0x18] sm:$0xf0]  ;;  %v2236_v5 = vld [vmem:[%s3495_s3 + $0x30] sm:$0xf]  ;;  %v2333_v6 = vld [vmem:[%s3495_s3 + $0x34] sm:$0xf0] }
   0x3   :  { %v2193_v7 = vor.u32 %v2316_v2, %v2190_v4  ;;  %v2907_v8 = vor.u32 %v2333_v6, %v2236_v5  ;;  %v2180_v9 = vld [vmem:[%s3494_s1] sm:$0xf]  ;;  %v2315_v10 = vld [vmem:[%s3494_s1 + $0x4] sm:$0xf0]  ;;  %v2314_v11 = vld [vmem:[%s3494_s1 + $0x4] sm:$0xf] }
   0x4   :  { %147 = vmatpush.bf16.msra.mxu0 %v2189_v3  ;;  %v2181_v12 = vor.u32 %v2315_v10, %v2180_v9  ;;  %v2182_v13 = vld [vmem:[%s3494_s1 + $0x8] sm:$0xf0]  ;;  %v2228_v14 = vld [vmem:[%s3495_s3 + $0x20] sm:$0xf]  ;;  %v2331_v15 = vld [vmem:[%s3495_s3 + $0x24] sm:$0xf0] }
   0x5   :  { %196 = vmatpush.bf16.msra.mxu1 %v2193_v7  ;;  %360 = vmatpush.bf16.msra.mxu2 %v2907_v8  ;;  %v2185_v16 = vor.u32 %v2314_v11, %v2182_v13  ;;  %v2928_v17 = vor.u32 %v2331_v15, %v2228_v14  ;;  %v2220_v18 = vld [vmem:[%s3495_s3 + $0x10] sm:$0xf]  ;;  %v2329_v19 = vld [vmem:[%s3495_s3 + $0x14] sm:$0xf0]  ;;  %v2318_v20 = vld [vmem:[%s3496_s0] sm:$0xff] }
   0x6   :  { %v2940_v21 = vor.u32 %v2329_v19, %v2220_v18  ;;  %v2212_v22 = vld [vmem:[%s3495_s3] sm:$0xf]  ;;  %v2327_v23 = vld [vmem:[%s3495_s3 + $0x4] sm:$0xf0]  ;;  %v2320_v27 = vld [vmem:[%s3496_s0 + $0x10] sm:$0xff] }
   0x7   :  { %v2951_v24 = vor.u32 %v2327_v23, %v2212_v22  ;;  %v2319_v26 = vld [vmem:[%s3496_s0 + $0x8] sm:$0xff]  ;;  %v2321_v28 = vld [vmem:[%s3496_s0 + $0x18] sm:$0xff]  ;;  %v2322_v29 = vld [vmem:[%s3496_s0 + $0x20] sm:$0xff] }
   0x8   :  { %148 = vmatpush.bf16.msra.mxu0 %v2181_v12  ;;  %v2332_v30 = vld [vmem:[%s3495_s3 + $0x34] sm:$0xf]  ;;  %v2238_v31 = vld [vmem:[%s3495_s3 + $0x38] sm:$0xf0]  ;;  %v2330_v33 = vld [vmem:[%s3495_s3 + $0x24] sm:$0xf] }
   0x9   :  { %197 = vmatpush.bf16.msra.mxu1 %v2185_v16  ;;  %361 = vmatpush.bf16.msra.mxu2 %v2928_v17  ;;  %v2986_v32 = vor.u32 %v2332_v30, %v2238_v31  ;;  %v2230_v34 = vld [vmem:[%s3495_s3 + $0x28] sm:$0xf0]  ;;  %v2328_v36 = vld [vmem:[%s3495_s3 + $0x14] sm:$0xf]  ;;  %v2222_v37 = vld [vmem:[%s3495_s3 + $0x18] sm:$0xf0] }
   0xa   :  { %v2997_v35 = vor.u32 %v2330_v33, %v2230_v34  ;;  %v3006_v38 = vor.u32 %v2328_v36, %v2222_v37  ;;  %v2326_v39 = vld [vmem:[%s3495_s3 + $0x4] sm:$0xf]  ;;  %v2214_v40 = vld [vmem:[%s3495_s3 + $0x8] sm:$0xf0]  ;;  %v2324_v43 = vld [vmem:[%s3496_s0 + $0x30] sm:$0xff] }
   0xb   :  { %2194 = vmatmul.msk.bf16.vlgmr.msra.gmra.mxu0 %vm116_vm0, %v2318_v20  ;;  %374 = vmatpush.bf16.msra.mxu3 %v2986_v32  ;;  %v3015_v41 = vor.u32 %v2326_v39, %v2214_v40  ;;  %v2323_v42 = vld [vmem:[%s3496_s0 + $0x28] sm:$0xff]  ;;  %v2325_v44 = vld [vmem:[%s3496_s0 + $0x38] sm:$0xff]  ;;  %v34_v47 = vld [vmem:[%s3497_s2] sm:$0x3]  ;;  %s2841_s0 = smov 32   ;;  %s2842_s2 = smov 64  }
   0xc   :  { %2202 = vmatmul.msk.bf16.vlgmr.msra.gmra.mxu1 %vm116_vm0, %v2318_v20  ;;  %v3044_v48 = vperm.slane %v34_v47, 0  ;;  %v3046_v49 = vperm.slane %v34_v47, 1 }
   0xd   :  { %362 = vmatpush.bf16.msra.mxu2 %v2940_v21 }
   0xf   :  { %375 = vmatpush.bf16.msra.mxu3 %v2997_v35 }
  0x11   :  { %363 = vmatpush.bf16.msra.mxu2 %v2951_v24 }
  0x13   :  { %376 = vmatpush.bf16.msra.mxu3 %v3006_v38 }
  0x14   :  { %364 = vmatmul.bf16.vlgmr.msra.gmra.mxu2 %v2840_v25 }
  0x15   :  { %571 = vmatpush.bf16.msrb.mxu2 %v2907_v8 }
  0x17   :  { %377 = vmatpush.bf16.msra.mxu3 %v3015_v41 }
  0x19   :  { %572 = vmatpush.bf16.msrb.mxu2 %v2928_v17 }
  0x1a   :  { %378 = vmatmul.bf16.vlgmr.msra.gmra.mxu3 %v2840_v25 }
  0x1b   :  { %2195 = vmatmul.msk.bf16.gmra.mxu0 %vm116_vm0, %v2319_v26  ;;  %585 = vmatpush.bf16.msrb.mxu3 %v2986_v32 }
  0x1c   :  { %2203 = vmatmul.msk.bf16.gmra.mxu1 %vm116_vm0, %v2319_v26 }
  0x1d   :  { %573 = vmatpush.bf16.msrb.mxu2 %v2940_v21 }
  0x1f   :  { %586 = vmatpush.bf16.msrb.mxu3 %v2997_v35 }
  0x21   :  { %574 = vmatpush.bf16.msrb.mxu2 %v2951_v24 }
  0x23   :  { %587 = vmatpush.bf16.msrb.mxu3 %v3006_v38 }
  0x25   :  { %783 = vmatpush.bf16.msra.mxu2 %v2907_v8 }
  0x27   :  { %588 = vmatpush.bf16.msrb.mxu3 %v3015_v41 }
  0x29   :  { %784 = vmatpush.bf16.msra.mxu2 %v2928_v17 }
  0x2b   :  { %2196 = vmatmul.msk.bf16.gmra.mxu0 %vm116_vm0, %v2320_v27  ;;  %797 = vmatpush.bf16.msra.mxu3 %v2986_v32 }
  0x2c   :  { %2204 = vmatmul.msk.bf16.gmra.mxu1 %vm116_vm0, %v2320_v27 }
  0x2d   :  { %785 = vmatpush.bf16.msra.mxu2 %v2940_v21 }
  0x2f   :  { %798 = vmatpush.bf16.msra.mxu3 %v2997_v35 }
  0x31   :  { %786 = vmatpush.bf16.msra.mxu2 %v2951_v24 }
  0x33   :  { %799 = vmatpush.bf16.msra.mxu3 %v3006_v38 }
  0x37   :  { %800 = vmatpush.bf16.msra.mxu3 %v3015_v41 }
  0x3b   :  { %2197 = vmatmul.msk.bf16.gmra.mxu0 %vm116_vm0, %v2321_v28 }
  0x3c   :  { %2205 = vmatmul.msk.bf16.gmra.mxu1 %vm116_vm0, %v2321_v28 }
  0x4b   :  { %2198 = vmatmul.msk.bf16.gmra.mxu0 %vm116_vm0, %v2322_v29 }
  0x4c   :  { %2206 = vmatmul.msk.bf16.gmra.mxu1 %vm116_vm0, %v2322_v29 }
  0x5b   :  { %2199 = vmatmul.msk.bf16.gmra.mxu0 %vm116_vm0, %v2323_v42 }
  0x5c   :  { %2207 = vmatmul.msk.bf16.gmra.mxu1 %vm116_vm0, %v2323_v42 }
  0x6b   :  { %2200 = vmatmul.msk.bf16.gmra.mxu0 %vm116_vm0, %v2324_v43 }
  0x6c   :  { %2208 = vmatmul.msk.bf16.gmra.mxu1 %vm116_vm0, %v2324_v43 }
  0x7b   :  { %2201 = vmatmul.msk.bf16.gmra.mxu0 %vm116_vm0, %v2325_v44 }
  0x7c   :  { %2209 = vmatmul.msk.bf16.gmra.mxu1 %vm116_vm0, %v2325_v44 }
  0x88   :  { %v150_v45 = vpop.f32.mrf.mxu0 }
  0x89   :  { %v199_v46 = vpop.f32.mrf.mxu1  ;;  %v151_v50 = vadd.f32 %v150_v45, %v3044_v48 }
  0x8a   :  { %v200_v54 = vadd.f32 %v199_v46, %v3046_v49 }
  0x90   :  { %v152_v51 = vpop.f32.mrf.mxu0 }
  0x91   :  { %v153_v52 = vadd.f32 %v152_v51, %v3044_v48  ;;  %v201_v53 = vpop.f32.mrf.mxu1 }
  0x92   :  { %v202_v55 = vadd.f32 %v201_v53, %v3046_v49 }
  0x93   :  { %v2343_v56 = vpack.c.bf16 %v153_v52, %v151_v50 }
  0x94   :  { %v3052_v57 = vpack.c.bf16 %v202_v55, %v200_v54 }
  0x95   :  { %v2422_v58 = vunpack.c.l.bf16 %v2343_v56  ;;  %v2423_v62 = vunpack.c.h.bf16 %v2343_v56 }
  0x97   :  { %v365_v59 = vpop.f32.mrf.mxu2 }
  0x98   :  { %v388_v60 = vadd.f32 %v2422_v58, %v365_v59 }
  0x99   :  { %v204_v61 = vpop.f32.mrf.mxu1 }
  0x9a   :  { %2584 = vtanh.f32 %v388_v60  ;;  %v205_v3 = vadd.f32 %v204_v61, %v3046_v49  ;;  %v2242_v30 = vmul.f32 -1.442695, %v388_v60 }
  0x9d   :  { %v379_v53 = vpop.f32.mrf.mxu3 }
  0x9f   :  { %v367_v63 = vpop.f32.mrf.mxu2 }
  0xa0   :  { %v2585_v0 = vpop.eup %2584  ;;  %v389_v1 = vadd.f32 %v2423_v62, %v367_v63 }
  0xa1   :  { %v206_v2 = vpop.f32.mrf.mxu1  ;;  %481 = vrot.lane.b32.xlu0 %v2585_v0, %s2841_s0 }
  0xa2   :  { %2586 = vtanh.f32 %v389_v1  ;;  %v207_v4 = vadd.f32 %v206_v2, %v3046_v49  ;;  %v2243_v34 = vmul.f32 -1.442695, %v389_v1 }
  0xa3   :  { %2588 = vpow2.f32 %v2242_v30 }
  0xa4   :  { %v3057_v5 = vpack.c.bf16 %v207_v4, %v205_v3  ;;  %2590 = vpow2.f32 %v2243_v34 }
  0xa5   :  { %v381_v4 = vpop.f32.mrf.mxu3 }
  0xa8   :  { %v2587_v6 = vpop.eup %2586 }
  0xa9   :  { %v209_v7 = vpop.f32.mrf.mxu1  ;;  %483 = vrot.lane.b32.xlu0 %v2587_v6, %s2841_s0  ;;  %v2589_v36 = vpop.eup %2588 }
  0xaa   :  { %v210_v10 = vadd.f32 %v209_v7, %v3046_v49  ;;  %v403_v37 = vadd.f32 1.0, %v2589_v36  ;;  %v2591_v44 = vpop.eup %2590 }
  0xab   :  { %v404_v45 = vadd.f32 1.0, %v2591_v44 }
  0xac   :  { %2592 = vrcp.f32 %v403_v37  ;;  %vm410_vm1 = vweird.f32 %v403_v37  ;;  %v416_v63 = vand.u32 2147483648, %v403_v37  ;;  %v414_v1 = vand.u32 2147483647, %v403_v37 }
  0xad   :  { %2594 = vrcp.f32 %v404_v45  ;;  %vm425_vm5 = vweird.f32 %v404_v45 }
  0xae   :  { %v417_v6 = vor.u32 1.1754944e-38, %v416_v63  ;;  %vm415_vm4 = vcmp.eq.f32.partialorder %v414_v1, 8.507059e+37 }
  0xb1   :  { %v211_v9 = vpop.f32.mrf.mxu1 }
  0xb2   :  { %v212_v11 = vadd.f32 %v211_v9, %v3046_v49  ;;  %v2593_v47 = vpop.eup %2592 }
  0xb3   :  { %v406_v50 = vmul.f32 %v2593_v47, %v403_v37  ;;  %v2595_v56 = vpop.eup %2594  ;;  %vm411_vm2 = vweird.f32 %v2593_v47 }
  0xb4   :  { %v3062_v12 = vpack.c.bf16 %v212_v11, %v210_v10  ;;  %v421_v61 = vmul.f32 %v2595_v56, %v404_v45  ;;  %vm412_vm3 = vmor %vm410_vm1, %vm411_vm2  ;;  %vm426_vm6 = vweird.f32 %v2595_v56  ;;  %vm352_vm2 = vcmask 523264  }
  0xb5   :  { %v407_v55 = vsub.f32 1.0, %v406_v50  ;;  %vm427_vm7 = vmor %vm425_vm5, %vm426_vm6 }
  0xb6   :  { %v422_v2 = vsub.f32 1.0, %v421_v61 }
  0xb7   :  { %v408_v60 = vmul.f32 %v2593_v47, %v407_v55 }
  0xb9   :  { %v214_v13 = vpop.f32.mrf.mxu1  ;;  %v409_v0 = vadd.f32 %v2593_v47, %v408_v60 }
  0xba   :  { %v215_v15 = vadd.f32 %v214_v13, %v3046_v49  ;;  %v431_v13 = vand.u32 2147483648, %v404_v45 }
  0xbb   :  { %v413_v7 = vsel %vm412_vm3, %v2593_v47, %v409_v0 }
  0xbc   :  { %v3082_v11 = vsel %vm415_vm4, %v417_v6, %v413_v7 }
  0xc1   :  { %v216_v14 = vpop.f32.mrf.mxu1 }
  0xc2   :  { %v217_v16 = vadd.f32 %v216_v14, %v3046_v49 }
  0xc4   :  { %v3066_v18 = vpack.c.bf16 %v217_v16, %v215_v15  ;;  %v429_v15 = vand.u32 2147483647, %v404_v45 }
  0xc6   :  { %vm430_vm8 = vcmp.eq.f32.partialorder %v429_v15, 8.507059e+37 }
  0xc9   :  { %v219_v19 = vpop.f32.mrf.mxu1 }
  0xca   :  { %v220_v22 = vadd.f32 %v219_v19, %v3046_v49 }
  0xd1   :  { %v221_v20 = vpop.f32.mrf.mxu1 }
  0xd2   :  { %v222_v23 = vadd.f32 %v221_v20, %v3046_v49  ;;  %v432_v20 = vor.u32 1.1754944e-38, %v431_v13 }
  0xd4   :  { %v3070_v25 = vpack.c.bf16 %v222_v23, %v220_v22 }
  0xd9   :  { %v224_v26 = vpop.f32.mrf.mxu1 }
  0xda   :  { %v225_v28 = vadd.f32 %v224_v26, %v3046_v49 }
  0xe1   :  { %v226_v27 = vpop.f32.mrf.mxu1 }
  0xe2   :  { %v227_v29 = vadd.f32 %v226_v27, %v3046_v49 }
  0xe4   :  { %v3074_v31 = vpack.c.bf16 %v227_v29, %v225_v28 }
  0xe9   :  { %v229_v33 = vpop.f32.mrf.mxu1 }
  0xea   :  { %v230_v40 = vadd.f32 %v229_v33, %v3046_v49 }
  0xf1   :  { %v231_v39 = vpop.f32.mrf.mxu1 }
  0xf2   :  { %v232_v42 = vadd.f32 %v231_v39, %v3046_v49 }
  0xf4   :  { %v3078_v43 = vpack.c.bf16 %v232_v42, %v230_v40  ;;  %v477_v40 = vmul.f32 0.0, %v3082_v11 }
  0xf9   :  { %v234_v46 = vpop.f32.mrf.mxu1 }
  0xfa   :  { %v235_v52 = vadd.f32 %v234_v46, %v3046_v49 }
 0x101   :  { %v236_v51 = vpop.f32.mrf.mxu1 }
 0x102   :  { %v237_v54 = vadd.f32 %v236_v51, %v3046_v49  ;;  %v423_v49 = vmul.f32 %v2595_v56, %v422_v2 }
 0x104   :  { %v2418_v58 = vpack.c.bf16 %v237_v54, %v235_v52  ;;  %v424_v14 = vadd.f32 %v2595_v56, %v423_v49 }
 0x106   :  { %v2426_v59 = vunpack.c.l.bf16 %v2418_v58  ;;  %v2427_v3 = vunpack.c.h.bf16 %v2418_v58  ;;  %v428_v22 = vsel %vm427_vm7, %v2595_v56, %v424_v14 }
 0x107   :  { %v3087_v26 = vsel %vm430_vm8, %v432_v20, %v428_v22 }
 0x108   :  { %v395_v62 = vadd.f32 %v2426_v59, %v379_v53  ;;  %v396_v9 = vadd.f32 %v2427_v3, %v381_v4  ;;  %v478_v61 = vmul.f32 0.0, %v3087_v26 }
 0x10a   :  { %2596 = vtanh.f32 %v395_v62  ;;  %v2244_v29 = vmul.f32 -1.442695, %v395_v62  ;;  %v2245_v30 = vmul.f32 -1.442695, %v396_v9 }
 0x10b   :  { %2598 = vtanh.f32 %v396_v9 }
 0x10c   :  { %2600 = vpow2.f32 %v2244_v29 }
 0x10d   :  { %2602 = vpow2.f32 %v2245_v30 }
 0x110   :  { %v2597_v10 = vpop.eup %2596 }
 0x111   :  { %503 = vrot.lane.b32.xlu1 %v2597_v10, %s2841_s0  ;;  %v2599_v23 = vpop.eup %2598 }
 0x112   :  { %v2601_v33 = vpop.eup %2600 }
 0x113   :  { %v482_v16 = vpop.permute.xlu0 %481  ;;  %v441_v34 = vadd.f32 1.0, %v2601_v33  ;;  %v2603_v36 = vpop.eup %2602 }
 0x114   :  { %v487_v19 = vmul.f32 %v482_v16, %v3082_v11  ;;  %v442_v37 = vadd.f32 1.0, %v2603_v36 }
 0x115   :  { %2604 = vrcp.f32 %v441_v34  ;;  %v454_v55 = vand.u32 2147483648, %v441_v34  ;;  %vm448_vm10 = vweird.f32 %v441_v34  ;;  %v452_v56 = vand.u32 2147483647, %v441_v34 }
 0x116   :  { %491 = vrot.lane.b32.xlu2 %v487_v19, %s2841_s0  ;;  %2606 = vrcp.f32 %v442_v37  ;;  %v469_v4 = vand.u32 2147483648, %v442_v37  ;;  %vm463_vm14 = vweird.f32 %v442_v37  ;;  %v467_v6 = vand.u32 2147483647, %v442_v37 }
 0x117   :  { %v455_v62 = vor.u32 1.1754944e-38, %v454_v55  ;;  %vm453_vm12 = vcmp.eq.f32.partialorder %v452_v56, 8.507059e+37  ;;  %v155_v55 = vpop.f32.mrf.mxu0 }
 0x118   :  { %v470_v49 = vor.u32 1.1754944e-38, %v469_v4  ;;  %vm468_vm1 = vcmp.eq.f32.partialorder %v467_v6, 8.507059e+37  ;;  %v2435_v6 = vunpack.c.h.bf16 %v3078_v43 }
 0x119   :  { %505 = vrot.lane.b32.xlu1 %v2599_v23, %s2841_s0 }
 0x11b   :  { %v484_v27 = vpop.permute.xlu0 %483  ;;  %v2605_v39 = vpop.eup %2604 }
 0x11c   :  { %v488_v28 = vmul.f32 %v484_v27, %v3087_v26  ;;  %v444_v45 = vmul.f32 %v2605_v39, %v441_v34  ;;  %v2607_v47 = vpop.eup %2606  ;;  %vm449_vm9 = vweird.f32 %v2605_v39 }
 0x11d   :  { %v459_v52 = vmul.f32 %v2607_v47, %v442_v37  ;;  %vm450_vm11 = vmor %vm448_vm10, %vm449_vm9  ;;  %vm464_vm13 = vweird.f32 %v2607_v47 }
 0x11e   :  { %493 = vrot.lane.b32.xlu2 %v488_v28, %s2841_s0  ;;  %v445_v46 = vsub.f32 1.0, %v444_v45  ;;  %vm465_vm15 = vmor %vm463_vm14, %vm464_vm13 }
 0x11f   :  { %v460_v54 = vsub.f32 1.0, %v459_v52  ;;  %v157_v56 = vpop.f32.mrf.mxu0 }
 0x120   :  { %v446_v51 = vmul.f32 %v2605_v39, %v445_v46 }
 0x121   :  { %v461_v60 = vmul.f32 %v2607_v47, %v460_v54 }
 0x122   :  { %v447_v53 = vadd.f32 %v2605_v39, %v446_v51 }
 0x123   :  { %v462_v3 = vadd.f32 %v2607_v47, %v461_v60 }
 0x124   :  { %v451_v59 = vsel %vm450_vm11, %v2605_v39, %v447_v53 }
 0x125   :  { %v456_v1 = vsel %vm453_vm12, %v455_v62, %v451_v59  ;;  %v466_v7 = vsel %vm465_vm15, %v2607_v47, %v462_v3  ;;  %v158_v59 = vadd.f32 %v157_v56, %v3044_v48  ;;  %v2434_v62 = vunpack.c.l.bf16 %v3078_v43 }
 0x126   :  { %v471_v9 = vsel %vm468_vm1, %v470_v49, %v466_v7  ;;  %v499_v15 = vmul.f32 0.0, %v456_v1 }
 0x127   :  { %v500_v22 = vmul.f32 0.0, %v471_v9 }
 0x170   :  { %v492_v42 = vpop.permute.xlu2 %491 }
 0x171   :  { %v3093_v44 = vadd.f32 %v492_v42, %v477_v40 }
 0x173   :  { %2608 = vtanh.f32 %v3093_v44 }
 0x178   :  { %v494_v58 = vpop.permute.xlu2 %493 }
 0x179   :  { %v2609_v50 = vpop.eup %2608  ;;  %v3098_v63 = vadd.f32 %v494_v58, %v478_v61  ;;  %v156_v58 = vadd.f32 %v155_v55, %v3044_v48 }
 0x17a   :  { %525 = vrot.lane.b32.xlu2 %v2609_v50, %s2841_s0 }
 0x17b   :  { %2610 = vtanh.f32 %v3098_v63  ;;  %v2348_v60 = vpack.c.bf16 %v158_v59, %v156_v58 }
 0x17d   :  { %v2430_v61 = vunpack.c.l.bf16 %v2348_v60  ;;  %v2431_v4 = vunpack.c.h.bf16 %v2348_v60 }
 0x181   :  { %v2611_v14 = vpop.eup %2610 }
 0x183   :  { %v504_v0 = vpop.permute.xlu1 %503 }
 0x184   :  { %v509_v2 = vmul.f32 %v504_v0, %v456_v1 }
 0x186   :  { %513 = vrot.lane.b32.xlu0 %v509_v2, %s2841_s0 }
 0x18b   :  { %v506_v10 = vpop.permute.xlu1 %505 }
 0x18c   :  { %v510_v13 = vmul.f32 %v506_v10, %v471_v9 }
 0x18e   :  { %515 = vrot.lane.b32.xlu1 %v510_v13, %s2841_s0  ;;  %527 = vrot.lane.b32.xlu0 %v2611_v14, %s2841_s0 }
 0x1d4   :  { %v526_v20 = vpop.permute.xlu2 %525 }
 0x1d5   :  { %v531_v29 = vmul.f32 %v526_v20, %v3082_v11 }
 0x1f8   :  { %v514_v16 = vpop.permute.xlu0 %513 }
 0x1f9   :  { %v3104_v19 = vadd.f32 %v514_v16, %v499_v15 }
 0x1fb   :  { %2612 = vtanh.f32 %v3104_v19 }
 0x200   :  { %v516_v23 = vpop.permute.xlu1 %515  ;;  %v528_v27 = vpop.permute.xlu0 %527 }
 0x201   :  { %v2613_v28 = vpop.eup %2612  ;;  %v3108_v30 = vadd.f32 %v516_v23, %v500_v22  ;;  %v532_v33 = vmul.f32 %v528_v27, %v3087_v26 }
 0x202   :  { %537 = vrot.lane.b32.xlu1 %v2613_v28, %s2841_s0 }
 0x203   :  { %2614 = vtanh.f32 %v3108_v30  ;;  %v2502_v34 = vpack.i.bf16 %v532_v33, %v531_v29 }
 0x205   :  { %2503 = vrot.lane.b32.xlu0 %v2502_v34, %s2842_s2 }
 0x209   :  { %v2615_v36 = vpop.eup %2614 }
 0x20a   :  { %539 = vrot.lane.b32.xlu2 %v2615_v36, %s2841_s0 }
 0x264   :  { %v540_v37 = vpop.permute.xlu2 %539 }
 0x265   :  { %v544_v40 = vmul.f32 %v540_v37, %v471_v9 }
 0x274   :  { %v538_v39 = vpop.permute.xlu1 %537 }
 0x275   :  { %v543_v42 = vmul.f32 %v538_v39, %v456_v1 }
 0x277   :  { %v2507_v11 = vpack.i.bf16 %v544_v40, %v543_v42  ;;  %v2504_v26 = vpop.permute.xlu0 %2503 }
 0x278   :  { %v2506_v46 = vunpack.i.h.bf16 %v2504_v26  ;;  %v2505_v47 = vunpack.i.l.bf16 %v2504_v26 }
 0x279   :  { %2508 = vrot.lane.b32.xlu1 %v2507_v11, %s2843_s24 }
 0x2eb   :  { %v2509_v45 = vpop.permute.xlu1 %2508 }
 0x2ec   :  { %v2511_v50 = vunpack.i.h.bf16 %v2509_v45  ;;  %v2510_v51 = vunpack.i.l.bf16 %v2509_v45 }
 0x2ee   :  { %v562_v52 = vsel %vm116_vm0, %v2506_v46, %v2511_v50  ;;  %v561_v53 = vsel %vm116_vm0, %v2505_v47, %v2510_v51 }
 0x2ef   :  { %v563_v54 = vpack.c.bf16 %v562_v52, %v561_v53 }
 0x2f1   :  { %2246 = vmatmul.msk.bf16.vlgmr.msrb.gmra.mxu2 %vm352_vm2, %v563_v54  ;;  %2247 = vmatmul.msk.bf16.vlgmr.msrb.gmra.mxu3 %vm352_vm2, %v563_v54 }
 0x2f2   :  { %995 = vmatpush.bf16.msrb.mxu2 %v2907_v8  ;;  %1009 = vmatpush.bf16.msrb.mxu3 %v2986_v32 }
 0x2f6   :  { %996 = vmatpush.bf16.msrb.mxu2 %v2928_v17  ;;  %1010 = vmatpush.bf16.msrb.mxu3 %v2997_v35 }
 0x2fa   :  { %997 = vmatpush.bf16.msrb.mxu2 %v2940_v21  ;;  %1011 = vmatpush.bf16.msrb.mxu3 %v3006_v38 }
 0x2fe   :  { %998 = vmatpush.bf16.msrb.mxu2 %v2951_v24  ;;  %1012 = vmatpush.bf16.msrb.mxu3 %v3015_v41 }
 0x374   :  { %v576_v0 = vpop.f32.mrf.mxu2  ;;  %v590_v1 = vpop.f32.mrf.mxu3 }
 0x375   :  { %v600_v2 = vadd.f32 %v2430_v61, %v576_v0  ;;  %v607_v3 = vadd.f32 %v2434_v62, %v590_v1 }
 0x377   :  { %2616 = vtanh.f32 %v600_v2  ;;  %v2248_v20 = vmul.f32 -1.442695, %v600_v2  ;;  %v2250_v33 = vmul.f32 -1.442695, %v607_v3 }
 0x378   :  { %2618 = vtanh.f32 %v607_v3 }
 0x37c   :  { %v578_v7 = vpop.f32.mrf.mxu2  ;;  %v592_v49 = vpop.f32.mrf.mxu3 }
 0x37d   :  { %v2617_v9 = vpop.eup %2616  ;;  %v601_v10 = vadd.f32 %v2431_v4, %v578_v7  ;;  %v608_v13 = vadd.f32 %v2435_v6, %v592_v49 }
 0x37e   :  { %v2619_v14 = vpop.eup %2618  ;;  %693 = vrot.lane.b32.xlu2 %v2617_v9, %s2841_s0 }
 0x37f   :  { %2620 = vtanh.f32 %v601_v10  ;;  %715 = vrot.lane.b32.xlu1 %v2619_v14, %s2841_s0  ;;  %v2251_v43 = vmul.f32 -1.442695, %v608_v13  ;;  %v2249_v39 = vmul.f32 -1.442695, %v601_v10 }
 0x380   :  { %2622 = vtanh.f32 %v608_v13 }
 0x381   :  { %2624 = vpow2.f32 %v2248_v20 }
 0x382   :  { %2626 = vpow2.f32 %v2251_v43 }
 0x385   :  { %v2621_v15 = vpop.eup %2620 }
 0x386   :  { %v2623_v16 = vpop.eup %2622  ;;  %695 = vrot.lane.b32.xlu0 %v2621_v15, %s2841_s0 }
 0x387   :  { %717 = vrot.lane.b32.xlu2 %v2623_v16, %s2841_s0  ;;  %v2625_v22 = vpop.eup %2624 }
 0x388   :  { %v615_v23 = vadd.f32 1.0, %v2625_v22  ;;  %v2627_v27 = vpop.eup %2626 }
 0x389   :  { %v654_v28 = vadd.f32 1.0, %v2627_v27 }
 0x38a   :  { %2628 = vrcp.f32 %v615_v23  ;;  %v628_v46 = vand.u32 2147483648, %v615_v23  ;;  %vm622_vm4 = vweird.f32 %v615_v23  ;;  %v626_v50 = vand.u32 2147483647, %v615_v23 }
 0x38b   :  { %2630 = vrcp.f32 %v654_v28  ;;  %v681_v62 = vand.u32 2147483648, %v654_v28  ;;  %vm675_vm8 = vweird.f32 %v654_v28  ;;  %v679_v0 = vand.u32 2147483647, %v654_v28 }
 0x38c   :  { %2632 = vpow2.f32 %v2250_v33  ;;  %v629_v53 = vor.u32 1.1754944e-38, %v628_v46  ;;  %vm627_vm6 = vcmp.eq.f32.partialorder %v626_v50, 8.507059e+37 }
 0x38d   :  { %2634 = vpow2.f32 %v2249_v39  ;;  %v682_v3 = vor.u32 1.1754944e-38, %v681_v62  ;;  %vm680_vm10 = vcmp.eq.f32.partialorder %v679_v0, 8.507059e+37 }
 0x390   :  { %v2629_v29 = vpop.eup %2628 }
 0x391   :  { %v618_v34 = vmul.f32 %v2629_v29, %v615_v23  ;;  %v2631_v37 = vpop.eup %2630  ;;  %vm623_vm3 = vweird.f32 %v2629_v29 }
 0x392   :  { %v2633_v42 = vpop.eup %2632  ;;  %v671_v11 = vmul.f32 %v2631_v37, %v654_v28  ;;  %vm624_vm5 = vmor %vm622_vm4, %vm623_vm3  ;;  %vm676_vm7 = vweird.f32 %v2631_v37 }
 0x393   :  { %v619_v36 = vsub.f32 1.0, %v618_v34  ;;  %v653_v26 = vadd.f32 1.0, %v2633_v42  ;;  %v2635_v51 = vpop.eup %2634  ;;  %vm677_vm9 = vmor %vm675_vm8, %vm676_vm7 }
 0x394   :  { %v672_v47 = vsub.f32 1.0, %v671_v11  ;;  %v616_v55 = vadd.f32 1.0, %v2635_v51 }
 0x395   :  { %v620_v40 = vmul.f32 %v2629_v29, %v619_v36  ;;  %2636 = vrcp.f32 %v653_v26  ;;  %v666_v16 = vand.u32 2147483648, %v653_v26  ;;  %vm660_vm12 = vweird.f32 %v653_v26 }
 0x396   :  { %v673_v54 = vmul.f32 %v2631_v37, %v672_v47  ;;  %2638 = vrcp.f32 %v616_v55  ;;  %v664_v20 = vand.u32 2147483647, %v653_v26  ;;  %v643_v34 = vand.u32 2147483648, %v616_v55 }
 0x397   :  { %v621_v45 = vadd.f32 %v2629_v29, %v620_v40  ;;  %v667_v23 = vor.u32 1.1754944e-38, %v666_v16  ;;  %vm637_vm1 = vweird.f32 %v616_v55  ;;  %v641_v36 = vand.u32 2147483647, %v616_v55 }
 0x398   :  { %v674_v60 = vadd.f32 %v2631_v37, %v673_v54  ;;  %vm665_vm14 = vcmp.eq.f32.partialorder %v664_v20, 8.507059e+37  ;;  %v644_v39 = vor.u32 1.1754944e-38, %v643_v34 }
 0x399   :  { %v625_v52 = vsel %vm624_vm5, %v2629_v29, %v621_v45  ;;  %vm642_vm4 = vcmp.eq.f32.partialorder %v641_v36, 8.507059e+37 }
 0x39a   :  { %v3136_v58 = vsel %vm627_vm6, %v629_v53, %v625_v52  ;;  %v678_v1 = vsel %vm677_vm9, %v2631_v37, %v674_v60 }
 0x39b   :  { %v2637_v61 = vpop.eup %2636  ;;  %v3140_v4 = vsel %vm680_vm10, %v682_v3, %v678_v1 }
 0x39c   :  { %v656_v2 = vmul.f32 %v2637_v61, %v653_v26  ;;  %v2639_v7 = vpop.eup %2638  ;;  %vm661_vm11 = vweird.f32 %v2637_v61  ;;  %v689_v26 = vmul.f32 %v3136_v58, %v3093_v44  ;;  %v712_v52 = vmul.f32 %v3140_v4, %v3108_v30 }
 0x39d   :  { %v633_v10 = vmul.f32 %v2639_v7, %v616_v55  ;;  %vm662_vm13 = vmor %vm660_vm12, %vm661_vm11  ;;  %vm638_vm15 = vweird.f32 %v2639_v7 }
 0x39e   :  { %v657_v9 = vsub.f32 1.0, %v656_v2  ;;  %vm639_vm3 = vmor %vm637_vm1, %vm638_vm15 }
 0x39f   :  { %v634_v14 = vsub.f32 1.0, %v633_v10 }
 0x3a0   :  { %v658_v13 = vmul.f32 %v2637_v61, %v657_v9 }
 0x3a1   :  { %v635_v43 = vmul.f32 %v2639_v7, %v634_v14 }
 0x3a2   :  { %v659_v15 = vadd.f32 %v2637_v61, %v658_v13 }
 0x3a3   :  { %v636_v29 = vadd.f32 %v2639_v7, %v635_v43 }
 0x3a4   :  { %v663_v22 = vsel %vm662_vm13, %v2637_v61, %v659_v15 }
 0x3a5   :  { %v668_v28 = vsel %vm665_vm14, %v667_v23, %v663_v22  ;;  %v640_v37 = vsel %vm639_vm3, %v2639_v7, %v636_v29 }
 0x3a6   :  { %v645_v42 = vsel %vm642_vm4, %v644_v39, %v640_v37  ;;  %v711_v45 = vmul.f32 %v668_v28, %v3104_v19 }
 0x3a7   :  { %v690_v19 = vmul.f32 %v645_v42, %v3098_v63 }
 0x3d8   :  { %v694_v56 = vpop.permute.xlu2 %693 }
 0x3d9   :  { %v699_v59 = vmul.f32 %v694_v56, %v3136_v58 }
 0x3db   :  { %703 = vrot.lane.b32.xlu0 %v699_v59, %s2841_s0 }
 0x3e1   :  { %v718_v6 = vpop.permute.xlu2 %717 }
 0x3e2   :  { %v722_v49 = vmul.f32 %v718_v6, %v3140_v4 }
 0x3e4   :  { %727 = vrot.lane.b32.xlu0 %v722_v49, %s2841_s0 }
 0x3f1   :  { %v716_v27 = vpop.permute.xlu1 %715 }
 0x3f2   :  { %v721_v33 = vmul.f32 %v716_v27, %v668_v28 }
 0x3f4   :  { %725 = vrot.lane.b32.xlu2 %v721_v33, %s2841_s0  ;;  %v2442_v33 = vunpack.c.l.bf16 %v3074_v31 }
 0x3f8   :  { %v696_v40 = vpop.permute.xlu0 %695 }
 0x3f9   :  { %v700_v11 = vmul.f32 %v696_v40, %v645_v42 }
 0x3fb   :  { %705 = vrot.lane.b32.xlu1 %v700_v11, %s2841_s0 }
 0x44d   :  { %v704_v46 = vpop.permute.xlu0 %703 }
 0x44e   :  { %v726_v47 = vpop.permute.xlu2 %725  ;;  %v3149_v50 = vadd.f32 %v704_v46, %v689_v26 }
 0x44f   :  { %v3151_v51 = vadd.f32 %v726_v47, %v711_v45 }
 0x450   :  { %2640 = vtanh.f32 %v3149_v50 }
 0x451   :  { %2642 = vtanh.f32 %v3151_v51 }
 0x456   :  { %v2641_v53 = vpop.eup %2640  ;;  %v728_v54 = vpop.permute.xlu0 %727 }
 0x457   :  { %v2643_v55 = vpop.eup %2642  ;;  %v3157_v56 = vadd.f32 %v728_v54, %v712_v52  ;;  %737 = vrot.lane.b32.xlu1 %v2641_v53, %s2841_s0 }
 0x458   :  { %749 = vrot.lane.b32.xlu0 %v2643_v55, %s2841_s0 }
 0x459   :  { %2644 = vtanh.f32 %v3157_v56 }
 0x45f   :  { %v2645_v44 = vpop.eup %2644 }
 0x460   :  { %751 = vrot.lane.b32.xlu1 %v2645_v44, %s2841_s0 }
 0x46d   :  { %v706_v59 = vpop.permute.xlu1 %705 }
 0x46e   :  { %v3164_v60 = vadd.f32 %v706_v59, %v690_v19 }
 0x470   :  { %2646 = vtanh.f32 %v3164_v60 }
 0x476   :  { %v2647_v30 = vpop.eup %2646 }
 0x477   :  { %739 = vrot.lane.b32.xlu2 %v2647_v30, %s2841_s0 }
 0x4c9   :  { %v738_v61 = vpop.permute.xlu1 %737 }
 0x4ca   :  { %v750_v62 = vpop.permute.xlu0 %749  ;;  %v743_v1 = vmul.f32 %v738_v61, %v3136_v58 }
 0x4cb   :  { %v755_v6 = vmul.f32 %v750_v62, %v668_v28 }
 0x4d1   :  { %v740_v0 = vpop.permute.xlu2 %739 }
 0x4d2   :  { %v752_v2 = vpop.permute.xlu1 %751  ;;  %v744_v3 = vmul.f32 %v740_v0, %v645_v42  ;;  %v2443_v42 = vunpack.c.h.bf16 %v3074_v31 }
 0x4d3   :  { %v756_v7 = vmul.f32 %v752_v2, %v3140_v4  ;;  %v160_v4 = vpop.f32.mrf.mxu0 }
 0x4d4   :  { %v2512_v49 = vpack.i.bf16 %v744_v3, %v743_v1  ;;  %v161_v23 = vadd.f32 %v160_v4, %v3044_v48 }
 0x4d5   :  { %v2517_v63 = vpack.i.bf16 %v756_v7, %v755_v6 }
 0x4d6   :  { %2513 = vrot.lane.b32.xlu2 %v2512_v49, %s2842_s2 }
 0x4d7   :  { %2518 = vrot.lane.b32.xlu0 %v2517_v63, %s2843_s24 }
 0x4db   :  { %v162_v22 = vpop.f32.mrf.mxu0 }
 0x4dc   :  { %v163_v27 = vadd.f32 %v162_v22, %v3044_v48 }
 0x4de   :  { %v2353_v28 = vpack.c.bf16 %v163_v27, %v161_v23 }
 0x4e0   :  { %v2438_v29 = vunpack.c.l.bf16 %v2353_v28  ;;  %v2439_v40 = vunpack.c.h.bf16 %v2353_v28 }
 0x530   :  { %v2514_v9 = vpop.permute.xlu2 %2513 }
 0x531   :  { %v2516_v13 = vunpack.i.h.bf16 %v2514_v9  ;;  %v2515_v14 = vunpack.i.l.bf16 %v2514_v9 }
 0x549   :  { %v2519_v10 = vpop.permute.xlu0 %2518 }
 0x54a   :  { %v2521_v15 = vunpack.i.h.bf16 %v2519_v10  ;;  %v2520_v16 = vunpack.i.l.bf16 %v2519_v10 }
 0x54c   :  { %v773_v20 = vsel %vm116_vm0, %v2515_v14, %v2520_v16  ;;  %v774_v58 = vsel %vm116_vm0, %v2516_v13, %v2521_v15 }
 0x54d   :  { %v775_v43 = vpack.c.bf16 %v774_v58, %v773_v20 }
 0x54f   :  { %2252 = vmatmul.msk.bf16.vlgmr.msra.gmra.mxu2 %vm352_vm2, %v775_v43  ;;  %2253 = vmatmul.msk.bf16.vlgmr.msra.gmra.mxu3 %vm352_vm2, %v775_v43 }
 0x550   :  { %1207 = vmatpush.bf16.msra.mxu2 %v2907_v8  ;;  %1221 = vmatpush.bf16.msra.mxu3 %v2986_v32 }
 0x554   :  { %1208 = vmatpush.bf16.msra.mxu2 %v2928_v17  ;;  %1222 = vmatpush.bf16.msra.mxu3 %v2997_v35 }
 0x558   :  { %1209 = vmatpush.bf16.msra.mxu2 %v2940_v21  ;;  %1223 = vmatpush.bf16.msra.mxu3 %v3006_v38 }
 0x55c   :  { %1210 = vmatpush.bf16.msra.mxu2 %v2951_v24  ;;  %1224 = vmatpush.bf16.msra.mxu3 %v3015_v41 }
 0x5d2   :  { %v788_v34 = vpop.f32.mrf.mxu2  ;;  %v802_v36 = vpop.f32.mrf.mxu3 }
 0x5d3   :  { %v812_v37 = vadd.f32 %v2438_v29, %v788_v34  ;;  %v819_v39 = vadd.f32 %v2442_v33, %v802_v36 }
 0x5d5   :  { %2648 = vtanh.f32 %v812_v37  ;;  %v2254_v19 = vmul.f32 -1.442695, %v812_v37  ;;  %v2256_v59 = vmul.f32 -1.442695, %v819_v39 }
 0x5d6   :  { %2650 = vtanh.f32 %v819_v39 }
 0x5da   :  { %v790_v11 = vpop.f32.mrf.mxu2  ;;  %v804_v26 = vpop.f32.mrf.mxu3 }
 0x5db   :  { %v2649_v45 = vpop.eup %2648  ;;  %v813_v46 = vadd.f32 %v2439_v40, %v790_v11  ;;  %v820_v47 = vadd.f32 %v2443_v42, %v804_v26 }
 0x5dc   :  { %v2651_v52 = vpop.eup %2650  ;;  %905 = vrot.lane.b32.xlu1 %v2649_v45, %s2841_s0 }
 0x5dd   :  { %2652 = vtanh.f32 %v813_v46  ;;  %927 = vrot.lane.b32.xlu0 %v2651_v52, %s2841_s0  ;;  %v2255_v55 = vmul.f32 -1.442695, %v813_v46  ;;  %v2257_v61 = vmul.f32 -1.442695, %v820_v47 }
 0x5de   :  { %2654 = vtanh.f32 %v820_v47 }
 0x5df   :  { %2656 = vpow2.f32 %v2255_v55 }
 0x5e3   :  { %v2653_v53 = vpop.eup %2652 }
 0x5e4   :  { %v2655_v54 = vpop.eup %2654  ;;  %907 = vrot.lane.b32.xlu2 %v2653_v53, %s2841_s0 }
 0x5e5   :  { %929 = vrot.lane.b32.xlu1 %v2655_v54, %s2841_s0  ;;  %v2657_v31 = vpop.eup %2656 }
 0x5e6   :  { %v828_v44 = vadd.f32 1.0, %v2657_v31 }
 0x5e8   :  { %2658 = vrcp.f32 %v828_v44  ;;  %v855_v13 = vand.u32 2147483648, %v828_v44  ;;  %vm849_vm6 = vweird.f32 %v828_v44  ;;  %v853_v15 = vand.u32 2147483647, %v828_v44 }
 0x5e9   :  { %2660 = vpow2.f32 %v2254_v19 }
 0x5ea   :  { %2662 = vpow2.f32 %v2256_v59  ;;  %v856_v58 = vor.u32 1.1754944e-38, %v855_v13  ;;  %vm854_vm8 = vcmp.eq.f32.partialorder %v853_v15, 8.507059e+37 }
 0x5eb   :  { %2664 = vpow2.f32 %v2257_v61 }
 0x5ee   :  { %v2659_v30 = vpop.eup %2658 }
 0x5ef   :  { %v2661_v62 = vpop.eup %2660  ;;  %v845_v0 = vmul.f32 %v2659_v30, %v828_v44  ;;  %vm850_vm5 = vweird.f32 %v2659_v30 }
 0x5f0   :  { %v2663_v1 = vpop.eup %2662  ;;  %v827_v2 = vadd.f32 1.0, %v2661_v62  ;;  %vm851_vm7 = vmor %vm849_vm6, %vm850_vm5 }
 0x5f1   :  { %v865_v3 = vadd.f32 1.0, %v2663_v1  ;;  %v846_v6 = vsub.f32 1.0, %v845_v0  ;;  %v2665_v49 = vpop.eup %2664 }
 0x5f2   :  { %2666 = vrcp.f32 %v827_v2  ;;  %v866_v63 = vadd.f32 1.0, %v2665_v49  ;;  %v840_v40 = vand.u32 2147483648, %v827_v2  ;;  %vm834_vm11 = vweird.f32 %v827_v2 }
 0x5f3   :  { %2668 = vrcp.f32 %v865_v3  ;;  %v847_v7 = vmul.f32 %v2659_v30, %v846_v6  ;;  %v878_v11 = vand.u32 2147483648, %v865_v3  ;;  %v838_v26 = vand.u32 2147483647, %v827_v2 }
 0x5f4   :  { %2670 = vrcp.f32 %v866_v63  ;;  %vm872_vm12 = vweird.f32 %v865_v3  ;;  %v876_v45 = vand.u32 2147483647, %v865_v3  ;;  %v841_v52 = vor.u32 1.1754944e-38, %v840_v40 }
 0x5f5   :  { %v848_v9 = vadd.f32 %v2659_v30, %v847_v7  ;;  %v879_v54 = vor.u32 1.1754944e-38, %v878_v11  ;;  %vm839_vm15 = vcmp.eq.f32.partialorder %v838_v26, 8.507059e+37  ;;  %v893_v62 = vand.u32 2147483648, %v866_v63 }
 0x5f6   :  { %vm877_vm1 = vcmp.eq.f32.partialorder %v876_v45, 8.507059e+37  ;;  %vm887_vm4 = vweird.f32 %v866_v63  ;;  %v891_v0 = vand.u32 2147483647, %v866_v63 }
 0x5f7   :  { %v852_v16 = vsel %vm851_vm7, %v2659_v30, %v848_v9 }
 0x5f8   :  { %v2667_v10 = vpop.eup %2666  ;;  %v3192_v22 = vsel %vm854_vm8, %v856_v58, %v852_v16  ;;  %vm892_vm6 = vcmp.eq.f32.partialorder %v891_v0, 8.507059e+37 }
 0x5f9   :  { %v2669_v14 = vpop.eup %2668  ;;  %v830_v20 = vmul.f32 %v2667_v10, %v827_v2  ;;  %vm835_vm9 = vweird.f32 %v2667_v10  ;;  %v894_v2 = vor.u32 1.1754944e-38, %v893_v62  ;;  %v902_v13 = vmul.f32 %v3192_v22, %v3164_v60 }
 0x5fa   :  { %v868_v43 = vmul.f32 %v2669_v14, %v865_v3  ;;  %v2671_v29 = vpop.eup %2670  ;;  %vm873_vm10 = vweird.f32 %v2669_v14  ;;  %vm836_vm13 = vmor %vm834_vm11, %vm835_vm9 }
 0x5fb   :  { %v831_v27 = vsub.f32 1.0, %v830_v20  ;;  %v883_v36 = vmul.f32 %v2671_v29, %v866_v63  ;;  %vm874_vm14 = vmor %vm872_vm12, %vm873_vm10  ;;  %vm888_vm3 = vweird.f32 %v2671_v29 }
 0x5fc   :  { %v869_v28 = vsub.f32 1.0, %v868_v43  ;;  %vm889_vm5 = vmor %vm887_vm4, %vm888_vm3 }
 0x5fd   :  { %v832_v33 = vmul.f32 %v2667_v10, %v831_v27  ;;  %v884_v42 = vsub.f32 1.0, %v883_v36 }
 0x5fe   :  { %v870_v34 = vmul.f32 %v2669_v14, %v869_v28 }
 0x5ff   :  { %v833_v37 = vadd.f32 %v2667_v10, %v832_v33  ;;  %v885_v53 = vmul.f32 %v2671_v29, %v884_v42 }
 0x600   :  { %v871_v39 = vadd.f32 %v2669_v14, %v870_v34 }
 0x601   :  { %v837_v46 = vsel %vm836_vm13, %v2667_v10, %v833_v37  ;;  %v886_v61 = vadd.f32 %v2671_v29, %v885_v53 }
 0x602   :  { %v875_v47 = vsel %vm874_vm14, %v2669_v14, %v871_v39  ;;  %v842_v31 = vsel %vm839_vm15, %v841_v52, %v837_v46 }
 0x603   :  { %v880_v19 = vsel %vm877_vm1, %v879_v54, %v875_v47  ;;  %v890_v1 = vsel %vm889_vm5, %v2671_v29, %v886_v61  ;;  %v901_v49 = vmul.f32 %v842_v31, %v3149_v50 }
 0x604   :  { %v895_v3 = vsel %vm892_vm6, %v894_v2, %v890_v1 }
 0x605   :  { %v924_v63 = vmul.f32 %v895_v3, %v3157_v56  ;;  %v923_v56 = vmul.f32 %v880_v19, %v3151_v51 }
 0x63e   :  { %v908_v4 = vpop.permute.xlu2 %907 }
 0x63f   :  { %v912_v23 = vmul.f32 %v908_v4, %v3192_v22 }
 0x641   :  { %917 = vrot.lane.b32.xlu0 %v912_v23, %s2841_s0 }
 0x64e   :  { %v906_v55 = vpop.permute.xlu1 %905 }
 0x64f   :  { %v928_v44 = vpop.permute.xlu0 %927  ;;  %v911_v59 = vmul.f32 %v906_v55, %v842_v31 }
 0x650   :  { %v933_v30 = vmul.f32 %v928_v44, %v880_v19 }
 0x651   :  { %915 = vrot.lane.b32.xlu2 %v911_v59, %s2841_s0 }
 0x652   :  { %937 = vrot.lane.b32.xlu1 %v933_v30, %s2841_s0  ;;  %v2450_v30 = vunpack.c.l.bf16 %v3070_v25 }
 0x657   :  { %v930_v6 = vpop.permute.xlu1 %929 }
 0x658   :  { %v934_v7 = vmul.f32 %v930_v6, %v895_v3 }
 0x65a   :  { %939 = vrot.lane.b32.xlu2 %v934_v7, %s2841_s0 }
 0x6ab   :  { %v916_v9 = vpop.permute.xlu2 %915 }
 0x6ac   :  { %v3200_v10 = vadd.f32 %v916_v9, %v901_v49 }
 0x6ae   :  { %2672 = vtanh.f32 %v3200_v10 }
 0x6b3   :  { %v918_v14 = vpop.permute.xlu0 %917 }
 0x6b4   :  { %v2673_v15 = vpop.eup %2672  ;;  %v940_v16 = vpop.permute.xlu2 %939  ;;  %v3206_v20 = vadd.f32 %v918_v14, %v902_v13 }
 0x6b5   :  { %v3208_v58 = vadd.f32 %v940_v16, %v924_v63  ;;  %949 = vrot.lane.b32.xlu0 %v2673_v15, %s2841_s0 }
 0x6b6   :  { %2674 = vtanh.f32 %v3206_v20 }
 0x6b7   :  { %2676 = vtanh.f32 %v3208_v58 }
 0x6bc   :  { %v2675_v50 = vpop.eup %2674 }
 0x6bd   :  { %v2677_v43 = vpop.eup %2676  ;;  %951 = vrot.lane.b32.xlu1 %v2675_v50, %s2841_s0 }
 0x6be   :  { %963 = vrot.lane.b32.xlu0 %v2677_v43, %s2841_s0 }
 0x6c4   :  { %v938_v60 = vpop.permute.xlu1 %937 }
 0x6c5   :  { %v3216_v4 = vadd.f32 %v938_v60, %v923_v56 }
 0x6c7   :  { %2678 = vtanh.f32 %v3216_v4 }
 0x6cd   :  { %v2679_v23 = vpop.eup %2678 }
 0x6ce   :  { %961 = vrot.lane.b32.xlu2 %v2679_v23, %s2841_s0 }
 0x727   :  { %v950_v27 = vpop.permute.xlu0 %949 }
 0x728   :  { %v962_v28 = vpop.permute.xlu2 %961  ;;  %v955_v33 = vmul.f32 %v950_v27, %v842_v31 }
 0x729   :  { %v967_v37 = vmul.f32 %v962_v28, %v880_v19 }
 0x72f   :  { %v952_v29 = vpop.permute.xlu1 %951 }
 0x730   :  { %v964_v34 = vpop.permute.xlu0 %963  ;;  %v956_v36 = vmul.f32 %v952_v29, %v3192_v22  ;;  %v165_v22 = vpop.f32.mrf.mxu0 }
 0x731   :  { %v968_v39 = vmul.f32 %v964_v34, %v895_v3  ;;  %v166_v31 = vadd.f32 %v165_v22, %v3044_v48  ;;  %v2451_v3 = vunpack.c.h.bf16 %v3070_v25 }
 0x732   :  { %v2522_v40 = vpack.i.bf16 %v956_v36, %v955_v33 }
 0x733   :  { %v2527_v42 = vpack.i.bf16 %v968_v39, %v967_v37 }
 0x734   :  { %2523 = vrot.lane.b32.xlu1 %v2522_v40, %s2842_s2 }
 0x735   :  { %2528 = vrot.lane.b32.xlu2 %v2527_v42, %s2843_s24 }
 0x738   :  { %v167_v55 = vpop.f32.mrf.mxu0 }
 0x739   :  { %v168_v44 = vadd.f32 %v167_v55, %v3044_v48 }
 0x73b   :  { %v2358_v19 = vpack.c.bf16 %v168_v44, %v166_v31 }
 0x73d   :  { %v2446_v59 = vunpack.c.l.bf16 %v2358_v19  ;;  %v2447_v2 = vunpack.c.h.bf16 %v2358_v19 }
 0x78f   :  { %v2529_v51 = vpop.permute.xlu2 %2528 }
 0x790   :  { %v2531_v26 = vunpack.i.h.bf16 %v2529_v51  ;;  %v2530_v45 = vunpack.i.l.bf16 %v2529_v51 }
 0x7a6   :  { %v2524_v11 = vpop.permute.xlu1 %2523 }
 0x7a7   :  { %v2526_v46 = vunpack.i.h.bf16 %v2524_v11  ;;  %v2525_v47 = vunpack.i.l.bf16 %v2524_v11 }
 0x7a9   :  { %v986_v52 = vsel %vm116_vm0, %v2526_v46, %v2531_v26  ;;  %v985_v53 = vsel %vm116_vm0, %v2525_v47, %v2530_v45 }
 0x7aa   :  { %v987_v54 = vpack.c.bf16 %v986_v52, %v985_v53 }
 0x7ac   :  { %2258 = vmatmul.msk.bf16.vlgmr.msrb.gmra.mxu2 %vm352_vm2, %v987_v54  ;;  %2259 = vmatmul.msk.bf16.vlgmr.msrb.gmra.mxu3 %vm352_vm2, %v987_v54 }
 0x7ad   :  { %1419 = vmatpush.bf16.msrb.mxu2 %v2907_v8  ;;  %1433 = vmatpush.bf16.msrb.mxu3 %v2986_v32 }
 0x7b1   :  { %1420 = vmatpush.bf16.msrb.mxu2 %v2928_v17  ;;  %1434 = vmatpush.bf16.msrb.mxu3 %v2997_v35 }
 0x7b5   :  { %1421 = vmatpush.bf16.msrb.mxu2 %v2940_v21  ;;  %1435 = vmatpush.bf16.msrb.mxu3 %v3006_v38 }
 0x7b9   :  { %1422 = vmatpush.bf16.msrb.mxu2 %v2951_v24  ;;  %1436 = vmatpush.bf16.msrb.mxu3 %v3015_v41 }
 0x82f   :  { %v1000_v61 = vpop.f32.mrf.mxu2  ;;  %v1014_v62 = vpop.f32.mrf.mxu3 }
 0x830   :  { %v1024_v0 = vadd.f32 %v2446_v59, %v1000_v61  ;;  %v1031_v1 = vadd.f32 %v2450_v30, %v1014_v62 }
 0x832   :  { %2680 = vtanh.f32 %v1024_v0  ;;  %v2262_v16 = vmul.f32 -1.442695, %v1031_v1  ;;  %v2260_v56 = vmul.f32 -1.442695, %v1024_v0 }
 0x833   :  { %2682 = vtanh.f32 %v1031_v1 }
 0x837   :  { %v1002_v6 = vpop.f32.mrf.mxu2  ;;  %v1016_v7 = vpop.f32.mrf.mxu3 }
 0x838   :  { %v2681_v49 = vpop.eup %2680  ;;  %v1025_v9 = vadd.f32 %v2447_v2, %v1002_v6  ;;  %v1032_v13 = vadd.f32 %v2451_v3, %v1016_v7 }
 0x839   :  { %v2683_v63 = vpop.eup %2682  ;;  %1117 = vrot.lane.b32.xlu0 %v2681_v49, %s2841_s0 }
 0x83a   :  { %2684 = vtanh.f32 %v1025_v9  ;;  %1139 = vrot.lane.b32.xlu2 %v2683_v63, %s2841_s0  ;;  %v2261_v27 = vmul.f32 -1.442695, %v1025_v9  ;;  %v2263_v28 = vmul.f32 -1.442695, %v1032_v13 }
 0x83b   :  { %2686 = vtanh.f32 %v1032_v13 }
 0x83c   :  { %2688 = vpow2.f32 %v2262_v16 }
 0x840   :  { %v2685_v14 = vpop.eup %2684 }
 0x841   :  { %v2687_v15 = vpop.eup %2686  ;;  %1119 = vrot.lane.b32.xlu1 %v2685_v14, %s2841_s0 }
 0x842   :  { %1141 = vrot.lane.b32.xlu0 %v2687_v15, %s2841_s0  ;;  %v2689_v25 = vpop.eup %2688 }
 0x843   :  { %v1077_v50 = vadd.f32 1.0, %v2689_v25 }
 0x845   :  { %2690 = vrcp.f32 %v1077_v50  ;;  %v1090_v37 = vand.u32 2147483648, %v1077_v50  ;;  %vm1084_vm8 = vweird.f32 %v1077_v50  ;;  %v1088_v39 = vand.u32 2147483647, %v1077_v50 }
 0x846   :  { %2692 = vpow2.f32 %v2260_v56 }
 0x847   :  { %2694 = vpow2.f32 %v2261_v27  ;;  %v1091_v11 = vor.u32 1.1754944e-38, %v1090_v37  ;;  %vm1089_vm10 = vcmp.eq.f32.partialorder %v1088_v39, 8.507059e+37 }
 0x848   :  { %2696 = vpow2.f32 %v2263_v28 }
 0x84b   :  { %v2691_v43 = vpop.eup %2690 }
 0x84c   :  { %v1080_v60 = vmul.f32 %v2691_v43, %v1077_v50  ;;  %v2693_v29 = vpop.eup %2692  ;;  %vm1085_vm7 = vweird.f32 %v2691_v43 }
 0x84d   :  { %v1039_v34 = vadd.f32 1.0, %v2693_v29  ;;  %v2695_v40 = vpop.eup %2694  ;;  %vm1086_vm9 = vmor %vm1084_vm8, %vm1085_vm7 }
 0x84e   :  { %v1081_v23 = vsub.f32 1.0, %v1080_v60  ;;  %v2697_v42 = vpop.eup %2696  ;;  %v1040_v26 = vadd.f32 1.0, %v2695_v40 }
 0x84f   :  { %2698 = vrcp.f32 %v1039_v34  ;;  %v1078_v45 = vadd.f32 1.0, %v2697_v42  ;;  %v1052_v62 = vand.u32 2147483648, %v1039_v34  ;;  %vm1046_vm12 = vweird.f32 %v1039_v34 }
 0x850   :  { %v1082_v33 = vmul.f32 %v2691_v43, %v1081_v23  ;;  %2700 = vrcp.f32 %v1040_v26  ;;  %v1050_v1 = vand.u32 2147483647, %v1039_v34  ;;  %v1067_v15 = vand.u32 2147483648, %v1040_v26 }
 0x851   :  { %2702 = vrcp.f32 %v1078_v45  ;;  %v1053_v6 = vor.u32 1.1754944e-38, %v1052_v62  ;;  %v1105_v16 = vand.u32 2147483648, %v1078_v45  ;;  %vm1061_vm3 = vweird.f32 %v1040_v26 }
 0x852   :  { %v1083_v36 = vadd.f32 %v2691_v43, %v1082_v33  ;;  %vm1051_vm14 = vcmp.eq.f32.partialorder %v1050_v1, 8.507059e+37  ;;  %v1065_v25 = vand.u32 2147483647, %v1040_v26  ;;  %vm1099_vm4 = vweird.f32 %v1078_v45 }
 0x853   :  { %v1103_v50 = vand.u32 2147483647, %v1078_v45  ;;  %v1068_v60 = vor.u32 1.1754944e-38, %v1067_v15  ;;  %v1106_v23 = vor.u32 1.1754944e-38, %v1105_v16 }
 0x854   :  { %v1087_v51 = vsel %vm1086_vm9, %v2691_v43, %v1083_v36  ;;  %vm1066_vm7 = vcmp.eq.f32.partialorder %v1065_v25, 8.507059e+37 }
 0x855   :  { %v3243_v47 = vsel %vm1089_vm10, %v1091_v11, %v1087_v51  ;;  %v2699_v52 = vpop.eup %2698  ;;  %vm1104_vm8 = vcmp.eq.f32.partialorder %v1103_v50, 8.507059e+37 }
 0x856   :  { %v1042_v54 = vmul.f32 %v2699_v52, %v1039_v34  ;;  %v2701_v55 = vpop.eup %2700  ;;  %vm1047_vm11 = vweird.f32 %v2699_v52  ;;  %v1135_v37 = vmul.f32 %v3243_v47, %v3216_v4 }
 0x857   :  { %v2703_v31 = vpop.eup %2702  ;;  %v1057_v19 = vmul.f32 %v2701_v55, %v1040_v26  ;;  %vm1048_vm13 = vmor %vm1046_vm12, %vm1047_vm11  ;;  %vm1062_vm15 = vweird.f32 %v2701_v55 }
 0x858   :  { %v1043_v22 = vsub.f32 1.0, %v1042_v54  ;;  %v1095_v59 = vmul.f32 %v2703_v31, %v1078_v45  ;;  %vm1100_vm1 = vweird.f32 %v2703_v31  ;;  %vm1063_vm5 = vmor %vm1061_vm3, %vm1062_vm15 }
 0x859   :  { %v1058_v61 = vsub.f32 1.0, %v1057_v19  ;;  %vm1101_vm6 = vmor %vm1099_vm4, %vm1100_vm1 }
 0x85a   :  { %v1044_v44 = vmul.f32 %v2699_v52, %v1043_v22  ;;  %v1096_v0 = vsub.f32 1.0, %v1095_v59 }
 0x85b   :  { %v1059_v3 = vmul.f32 %v2701_v55, %v1058_v61 }
 0x85c   :  { %v1045_v30 = vadd.f32 %v2699_v52, %v1044_v44  ;;  %v1097_v7 = vmul.f32 %v2703_v31, %v1096_v0 }
 0x85d   :  { %v1060_v63 = vadd.f32 %v2701_v55, %v1059_v3 }
 0x85e   :  { %v1049_v2 = vsel %vm1048_vm13, %v2699_v52, %v1045_v30  ;;  %v1098_v14 = vadd.f32 %v2703_v31, %v1097_v7 }
 0x85f   :  { %v1054_v9 = vsel %vm1051_vm14, %v1053_v6, %v1049_v2  ;;  %v1064_v43 = vsel %vm1063_vm5, %v2701_v55, %v1060_v63 }
 0x860   :  { %v1102_v56 = vsel %vm1101_vm6, %v2703_v31, %v1098_v14  ;;  %v1069_v28 = vsel %vm1066_vm7, %v1068_v60, %v1064_v43  ;;  %v1113_v4 = vmul.f32 %v1054_v9, %v3200_v10  ;;  %v2458_v43 = vunpack.c.l.bf16 %v3066_v18 }
 0x861   :  { %v1107_v29 = vsel %vm1104_vm8, %v1106_v23, %v1102_v56  ;;  %v1114_v42 = vmul.f32 %v1069_v28, %v3206_v20 }
 0x862   :  { %v1136_v20 = vmul.f32 %v1107_v29, %v3208_v58 }
 0x894   :  { %v1140_v46 = vpop.permute.xlu2 %1139 }
 0x895   :  { %v1145_v53 = vmul.f32 %v1140_v46, %v3243_v47 }
 0x897   :  { %1149 = vrot.lane.b32.xlu0 %v1145_v53, %s2841_s0 }
 0x8ab   :  { %v1118_v49 = vpop.permute.xlu0 %1117 }
 0x8ac   :  { %v1123_v13 = vmul.f32 %v1118_v49, %v1054_v9 }
 0x8ae   :  { %1127 = vrot.lane.b32.xlu1 %v1123_v13, %s2841_s0 }
 0x8b3   :  { %v1120_v27 = vpop.permute.xlu1 %1119 }
 0x8b4   :  { %v1142_v33 = vpop.permute.xlu0 %1141  ;;  %v1124_v34 = vmul.f32 %v1120_v27, %v1069_v28 }
 0x8b5   :  { %v1146_v36 = vmul.f32 %v1142_v33, %v1107_v29 }
 0x8b6   :  { %1129 = vrot.lane.b32.xlu2 %v1124_v34, %s2841_s0 }
 0x8b7   :  { %1151 = vrot.lane.b32.xlu1 %v1146_v36, %s2841_s0 }
 0x909   :  { %v1150_v39 = vpop.permute.xlu0 %1149 }
 0x90a   :  { %v3252_v40 = vadd.f32 %v1150_v39, %v1135_v37 }
 0x90c   :  { %2704 = vtanh.f32 %v3252_v40 }
 0x910   :  { %v1130_v51 = vpop.permute.xlu2 %1129 }
 0x911   :  { %v3256_v11 = vadd.f32 %v1130_v51, %v1114_v42 }
 0x912   :  { %v2705_v26 = vpop.eup %2704 }
 0x913   :  { %2706 = vtanh.f32 %v3256_v11  ;;  %1173 = vrot.lane.b32.xlu1 %v2705_v26, %s2841_s0 }
 0x919   :  { %v2707_v45 = vpop.eup %2706 }
 0x91a   :  { %1163 = vrot.lane.b32.xlu0 %v2707_v45, %s2841_s0 }
 0x920   :  { %v1128_v46 = vpop.permute.xlu1 %1127 }
 0x921   :  { %v3262_v52 = vadd.f32 %v1128_v46, %v1113_v4 }
 0x923   :  { %2708 = vtanh.f32 %v3262_v52 }
 0x929   :  { %v2709_v53 = vpop.eup %2708  ;;  %v1152_v54 = vpop.permute.xlu1 %1151 }
 0x92a   :  { %v3266_v22 = vadd.f32 %v1152_v54, %v1136_v20  ;;  %1161 = vrot.lane.b32.xlu2 %v2709_v53, %s2841_s0 }
 0x92c   :  { %2710 = vtanh.f32 %v3266_v22 }
 0x932   :  { %v2711_v55 = vpop.eup %2710 }
 0x933   :  { %1175 = vrot.lane.b32.xlu2 %v2711_v55, %s2841_s0 }
 0x984   :  { %v1162_v31 = vpop.permute.xlu2 %1161 }
 0x985   :  { %v1174_v10 = vpop.permute.xlu1 %1173  ;;  %v1167_v19 = vmul.f32 %v1162_v31, %v1054_v9 }
 0x986   :  { %v1179_v61 = vmul.f32 %v1174_v10, %v3243_v47  ;;  %v170_v47 = vpop.f32.mrf.mxu0 }
 0x987   :  { %v171_v15 = vadd.f32 %v170_v47, %v3044_v48 }
 0x98c   :  { %v1164_v44 = vpop.permute.xlu0 %1163 }
 0x98d   :  { %v1176_v59 = vpop.permute.xlu2 %1175  ;;  %v1168_v30 = vmul.f32 %v1164_v44, %v1069_v28 }
 0x98e   :  { %v1180_v58 = vmul.f32 %v1176_v59, %v1107_v29  ;;  %v172_v14 = vpop.f32.mrf.mxu0  ;;  %v2459_v29 = vunpack.c.h.bf16 %v3066_v18 }
 0x98f   :  { %v2532_v62 = vpack.i.bf16 %v1168_v30, %v1167_v19  ;;  %v173_v16 = vadd.f32 %v172_v14, %v3044_v48 }
 0x990   :  { %v2537_v0 = vpack.i.bf16 %v1180_v58, %v1179_v61 }
 0x991   :  { %2533 = vrot.lane.b32.xlu0 %v2532_v62, %s2842_s2  ;;  %v2363_v25 = vpack.c.bf16 %v173_v16, %v171_v15 }
 0x992   :  { %2538 = vrot.lane.b32.xlu1 %v2537_v0, %s2843_s24 }
 0x993   :  { %v2454_v50 = vunpack.c.l.bf16 %v2363_v25  ;;  %v2455_v28 = vunpack.c.h.bf16 %v2363_v25 }
 0xa03   :  { %v2534_v1 = vpop.permute.xlu0 %2533 }
 0xa04   :  { %v2539_v2 = vpop.permute.xlu1 %2538  ;;  %v2536_v3 = vunpack.i.h.bf16 %v2534_v1  ;;  %v2535_v6 = vunpack.i.l.bf16 %v2534_v1 }
 0xa05   :  { %v2541_v7 = vunpack.i.h.bf16 %v2539_v2  ;;  %v2540_v49 = vunpack.i.l.bf16 %v2539_v2 }
 0xa07   :  { %v1198_v13 = vsel %vm116_vm0, %v2536_v3, %v2541_v7  ;;  %v1197_v9 = vsel %vm116_vm0, %v2535_v6, %v2540_v49 }
 0xa08   :  { %v1199_v63 = vpack.c.bf16 %v1198_v13, %v1197_v9 }
 0xa0a   :  { %2264 = vmatmul.msk.bf16.vlgmr.msra.gmra.mxu2 %vm352_vm2, %v1199_v63  ;;  %2265 = vmatmul.msk.bf16.vlgmr.msra.gmra.mxu3 %vm352_vm2, %v1199_v63 }
 0xa0b   :  { %1631 = vmatpush.bf16.msra.mxu2 %v2907_v8  ;;  %1645 = vmatpush.bf16.msra.mxu3 %v2986_v32 }
 0xa0f   :  { %1632 = vmatpush.bf16.msra.mxu2 %v2928_v17  ;;  %1646 = vmatpush.bf16.msra.mxu3 %v2997_v35 }
 0xa13   :  { %1633 = vmatpush.bf16.msra.mxu2 %v2940_v21  ;;  %1647 = vmatpush.bf16.msra.mxu3 %v3006_v38 }
 0xa17   :  { %1634 = vmatpush.bf16.msra.mxu2 %v2951_v24  ;;  %1648 = vmatpush.bf16.msra.mxu3 %v3015_v41 }
 0xa8d   :  { %v1212_v56 = vpop.f32.mrf.mxu2  ;;  %v1226_v60 = vpop.f32.mrf.mxu3 }
 0xa8e   :  { %v1236_v23 = vadd.f32 %v2454_v50, %v1212_v56  ;;  %v1243_v27 = vadd.f32 %v2458_v43, %v1226_v60 }
 0xa90   :  { %2712 = vtanh.f32 %v1236_v23  ;;  %v2266_v45 = vmul.f32 -1.442695, %v1236_v23  ;;  %v2268_v55 = vmul.f32 -1.442695, %v1243_v27 }
 0xa91   :  { %2714 = vtanh.f32 %v1243_v27 }
 0xa95   :  { %v1214_v33 = vpop.f32.mrf.mxu2  ;;  %v1228_v34 = vpop.f32.mrf.mxu3 }
 0xa96   :  { %v2713_v36 = vpop.eup %2712  ;;  %v1237_v37 = vadd.f32 %v2455_v28, %v1214_v33  ;;  %v1244_v39 = vadd.f32 %v2459_v29, %v1228_v34 }
 0xa97   :  { %v2715_v42 = vpop.eup %2714  ;;  %1329 = vrot.lane.b32.xlu2 %v2713_v36, %s2841_s0 }
 0xa98   :  { %2716 = vtanh.f32 %v1237_v37  ;;  %1351 = vrot.lane.b32.xlu1 %v2715_v42, %s2841_s0  ;;  %v2269_v18 = vmul.f32 -1.442695, %v1244_v39  ;;  %v2267_v19 = vmul.f32 -1.442695, %v1237_v37 }
 0xa99   :  { %2718 = vtanh.f32 %v1244_v39 }
 0xa9a   :  { %2720 = vpow2.f32 %v2266_v45 }
 0xa9b   :  { %2722 = vpow2.f32 %v2269_v18 }
 0xa9e   :  { %v2717_v51 = vpop.eup %2716 }
 0xa9f   :  { %v2719_v26 = vpop.eup %2718  ;;  %1331 = vrot.lane.b32.xlu0 %v2717_v51, %s2841_s0 }
 0xaa0   :  { %1353 = vrot.lane.b32.xlu2 %v2719_v26, %s2841_s0  ;;  %v2721_v4 = vpop.eup %2720 }
 0xaa1   :  { %v1251_v46 = vadd.f32 1.0, %v2721_v4  ;;  %v2723_v20 = vpop.eup %2722 }
 0xaa2   :  { %v1290_v53 = vadd.f32 1.0, %v2723_v20 }
 0xaa3   :  { %2724 = vrcp.f32 %v1251_v46  ;;  %v1264_v0 = vand.u32 2147483648, %v1251_v46  ;;  %vm1258_vm10 = vweird.f32 %v1251_v46  ;;  %v1262_v2 = vand.u32 2147483647, %v1251_v46 }
 0xaa4   :  { %2726 = vrcp.f32 %v1290_v53  ;;  %v1317_v16 = vand.u32 2147483648, %v1290_v53  ;;  %vm1311_vm14 = vweird.f32 %v1290_v53  ;;  %v1315_v25 = vand.u32 2147483647, %v1290_v53 }
 0xaa5   :  { %2728 = vpow2.f32 %v2268_v55  ;;  %v1265_v7 = vor.u32 1.1754944e-38, %v1264_v0  ;;  %vm1263_vm12 = vcmp.eq.f32.partialorder %v1262_v2, 8.507059e+37 }
 0xaa6   :  { %2730 = vpow2.f32 %v2267_v19  ;;  %v1318_v56 = vor.u32 1.1754944e-38, %v1317_v16  ;;  %vm1316_vm1 = vcmp.eq.f32.partialorder %v1315_v25, 8.507059e+37 }
 0xaa9   :  { %v2725_v54 = vpop.eup %2724 }
 0xaaa   :  { %v1254_v31 = vmul.f32 %v2725_v54, %v1251_v46  ;;  %v2727_v44 = vpop.eup %2726  ;;  %vm1259_vm9 = vweird.f32 %v2725_v54 }
 0xaab   :  { %v2729_v30 = vpop.eup %2728  ;;  %v1307_v61 = vmul.f32 %v2727_v44, %v1290_v53  ;;  %vm1260_vm11 = vmor %vm1258_vm10, %vm1259_vm9  ;;  %vm1312_vm13 = vweird.f32 %v2727_v44 }
 0xaac   :  { %v1255_v10 = vsub.f32 1.0, %v1254_v31  ;;  %v1289_v58 = vadd.f32 1.0, %v2729_v30  ;;  %v2731_v3 = vpop.eup %2730  ;;  %vm1313_vm15 = vmor %vm1311_vm14, %vm1312_vm13 }
 0xaad   :  { %v1308_v1 = vsub.f32 1.0, %v1307_v61  ;;  %v1252_v13 = vadd.f32 1.0, %v2731_v3 }
 0xaae   :  { %v1256_v59 = vmul.f32 %v2725_v54, %v1255_v10  ;;  %2732 = vrcp.f32 %v1289_v58  ;;  %v1302_v39 = vand.u32 2147483648, %v1289_v58  ;;  %vm1296_vm4 = vweird.f32 %v1289_v58 }
 0xaaf   :  { %v1309_v49 = vmul.f32 %v2727_v44, %v1308_v1  ;;  %2734 = vrcp.f32 %v1252_v13  ;;  %v1300_v42 = vand.u32 2147483647, %v1289_v58  ;;  %v1279_v53 = vand.u32 2147483648, %v1252_v13 }
 0xab0   :  { %v1257_v62 = vadd.f32 %v2725_v54, %v1256_v59  ;;  %v1303_v45 = vor.u32 1.1754944e-38, %v1302_v39  ;;  %vm1273_vm8 = vweird.f32 %v1252_v13 }
 0xab1   :  { %v1310_v14 = vadd.f32 %v2727_v44, %v1309_v49  ;;  %vm1301_vm6 = vcmp.eq.f32.partialorder %v1300_v42, 8.507059e+37  ;;  %v1280_v31 = vor.u32 1.1754944e-38, %v1279_v53 }
 0xab2   :  { %v1261_v6 = vsel %vm1260_vm11, %v2725_v54, %v1257_v62  ;;  %v1277_v54 = vand.u32 2147483647, %v1252_v13 }
 0xab3   :  { %v3294_v63 = vsel %vm1263_vm12, %v1265_v7, %v1261_v6  ;;  %v1314_v50 = vsel %vm1313_vm15, %v2727_v44, %v1310_v14 }
 0xab4   :  { %v2733_v15 = vpop.eup %2732  ;;  %v3298_v60 = vsel %vm1316_vm1, %v1318_v56, %v1314_v50  ;;  %vm1278_vm10 = vcmp.eq.f32.partialorder %v1277_v54, 8.507059e+37  ;;  %v1325_v59 = vmul.f32 %v3294_v63, %v3262_v52 }
 0xab5   :  { %v1292_v43 = vmul.f32 %v2733_v15, %v1289_v58  ;;  %v2735_v27 = vpop.eup %2734  ;;  %vm1297_vm3 = vweird.f32 %v2733_v15  ;;  %v1348_v1 = vmul.f32 %v3298_v60, %v3266_v22 }
 0xab6   :  { %v1269_v33 = vmul.f32 %v2735_v27, %v1252_v13  ;;  %vm1298_vm5 = vmor %vm1296_vm4, %vm1297_vm3  ;;  %vm1274_vm7 = vweird.f32 %v2735_v27 }
 0xab7   :  { %v1293_v29 = vsub.f32 1.0, %v1292_v43  ;;  %vm1275_vm9 = vmor %vm1273_vm8, %vm1274_vm7 }
 0xab8   :  { %v1270_v36 = vsub.f32 1.0, %v1269_v33 }
 0xab9   :  { %v1294_v34 = vmul.f32 %v2733_v15, %v1293_v29 }
 0xaba   :  { %v1271_v51 = vmul.f32 %v2735_v27, %v1270_v36 }
 0xabb   :  { %v1295_v37 = vadd.f32 %v2733_v15, %v1294_v34 }
 0xabc   :  { %v1272_v46 = vadd.f32 %v2735_v27, %v1271_v51 }
 0xabd   :  { %v1299_v26 = vsel %vm1298_vm5, %v2733_v15, %v1295_v37 }
 0xabe   :  { %v1304_v4 = vsel %vm1301_vm6, %v1303_v45, %v1299_v26  ;;  %v1276_v55 = vsel %vm1275_vm9, %v2735_v27, %v1272_v46 }
 0xabf   :  { %v1281_v44 = vsel %vm1278_vm10, %v1280_v31, %v1276_v55  ;;  %v1347_v30 = vmul.f32 %v1304_v4, %v3252_v40 }
 0xac0   :  { %v1326_v52 = vmul.f32 %v1281_v44, %v3256_v11 }
 0xaf1   :  { %v1330_v9 = vpop.permute.xlu2 %1329 }
 0xaf2   :  { %v1335_v47 = vmul.f32 %v1330_v9, %v3294_v63 }
 0xaf4   :  { %1339 = vrot.lane.b32.xlu0 %v1335_v47, %s2841_s0 }
 0xafa   :  { %v1354_v23 = vpop.permute.xlu2 %1353 }
 0xafb   :  { %v1358_v28 = vmul.f32 %v1354_v23, %v3298_v60 }
 0xafd   :  { %1363 = vrot.lane.b32.xlu0 %v1358_v28, %s2841_s0 }
 0xb0a   :  { %v1352_v18 = vpop.permute.xlu1 %1351 }
 0xb0b   :  { %v1357_v20 = vmul.f32 %v1352_v18, %v1304_v4 }
 0xb0d   :  { %1361 = vrot.lane.b32.xlu2 %v1357_v20, %s2841_s0 }
 0xb11   :  { %v1332_v10 = vpop.permute.xlu0 %1331 }
 0xb12   :  { %v1336_v19 = vmul.f32 %v1332_v10, %v1281_v44 }
 0xb14   :  { %1341 = vrot.lane.b32.xlu1 %v1336_v19, %s2841_s0 }
 0xb66   :  { %v1340_v61 = vpop.permute.xlu0 %1339 }
 0xb67   :  { %v1362_v58 = vpop.permute.xlu2 %1361  ;;  %v3307_v62 = vadd.f32 %v1340_v61, %v1325_v59 }
 0xb68   :  { %v3309_v0 = vadd.f32 %v1362_v58, %v1347_v30 }
 0xb69   :  { %2736 = vtanh.f32 %v3307_v62 }
 0xb6a   :  { %2738 = vtanh.f32 %v3309_v0 }
 0xb6f   :  { %v2737_v2 = vpop.eup %2736  ;;  %v1364_v3 = vpop.permute.xlu0 %1363 }
 0xb70   :  { %v2739_v6 = vpop.eup %2738  ;;  %v3315_v7 = vadd.f32 %v1364_v3, %v1348_v1  ;;  %1373 = vrot.lane.b32.xlu1 %v2737_v2, %s2841_s0 }
 0xb71   :  { %1385 = vrot.lane.b32.xlu0 %v2739_v6, %s2841_s0 }
 0xb72   :  { %2740 = vtanh.f32 %v3315_v7 }
 0xb78   :  { %v2741_v40 = vpop.eup %2740 }
 0xb79   :  { %1387 = vrot.lane.b32.xlu1 %v2741_v40, %s2841_s0 }
 0xb86   :  { %v1342_v49 = vpop.permute.xlu1 %1341 }
 0xb87   :  { %v3322_v13 = vadd.f32 %v1342_v49, %v1326_v52 }
 0xb89   :  { %2742 = vtanh.f32 %v3322_v13 }
 0xb8f   :  { %v2743_v22 = vpop.eup %2742 }
 0xb90   :  { %1375 = vrot.lane.b32.xlu2 %v2743_v22, %s2841_s0 }
 0xbe2   :  { %v1374_v9 = vpop.permute.xlu1 %1373 }
 0xbe3   :  { %v1386_v47 = vpop.permute.xlu0 %1385  ;;  %v1379_v15 = vmul.f32 %v1374_v9, %v3294_v63 }
 0xbe4   :  { %v1391_v50 = vmul.f32 %v1386_v47, %v1304_v4 }
 0xbea   :  { %v1376_v14 = vpop.permute.xlu2 %1375 }
 0xbeb   :  { %v1388_v16 = vpop.permute.xlu1 %1387  ;;  %v1380_v25 = vmul.f32 %v1376_v14, %v1281_v44 }
 0xbec   :  { %v1392_v43 = vmul.f32 %v1388_v16, %v3298_v60  ;;  %v175_v60 = vpop.f32.mrf.mxu0 }
 0xbed   :  { %v2542_v56 = vpack.i.bf16 %v1380_v25, %v1379_v15  ;;  %v176_v42 = vadd.f32 %v175_v60, %v3044_v48 }
 0xbee   :  { %v2547_v11 = vpack.i.bf16 %v1392_v43, %v1391_v50 }
 0xbef   :  { %2543 = vrot.lane.b32.xlu2 %v2542_v56, %s2842_s2 }
 0xbf0   :  { %2548 = vrot.lane.b32.xlu0 %v2547_v11, %s2843_s24 }
 0xbf4   :  { %v177_v39 = vpop.f32.mrf.mxu0 }
 0xc49   :  { %v2544_v23 = vpop.permute.xlu2 %2543 }
 0xc4a   :  { %v2546_v28 = vunpack.i.h.bf16 %v2544_v23  ;;  %v2545_v29 = vunpack.i.l.bf16 %v2544_v23 }
 0xc62   :  { %v2549_v27 = vpop.permute.xlu0 %2548 }
 0xc63   :  { %v2551_v33 = vunpack.i.h.bf16 %v2549_v27  ;;  %v2550_v34 = vunpack.i.l.bf16 %v2549_v27 }
 0xc65   :  { %v1409_v36 = vsel %vm116_vm0, %v2545_v29, %v2550_v34  ;;  %v1410_v63 = vsel %vm116_vm0, %v2546_v28, %v2551_v33 }
 0xc66   :  { %v1411_v37 = vpack.c.bf16 %v1410_v63, %v1409_v36 }
 0xc68   :  { %2270 = vmatmul.msk.bf16.vlgmr.msrb.gmra.mxu2 %vm352_vm2, %v1411_v37  ;;  %2271 = vmatmul.msk.bf16.vlgmr.msrb.gmra.mxu3 %vm352_vm2, %v1411_v37 }
 0xc69   :  { %1843 = vmatpush.bf16.msrb.mxu2 %v2907_v8  ;;  %1857 = vmatpush.bf16.msrb.mxu3 %v2986_v32  ;;  %v178_v8 = vadd.f32 %v177_v39, %v3044_v48 }
 0xc6b   :  { %v2368_v51 = vpack.c.bf16 %v178_v8, %v176_v42 }
 0xc6d   :  { %1844 = vmatpush.bf16.msrb.mxu2 %v2928_v17  ;;  %1858 = vmatpush.bf16.msrb.mxu3 %v2997_v35  ;;  %v2462_v32 = vunpack.c.l.bf16 %v2368_v51  ;;  %v2466_v17 = vunpack.c.l.bf16 %v3062_v12 }
 0xc71   :  { %1845 = vmatpush.bf16.msrb.mxu2 %v2940_v21  ;;  %1859 = vmatpush.bf16.msrb.mxu3 %v3006_v38  ;;  %v2463_v38 = vunpack.c.h.bf16 %v2368_v51 }
 0xc75   :  { %1846 = vmatpush.bf16.msrb.mxu2 %v2951_v24  ;;  %1860 = vmatpush.bf16.msrb.mxu3 %v3015_v41  ;;  %v2467_v24 = vunpack.c.h.bf16 %v3062_v12 }
 0xceb   :  { %v1424_v26 = vpop.f32.mrf.mxu2  ;;  %v1438_v35 = vpop.f32.mrf.mxu3 }
 0xcec   :  { %v1448_v45 = vadd.f32 %v2462_v32, %v1424_v26  ;;  %v1455_v21 = vadd.f32 %v2466_v17, %v1438_v35 }
 0xcee   :  { %2744 = vtanh.f32 %v1448_v45  ;;  %v2272_v44 = vmul.f32 -1.442695, %v1448_v45  ;;  %v2274_v19 = vmul.f32 -1.442695, %v1455_v21 }
 0xcef   :  { %2746 = vtanh.f32 %v1455_v21 }
 0xcf3   :  { %v1426_v41 = vpop.f32.mrf.mxu2  ;;  %v1440_v18 = vpop.f32.mrf.mxu3 }
 0xcf4   :  { %v2745_v4 = vpop.eup %2744  ;;  %v1449_v46 = vadd.f32 %v2463_v38, %v1426_v41  ;;  %v1456_v20 = vadd.f32 %v2467_v24, %v1440_v18 }
 0xcf5   :  { %v2747_v53 = vpop.eup %2746  ;;  %1541 = vrot.lane.b32.xlu1 %v2745_v4, %s2841_s0 }
 0xcf6   :  { %2748 = vtanh.f32 %v1449_v46  ;;  %1563 = vrot.lane.b32.xlu0 %v2747_v53, %s2841_s0  ;;  %v2273_v31 = vmul.f32 -1.442695, %v1449_v46  ;;  %v2275_v30 = vmul.f32 -1.442695, %v1456_v20 }
 0xcf7   :  { %2750 = vtanh.f32 %v1456_v20 }
 0xcf8   :  { %2752 = vpow2.f32 %v2273_v31 }
 0xcfc   :  { %v2749_v54 = vpop.eup %2748 }
 0xcfd   :  { %v2751_v55 = vpop.eup %2750  ;;  %1543 = vrot.lane.b32.xlu2 %v2749_v54, %s2841_s0 }
 0xcfe   :  { %1565 = vrot.lane.b32.xlu1 %v2751_v55, %s2841_s0  ;;  %v2753_v12 = vpop.eup %2752 }
 0xcff   :  { %v1464_v10 = vadd.f32 1.0, %v2753_v12 }
 0xd01   :  { %2754 = vrcp.f32 %v1464_v10  ;;  %v1491_v47 = vand.u32 2147483648, %v1464_v10  ;;  %vm1485_vm12 = vweird.f32 %v1464_v10  ;;  %v1489_v15 = vand.u32 2147483647, %v1464_v10 }
 0xd02   :  { %2756 = vpow2.f32 %v2272_v44 }
 0xd03   :  { %2758 = vpow2.f32 %v2274_v19  ;;  %v1492_v50 = vor.u32 1.1754944e-38, %v1491_v47  ;;  %vm1490_vm14 = vcmp.eq.f32.partialorder %v1489_v15, 8.507059e+37 }
 0xd04   :  { %2760 = vpow2.f32 %v2275_v30 }
 0xd07   :  { %v2755_v59 = vpop.eup %2754 }
 0xd08   :  { %v2757_v61 = vpop.eup %2756  ;;  %v1481_v58 = vmul.f32 %v2755_v59, %v1464_v10  ;;  %vm1486_vm11 = vweird.f32 %v2755_v59 }
 0xd09   :  { %v2759_v1 = vpop.eup %2758  ;;  %v1463_v2 = vadd.f32 1.0, %v2757_v61  ;;  %vm1487_vm13 = vmor %vm1485_vm12, %vm1486_vm11 }
 0xd0a   :  { %v1501_v3 = vadd.f32 1.0, %v2759_v1  ;;  %v1482_v6 = vsub.f32 1.0, %v1481_v58  ;;  %v2761_v52 = vpop.eup %2760 }
 0xd0b   :  { %2762 = vrcp.f32 %v1463_v2  ;;  %v1502_v49 = vadd.f32 1.0, %v2761_v52  ;;  %v1476_v60 = vand.u32 2147483648, %v1463_v2  ;;  %vm1470_vm3 = vweird.f32 %v1463_v2 }
 0xd0c   :  { %2764 = vrcp.f32 %v1501_v3  ;;  %v1483_v40 = vmul.f32 %v2755_v59, %v1482_v6  ;;  %v1514_v42 = vand.u32 2147483648, %v1501_v3  ;;  %v1474_v8 = vand.u32 2147483647, %v1463_v2 }
 0xd0d   :  { %2766 = vrcp.f32 %v1502_v49  ;;  %vm1508_vm4 = vweird.f32 %v1501_v3  ;;  %v1512_v51 = vand.u32 2147483647, %v1501_v3  ;;  %v1477_v26 = vor.u32 1.1754944e-38, %v1476_v60 }
 0xd0e   :  { %v1484_v22 = vadd.f32 %v2755_v59, %v1483_v40  ;;  %v1515_v45 = vor.u32 1.1754944e-38, %v1514_v42  ;;  %vm1475_vm7 = vcmp.eq.f32.partialorder %v1474_v8, 8.507059e+37  ;;  %v1529_v20 = vand.u32 2147483648, %v1502_v49 }
 0xd0f   :  { %vm1513_vm8 = vcmp.eq.f32.partialorder %v1512_v51, 8.507059e+37  ;;  %vm1523_vm10 = vweird.f32 %v1502_v49  ;;  %v1527_v53 = vand.u32 2147483647, %v1502_v49  ;;  %v2474_v51 = vunpack.c.l.bf16 %v3057_v5 }
 0xd10   :  { %v1488_v16 = vsel %vm1487_vm13, %v2755_v59, %v1484_v22  ;;  %v1530_v55 = vor.u32 1.1754944e-38, %v1529_v20 }
 0xd11   :  { %v2763_v9 = vpop.eup %2762  ;;  %v3350_v11 = vsel %vm1490_vm14, %v1492_v50, %v1488_v16  ;;  %vm1528_vm12 = vcmp.eq.f32.partialorder %v1527_v53, 8.507059e+37 }
 0xd12   :  { %v2765_v14 = vpop.eup %2764  ;;  %v1466_v25 = vmul.f32 %v2763_v9, %v1463_v2  ;;  %vm1471_vm15 = vweird.f32 %v2763_v9  ;;  %v1538_v30 = vmul.f32 %v3350_v11, %v3322_v13 }
 0xd13   :  { %v1504_v43 = vmul.f32 %v2765_v14, %v1501_v3  ;;  %v2767_v29 = vpop.eup %2766  ;;  %vm1509_vm1 = vweird.f32 %v2765_v14  ;;  %vm1472_vm5 = vmor %vm1470_vm3, %vm1471_vm15 }
 0xd14   :  { %v1467_v27 = vsub.f32 1.0, %v1466_v25  ;;  %v1519_v36 = vmul.f32 %v2767_v29, %v1502_v49  ;;  %vm1510_vm6 = vmor %vm1508_vm4, %vm1509_vm1  ;;  %vm1524_vm9 = vweird.f32 %v2767_v29 }
 0xd15   :  { %v1505_v28 = vsub.f32 1.0, %v1504_v43  ;;  %vm1525_vm11 = vmor %vm1523_vm10, %vm1524_vm9 }
 0xd16   :  { %v1468_v33 = vmul.f32 %v2763_v9, %v1467_v27  ;;  %v1520_v39 = vsub.f32 1.0, %v1519_v36 }
 0xd17   :  { %v1506_v34 = vmul.f32 %v2765_v14, %v1505_v28 }
 0xd18   :  { %v1469_v63 = vadd.f32 %v2763_v9, %v1468_v33  ;;  %v1521_v35 = vmul.f32 %v2767_v29, %v1520_v39 }
 0xd19   :  { %v1507_v37 = vadd.f32 %v2765_v14, %v1506_v34 }
 0xd1a   :  { %v1473_v32 = vsel %vm1472_vm5, %v2763_v9, %v1469_v63  ;;  %v1522_v46 = vadd.f32 %v2767_v29, %v1521_v35 }
 0xd1b   :  { %v1511_v17 = vsel %vm1510_vm6, %v2765_v14, %v1507_v37  ;;  %v1478_v38 = vsel %vm1475_vm7, %v1477_v26, %v1473_v32 }
 0xd1c   :  { %v1516_v41 = vsel %vm1513_vm8, %v1515_v45, %v1511_v17  ;;  %v1526_v54 = vsel %vm1525_vm11, %v2767_v29, %v1522_v46  ;;  %v1537_v44 = vmul.f32 %v1478_v38, %v3307_v62 }
 0xd1d   :  { %v1531_v31 = vsel %vm1528_vm12, %v1530_v55, %v1526_v54 }
 0xd1e   :  { %v1560_v61 = vmul.f32 %v1531_v31, %v3315_v7  ;;  %v1559_v7 = vmul.f32 %v1516_v41, %v3309_v0 }
 0xd57   :  { %v1544_v56 = vpop.permute.xlu2 %1543 }
 0xd58   :  { %v1548_v23 = vmul.f32 %v1544_v56, %v3350_v11 }
 0xd5a   :  { %1553 = vrot.lane.b32.xlu0 %v1548_v23, %s2841_s0 }
 0xd67   :  { %v1542_v21 = vpop.permute.xlu1 %1541 }
 0xd68   :  { %v1564_v24 = vpop.permute.xlu0 %1563  ;;  %v1547_v18 = vmul.f32 %v1542_v21, %v1478_v38  ;;  %v2475_v21 = vunpack.c.h.bf16 %v3057_v5 }
 0xd69   :  { %v1569_v4 = vmul.f32 %v1564_v24, %v1516_v41 }
 0xd6a   :  { %1551 = vrot.lane.b32.xlu2 %v1547_v18, %s2841_s0 }
 0xd6b   :  { %1573 = vrot.lane.b32.xlu1 %v1569_v4, %s2841_s0 }
 0xd70   :  { %v1566_v12 = vpop.permute.xlu1 %1565 }
 0xd71   :  { %v1570_v10 = vmul.f32 %v1566_v12, %v1531_v31 }
 0xd73   :  { %1575 = vrot.lane.b32.xlu2 %v1570_v10, %s2841_s0 }
 0xdc4   :  { %v1552_v19 = vpop.permute.xlu2 %1551 }
 0xdc5   :  { %v3358_v59 = vadd.f32 %v1552_v19, %v1537_v44 }
 0xdc7   :  { %2768 = vtanh.f32 %v3358_v59 }
 0xdcc   :  { %v1554_v58 = vpop.permute.xlu0 %1553 }
 0xdcd   :  { %v2769_v1 = vpop.eup %2768  ;;  %v1576_v2 = vpop.permute.xlu2 %1575  ;;  %v3364_v3 = vadd.f32 %v1554_v58, %v1538_v30 }
 0xdce   :  { %v3366_v6 = vadd.f32 %v1576_v2, %v1560_v61  ;;  %1585 = vrot.lane.b32.xlu0 %v2769_v1, %s2841_s0 }
 0xdcf   :  { %2770 = vtanh.f32 %v3364_v3 }
 0xdd0   :  { %2772 = vtanh.f32 %v3366_v6 }
 0xdd5   :  { %v2771_v62 = vpop.eup %2770 }
 0xdd6   :  { %v2773_v40 = vpop.eup %2772  ;;  %1587 = vrot.lane.b32.xlu1 %v2771_v62, %s2841_s0 }
 0xdd7   :  { %1599 = vrot.lane.b32.xlu0 %v2773_v40, %s2841_s0 }
 0xddd   :  { %v1574_v13 = vpop.permute.xlu1 %1573 }
 0xdde   :  { %v3374_v52 = vadd.f32 %v1574_v13, %v1559_v7 }
 0xde0   :  { %2774 = vtanh.f32 %v3374_v52 }
 0xde6   :  { %v2775_v49 = vpop.eup %2774 }
 0xde7   :  { %1597 = vrot.lane.b32.xlu2 %v2775_v49, %s2841_s0 }
 0xe40   :  { %v1586_v22 = vpop.permute.xlu0 %1585 }
 0xe41   :  { %v1598_v9 = vpop.permute.xlu2 %1597  ;;  %v1591_v14 = vmul.f32 %v1586_v22, %v1478_v38 }
 0xe42   :  { %v1603_v25 = vmul.f32 %v1598_v9, %v1516_v41 }
 0xe48   :  { %v1588_v47 = vpop.permute.xlu1 %1587 }
 0xe49   :  { %v1600_v15 = vpop.permute.xlu0 %1599  ;;  %v1592_v16 = vmul.f32 %v1588_v47, %v3350_v11  ;;  %v180_v11 = vpop.f32.mrf.mxu0 }
 0xe4a   :  { %v1604_v50 = vmul.f32 %v1600_v15, %v1531_v31  ;;  %v181_v60 = vadd.f32 %v180_v11, %v3044_v48 }
 0xe4b   :  { %v2552_v43 = vpack.i.bf16 %v1592_v16, %v1591_v14 }
 0xe4c   :  { %v2557_v56 = vpack.i.bf16 %v1604_v50, %v1603_v25 }
 0xe4d   :  { %2553 = vrot.lane.b32.xlu1 %v2552_v43, %s2842_s2 }
 0xe4e   :  { %2558 = vrot.lane.b32.xlu2 %v2557_v56, %s2843_s24 }
 0xe51   :  { %v182_v37 = vpop.f32.mrf.mxu0 }
 0xe52   :  { %v183_v39 = vadd.f32 %v182_v37, %v3044_v48 }
 0xe54   :  { %v2373_v42 = vpack.c.bf16 %v183_v39, %v181_v60 }
 0xe56   :  { %v2470_v8 = vunpack.c.l.bf16 %v2373_v42  ;;  %v2471_v45 = vunpack.c.h.bf16 %v2373_v42 }
 0xea8   :  { %v2559_v0 = vpop.permute.xlu2 %2558 }
 0xea9   :  { %v2561_v27 = vunpack.i.h.bf16 %v2559_v0  ;;  %v2560_v28 = vunpack.i.l.bf16 %v2559_v0 }
 0xebf   :  { %v2554_v23 = vpop.permute.xlu1 %2553 }
 0xec0   :  { %v2556_v29 = vunpack.i.h.bf16 %v2554_v23  ;;  %v2555_v33 = vunpack.i.l.bf16 %v2554_v23 }
 0xec2   :  { %v1622_v34 = vsel %vm116_vm0, %v2556_v29, %v2561_v27  ;;  %v1621_v36 = vsel %vm116_vm0, %v2555_v33, %v2560_v28 }
 0xec3   :  { %v1623_v63 = vpack.c.bf16 %v1622_v34, %v1621_v36 }
 0xec5   :  { %2276 = vmatmul.msk.bf16.vlgmr.msra.gmra.mxu2 %vm352_vm2, %v1623_v63  ;;  %2277 = vmatmul.msk.bf16.vlgmr.msra.gmra.mxu3 %vm352_vm2, %v1623_v63 }
 0xf48   :  { %v1636_v32 = vpop.f32.mrf.mxu2  ;;  %v1650_v17 = vpop.f32.mrf.mxu3 }
 0xf49   :  { %v1660_v26 = vadd.f32 %v2470_v8, %v1636_v32  ;;  %v1667_v35 = vadd.f32 %v2474_v51, %v1650_v17 }
 0xf4b   :  { %2776 = vtanh.f32 %v1660_v26  ;;  %v2280_v54 = vmul.f32 -1.442695, %v1667_v35  ;;  %v2278_v12 = vmul.f32 -1.442695, %v1660_v26 }
 0xf4c   :  { %2778 = vtanh.f32 %v1667_v35 }
 0xf50   :  { %v1638_v38 = vpop.f32.mrf.mxu2  ;;  %v1652_v24 = vpop.f32.mrf.mxu3 }
 0xf51   :  { %v2777_v41 = vpop.eup %2776  ;;  %v1661_v18 = vadd.f32 %v2471_v45, %v1638_v38  ;;  %v1668_v4 = vadd.f32 %v2475_v21, %v1652_v24 }
 0xf52   :  { %v2779_v46 = vpop.eup %2778  ;;  %1753 = vrot.lane.b32.xlu0 %v2777_v41, %s2841_s0 }
 0xf53   :  { %2780 = vtanh.f32 %v1661_v18  ;;  %1775 = vrot.lane.b32.xlu2 %v2779_v46, %s2841_s0  ;;  %v2279_v19 = vmul.f32 -1.442695, %v1661_v18  ;;  %v2281_v30 = vmul.f32 -1.442695, %v1668_v4 }
 0xf54   :  { %2782 = vtanh.f32 %v1668_v4 }
 0xf55   :  { %2784 = vpow2.f32 %v2280_v54 }
 0xf59   :  { %v2781_v20 = vpop.eup %2780 }
 0xf5a   :  { %v2783_v53 = vpop.eup %2782  ;;  %1755 = vrot.lane.b32.xlu1 %v2781_v20, %s2841_s0 }
 0xf5b   :  { %1777 = vrot.lane.b32.xlu0 %v2783_v53, %s2841_s0  ;;  %v2785_v5 = vpop.eup %2784 }
 0xf5c   :  { %v1713_v55 = vadd.f32 1.0, %v2785_v5 }
 0xf5e   :  { %2786 = vrcp.f32 %v1713_v55  ;;  %v1726_v62 = vand.u32 2147483648, %v1713_v55  ;;  %vm1720_vm14 = vweird.f32 %v1713_v55  ;;  %v1724_v40 = vand.u32 2147483647, %v1713_v55 }
 0xf5f   :  { %2788 = vpow2.f32 %v2278_v12 }
 0xf60   :  { %2790 = vpow2.f32 %v2279_v19  ;;  %v1727_v22 = vor.u32 1.1754944e-38, %v1726_v62  ;;  %vm1725_vm1 = vcmp.eq.f32.partialorder %v1724_v40, 8.507059e+37 }
 0xf61   :  { %2792 = vpow2.f32 %v2281_v30 }
 0xf64   :  { %v2787_v31 = vpop.eup %2786 }
 0xf65   :  { %v1716_v10 = vmul.f32 %v2787_v31, %v1713_v55  ;;  %v2789_v61 = vpop.eup %2788  ;;  %vm1721_vm13 = vweird.f32 %v2787_v31 }
 0xf66   :  { %v1675_v1 = vadd.f32 1.0, %v2789_v61  ;;  %v2791_v7 = vpop.eup %2790  ;;  %vm1722_vm15 = vmor %vm1720_vm14, %vm1721_vm13 }
 0xf67   :  { %v1717_v44 = vsub.f32 1.0, %v1716_v10  ;;  %v2793_v13 = vpop.eup %2792  ;;  %v1676_v9 = vadd.f32 1.0, %v2791_v7 }
 0xf68   :  { %2794 = vrcp.f32 %v1675_v1  ;;  %v1714_v47 = vadd.f32 1.0, %v2793_v13  ;;  %v1688_v34 = vand.u32 2147483648, %v1675_v1  ;;  %vm1682_vm4 = vweird.f32 %v1675_v1 }
 0xf69   :  { %v1718_v58 = vmul.f32 %v2787_v31, %v1717_v44  ;;  %2796 = vrcp.f32 %v1676_v9  ;;  %v1686_v63 = vand.u32 2147483647, %v1675_v1  ;;  %v1703_v26 = vand.u32 2147483648, %v1676_v9 }
 0xf6a   :  { %2798 = vrcp.f32 %v1714_v47  ;;  %v1689_v60 = vor.u32 1.1754944e-38, %v1688_v34  ;;  %v1741_v35 = vand.u32 2147483648, %v1714_v47  ;;  %vm1697_vm9 = vweird.f32 %v1676_v9 }
 0xf6b   :  { %v1719_v2 = vadd.f32 %v2787_v31, %v1718_v58  ;;  %vm1687_vm6 = vcmp.eq.f32.partialorder %v1686_v63, 8.507059e+37  ;;  %v1701_v45 = vand.u32 2147483647, %v1676_v9  ;;  %vm1735_vm10 = vweird.f32 %v1714_v47 }
 0xf6c   :  { %v1739_v21 = vand.u32 2147483647, %v1714_v47  ;;  %v1704_v41 = vor.u32 1.1754944e-38, %v1703_v26  ;;  %v1742_v18 = vor.u32 1.1754944e-38, %v1741_v35 }
 0xf6d   :  { %v1723_v49 = vsel %vm1722_vm15, %v2787_v31, %v1719_v2  ;;  %vm1702_vm13 = vcmp.eq.f32.partialorder %v1701_v45, 8.507059e+37 }
 0xf6e   :  { %v3393_v15 = vsel %vm1725_vm1, %v1727_v22, %v1723_v49  ;;  %v2795_v16 = vpop.eup %2794  ;;  %vm1740_vm14 = vcmp.eq.f32.partialorder %v1739_v21, 8.507059e+37 }
 0xf6f   :  { %v1678_v50 = vmul.f32 %v2795_v16, %v1675_v1  ;;  %v2797_v56 = vpop.eup %2796  ;;  %vm1683_vm3 = vweird.f32 %v2795_v16  ;;  %v1771_v55 = vmul.f32 %v3393_v15, %v3374_v52 }
 0xf70   :  { %v2799_v0 = vpop.eup %2798  ;;  %v1693_v27 = vmul.f32 %v2797_v56, %v1676_v9  ;;  %vm1684_vm5 = vmor %vm1682_vm4, %vm1683_vm3  ;;  %vm1698_vm7 = vweird.f32 %v2797_v56 }
 0xf71   :  { %v1679_v43 = vsub.f32 1.0, %v1678_v50  ;;  %v1731_v28 = vmul.f32 %v2799_v0, %v1714_v47  ;;  %vm1736_vm8 = vweird.f32 %v2799_v0  ;;  %vm1699_vm11 = vmor %vm1697_vm9, %vm1698_vm7 }
 0xf72   :  { %v1694_v33 = vsub.f32 1.0, %v1693_v27  ;;  %vm1737_vm12 = vmor %vm1735_vm10, %vm1736_vm8 }
 0xf73   :  { %v1680_v23 = vmul.f32 %v2795_v16, %v1679_v43  ;;  %v1732_v36 = vsub.f32 1.0, %v1731_v28 }
 0xf74   :  { %v1695_v37 = vmul.f32 %v2797_v56, %v1694_v33 }
 0xf75   :  { %v1681_v29 = vadd.f32 %v2795_v16, %v1680_v23  ;;  %v1733_v39 = vmul.f32 %v2799_v0, %v1732_v36 }
 0xf76   :  { %v1696_v32 = vadd.f32 %v2797_v56, %v1695_v37 }
 0xf77   :  { %v1685_v11 = vsel %vm1684_vm5, %v2795_v16, %v1681_v29  ;;  %v1734_v17 = vadd.f32 %v2799_v0, %v1733_v39 }
 0xf78   :  { %v1690_v8 = vsel %vm1687_vm6, %v1689_v60, %v1685_v11  ;;  %v1700_v38 = vsel %vm1699_vm11, %v2797_v56, %v1696_v32  ;;  %v2482_v60 = vunpack.c.l.bf16 %v3052_v57 }
 0xf79   :  { %v1738_v24 = vsel %vm1737_vm12, %v2799_v0, %v1734_v17  ;;  %v1705_v46 = vsel %vm1702_vm13, %v1704_v41, %v1700_v38  ;;  %v1749_v52 = vmul.f32 %v1690_v8, %v3358_v59  ;;  %v2483_v17 = vunpack.c.h.bf16 %v3052_v57 }
 0xf7a   :  { %v1743_v20 = vsel %vm1740_vm14, %v1742_v18, %v1738_v24  ;;  %v1750_v10 = vmul.f32 %v1705_v46, %v3364_v3 }
 0xf7b   :  { %v1772_v3 = vmul.f32 %v1743_v20, %v3366_v6 }
 0xfad   :  { %v1776_v14 = vpop.permute.xlu2 %1775 }
 0xfae   :  { %v1781_v25 = vmul.f32 %v1776_v14, %v3393_v15 }
 0xfb0   :  { %1785 = vrot.lane.b32.xlu0 %v1781_v25, %s2841_s0 }
 0xfc4   :  { %v1754_v42 = vpop.permute.xlu0 %1753 }
 0xfc5   :  { %v1759_v51 = vmul.f32 %v1754_v42, %v1690_v8 }
 0xfc7   :  { %1763 = vrot.lane.b32.xlu1 %v1759_v51, %s2841_s0 }
 0xfcc   :  { %v1756_v4 = vpop.permute.xlu1 %1755 }
 0xfcd   :  { %v1778_v53 = vpop.permute.xlu0 %1777  ;;  %v1760_v54 = vmul.f32 %v1756_v4, %v1705_v46 }
 0xfce   :  { %v1782_v5 = vmul.f32 %v1778_v53, %v1743_v20 }
 0xfcf   :  { %1765 = vrot.lane.b32.xlu2 %v1760_v54, %s2841_s0 }
 0xfd0   :  { %1787 = vrot.lane.b32.xlu1 %v1782_v5, %s2841_s0 }
0x1022   :  { %v1786_v31 = vpop.permute.xlu0 %1785 }
0x1023   :  { %v3402_v12 = vadd.f32 %v1786_v31, %v1771_v55 }
0x1025   :  { %2800 = vtanh.f32 %v3402_v12 }
0x1029   :  { %v1766_v44 = vpop.permute.xlu2 %1765 }
0x102a   :  { %v3406_v19 = vadd.f32 %v1766_v44, %v1750_v10 }
0x102b   :  { %v2801_v30 = vpop.eup %2800 }
0x102c   :  { %2802 = vtanh.f32 %v3406_v19  ;;  %1809 = vrot.lane.b32.xlu1 %v2801_v30, %s2841_s0 }
0x1032   :  { %v2803_v61 = vpop.eup %2802 }
0x1033   :  { %1799 = vrot.lane.b32.xlu0 %v2803_v61, %s2841_s0 }
0x1039   :  { %v1764_v58 = vpop.permute.xlu1 %1763 }
0x103a   :  { %v3412_v1 = vadd.f32 %v1764_v58, %v1749_v52 }
0x103c   :  { %2804 = vtanh.f32 %v3412_v1 }
0x1042   :  { %v2805_v2 = vpop.eup %2804  ;;  %v1788_v62 = vpop.permute.xlu1 %1787 }
0x1043   :  { %v3416_v40 = vadd.f32 %v1788_v62, %v1772_v3  ;;  %1797 = vrot.lane.b32.xlu2 %v2805_v2, %s2841_s0 }
0x1045   :  { %2806 = vtanh.f32 %v3416_v40 }
0x104b   :  { %v2807_v7 = vpop.eup %2806 }
0x104c   :  { %1811 = vrot.lane.b32.xlu2 %v2807_v7, %s2841_s0 }
0x109d   :  { %v1798_v13 = vpop.permute.xlu2 %1797 }
0x109e   :  { %v1810_v59 = vpop.permute.xlu1 %1809  ;;  %v1803_v22 = vmul.f32 %v1798_v13, %v1690_v8 }
0x109f   :  { %v1815_v14 = vmul.f32 %v1810_v59, %v3393_v15  ;;  %v185_v15 = vpop.f32.mrf.mxu0 }
0x10a0   :  { %v186_v36 = vadd.f32 %v185_v15, %v3044_v48 }
0x10a5   :  { %v1800_v49 = vpop.permute.xlu0 %1799 }
0x10a6   :  { %v1812_v9 = vpop.permute.xlu2 %1811  ;;  %v1804_v47 = vmul.f32 %v1800_v49, %v1705_v46 }
0x10a7   :  { %v1816_v6 = vmul.f32 %v1812_v9, %v1743_v20  ;;  %v187_v34 = vpop.f32.mrf.mxu0 }
0x10a8   :  { %v2562_v16 = vpack.i.bf16 %v1804_v47, %v1803_v22  ;;  %v188_v63 = vadd.f32 %v187_v34, %v3044_v48 }
0x10a9   :  { %v2567_v25 = vpack.i.bf16 %v1816_v6, %v1815_v14 }
0x10aa   :  { %2563 = vrot.lane.b32.xlu0 %v2562_v16, %s2842_s2  ;;  %v2378_v11 = vpack.c.bf16 %v188_v63, %v186_v36 }
0x10ab   :  { %2568 = vrot.lane.b32.xlu1 %v2567_v25, %s2843_s24 }
0x10ac   :  { %v2478_v37 = vunpack.c.l.bf16 %v2378_v11  ;;  %v2479_v32 = vunpack.c.h.bf16 %v2378_v11 }
0x111c   :  { %v2564_v50 = vpop.permute.xlu0 %2563 }
0x111d   :  { %v2569_v43 = vpop.permute.xlu1 %2568  ;;  %v2566_v56 = vunpack.i.h.bf16 %v2564_v50  ;;  %v2565_v0 = vunpack.i.l.bf16 %v2564_v50 }
0x111e   :  { %v2571_v23 = vunpack.i.h.bf16 %v2569_v43  ;;  %v2570_v27 = vunpack.i.l.bf16 %v2569_v43 }
0x1120   :  { %v1834_v28 = vsel %vm116_vm0, %v2566_v56, %v2571_v23  ;;  %v1833_v29 = vsel %vm116_vm0, %v2565_v0, %v2570_v27 }
0x1121   :  { %v1835_v33 = vpack.c.bf16 %v1834_v28, %v1833_v29 }
0x1123   :  { %2282 = vmatmul.msk.bf16.vlgmr.msrb.gmra.mxu2 %vm352_vm2, %v1835_v33  ;;  %2283 = vmatmul.msk.bf16.vlgmr.msrb.gmra.mxu3 %vm352_vm2, %v1835_v33 }
0x11a6   :  { %v1848_v39 = vpop.f32.mrf.mxu2  ;;  %v1862_v42 = vpop.f32.mrf.mxu3 }
0x11a7   :  { %v1872_v8 = vadd.f32 %v2478_v37, %v1848_v39  ;;  %v1878_v51 = vadd.f32 %v2482_v60, %v1862_v42 }
0x11a9   :  { %2808 = vtanh.f32 %v1872_v8  ;;  %v2284_v18 = vmul.f32 -1.442695, %v1872_v8  ;;  %v2286_v5 = vmul.f32 -1.442695, %v1878_v51 }
0x11aa   :  { %2810 = vtanh.f32 %v1878_v51 }
0x11ae   :  { %v1850_v26 = vpop.f32.mrf.mxu2  ;;  %v1864_v35 = vpop.f32.mrf.mxu3 }
0x11af   :  { %v2809_v45 = vpop.eup %2808  ;;  %v1873_v21 = vadd.f32 %v2479_v32, %v1850_v26  ;;  %v1879_v38 = vadd.f32 %v2483_v17, %v1864_v35 }
0x11b0   :  { %v2811_v24 = vpop.eup %2810  ;;  %1964 = vrot.lane.b32.xlu2 %v2809_v45, %s2841_s0 }
0x11b1   :  { %2812 = vtanh.f32 %v1873_v21  ;;  %1986 = vrot.lane.b32.xlu1 %v2811_v24, %s2841_s0  ;;  %v2287_v57 = vmul.f32 -1.442695, %v1879_v38  ;;  %v2285_v44 = vmul.f32 -1.442695, %v1873_v21 }
0x11b2   :  { %2814 = vtanh.f32 %v1879_v38 }
0x11b3   :  { %2816 = vpow2.f32 %v2284_v18 }
0x11b4   :  { %2818 = vpow2.f32 %v2287_v57 }
0x11b7   :  { %v2813_v48 = vpop.eup %2812 }
0x11b8   :  { %v2815_v41 = vpop.eup %2814  ;;  %1966 = vrot.lane.b32.xlu0 %v2813_v48, %s2841_s0 }
0x11b9   :  { %1988 = vrot.lane.b32.xlu2 %v2815_v41, %s2841_s0  ;;  %v2817_v4 = vpop.eup %2816 }
0x11ba   :  { %v1886_v46 = vadd.f32 1.0, %v2817_v4  ;;  %v2819_v20 = vpop.eup %2818 }
0x11bb   :  { %v1925_v53 = vadd.f32 1.0, %v2819_v20 }
0x11bc   :  { %2820 = vrcp.f32 %v1886_v46  ;;  %v1899_v2 = vand.u32 2147483648, %v1886_v46  ;;  %vm1893_vm1 = vweird.f32 %v1886_v46  ;;  %v1897_v7 = vand.u32 2147483647, %v1886_v46 }
0x11bd   :  { %2822 = vrcp.f32 %v1925_v53  ;;  %v1952_v50 = vand.u32 2147483648, %v1925_v53  ;;  %vm1946_vm6 = vweird.f32 %v1925_v53  ;;  %v1950_v43 = vand.u32 2147483647, %v1925_v53 }
0x11be   :  { %2824 = vpow2.f32 %v2286_v5  ;;  %v1900_v49 = vor.u32 1.1754944e-38, %v1899_v2  ;;  %vm1898_vm4 = vcmp.eq.f32.partialorder %v1897_v7, 8.507059e+37 }
0x11bf   :  { %2826 = vpow2.f32 %v2285_v44  ;;  %v1953_v23 = vor.u32 1.1754944e-38, %v1952_v50  ;;  %vm1951_vm8 = vcmp.eq.f32.partialorder %v1950_v43, 8.507059e+37 }
0x11c2   :  { %v2821_v54 = vpop.eup %2820 }
0x11c3   :  { %v1889_v55 = vmul.f32 %v2821_v54, %v1886_v46  ;;  %v2823_v10 = vpop.eup %2822  ;;  %vm1894_vm15 = vweird.f32 %v2821_v54 }
0x11c4   :  { %v2825_v61 = vpop.eup %2824  ;;  %v1942_v52 = vmul.f32 %v2823_v10, %v1925_v53  ;;  %vm1895_vm3 = vmor %vm1893_vm1, %vm1894_vm15  ;;  %vm1947_vm5 = vweird.f32 %v2823_v10 }
0x11c5   :  { %v1890_v31 = vsub.f32 1.0, %v1889_v55  ;;  %v1924_v58 = vadd.f32 1.0, %v2825_v61  ;;  %v2827_v13 = vpop.eup %2826  ;;  %vm1948_vm7 = vmor %vm1946_vm6, %vm1947_vm5 }
0x11c6   :  { %v1943_v62 = vsub.f32 1.0, %v1942_v52  ;;  %v1887_v9 = vadd.f32 1.0, %v2827_v13  ;;  %v2336_v52 = vld [vmem:[%s3498_s4 + $0x10] sm:$0xff] }
0x11c7   :  { %v1891_v30 = vmul.f32 %v2821_v54, %v1890_v31  ;;  %2828 = vrcp.f32 %v1924_v58  ;;  %v1937_v37 = vand.u32 2147483648, %v1924_v58  ;;  %vm1931_vm10 = vweird.f32 %v1924_v58 }
0x11c8   :  { %v1944_v22 = vmul.f32 %v2823_v10, %v1943_v62  ;;  %2830 = vrcp.f32 %v1887_v9  ;;  %v1935_v60 = vand.u32 2147483647, %v1924_v58  ;;  %v1914_v35 = vand.u32 2147483648, %v1887_v9 }
0x11c9   :  { %v1892_v3 = vadd.f32 %v2821_v54, %v1891_v30  ;;  %v1938_v8 = vor.u32 1.1754944e-38, %v1937_v37  ;;  %vm1908_vm14 = vweird.f32 %v1887_v9  ;;  %v1912_v45 = vand.u32 2147483647, %v1887_v9 }
0x11ca   :  { %v1945_v16 = vadd.f32 %v2823_v10, %v1944_v22  ;;  %vm1936_vm12 = vcmp.eq.f32.partialorder %v1935_v60, 8.507059e+37  ;;  %v1915_v38 = vor.u32 1.1754944e-38, %v1914_v35  ;;  %v2583_v60 = vld [vmem:[%s3501_s7] ss:$0 sm:$0xff] }
0x11cb   :  { %v1896_v59 = vsel %vm1895_vm3, %v2821_v54, %v1892_v3  ;;  %vm1913_vm1 = vcmp.eq.f32.partialorder %v1912_v45, 8.507059e+37 }
0x11cc   :  { %v3436_v14 = vsel %vm1898_vm4, %v1900_v49, %v1896_v59  ;;  %v1949_v56 = vsel %vm1948_vm7, %v2823_v10, %v1945_v16 }
0x11cd   :  { %v2829_v25 = vpop.eup %2828  ;;  %v3440_v27 = vsel %vm1951_vm8, %v1953_v23, %v1949_v56  ;;  %v1960_v18 = vmul.f32 %v3436_v14, %v3412_v1 }
0x11ce   :  { %v1927_v0 = vmul.f32 %v2829_v25, %v1924_v58  ;;  %v2831_v29 = vpop.eup %2830  ;;  %vm1932_vm9 = vweird.f32 %v2829_v25  ;;  %v1983_v54 = vmul.f32 %v3440_v27, %v3416_v40  ;;  %v2337_v40 = vld [vmem:[%s3498_s4 + $0x18] sm:$0xff]  ;;  %v2334_v58 = vld [vmem:[%s3498_s4] sm:$0xff] }
0x11cf   :  { %v1904_v34 = vmul.f32 %v2831_v29, %v1887_v9  ;;  %vm1933_vm11 = vmor %vm1931_vm10, %vm1932_vm9  ;;  %vm1909_vm13 = vweird.f32 %v2831_v29  ;;  %2090 = vmatpush.bf16.msrb.mxu0 %v2337_v40 }
0x11d0   :  { %v1928_v15 = vsub.f32 1.0, %v1927_v0  ;;  %vm1910_vm15 = vmor %vm1908_vm14, %vm1909_vm13 }
0x11d1   :  { %v1905_v63 = vsub.f32 1.0, %v1904_v34 }
0x11d2   :  { %v1929_v36 = vmul.f32 %v2829_v25, %v1928_v15 }
0x11d3   :  { %v1906_v39 = vmul.f32 %v2831_v29, %v1905_v63  ;;  %2091 = vmatpush.bf16.msrb.mxu0 %v2336_v52 }
0x11d4   :  { %v1930_v11 = vadd.f32 %v2829_v25, %v1929_v36 }
0x11d5   :  { %v1907_v17 = vadd.f32 %v2831_v29, %v1906_v39 }
0x11d6   :  { %v1934_v42 = vsel %vm1933_vm11, %v2829_v25, %v1930_v11 }
0x11d7   :  { %v1939_v32 = vsel %vm1936_vm12, %v1938_v8, %v1934_v42  ;;  %v1911_v21 = vsel %vm1910_vm15, %v2831_v29, %v1907_v17 }
0x11d8   :  { %v1916_v48 = vsel %vm1913_vm1, %v1915_v38, %v1911_v21  ;;  %v1982_v57 = vmul.f32 %v1939_v32, %v3402_v12 }
0x11d9   :  { %v1961_v12 = vmul.f32 %v1916_v48, %v3406_v19  ;;  %v2335_v19 = vld [vmem:[%s3498_s4 + $0x8] sm:$0xff] }
0x11da   :  { %2092 = vmatpush.bf16.msrb.mxu0 %v2335_v19 }
0x11de   :  { %2093 = vmatpush.bf16.msrb.mxu0 %v2334_v58 }
0x120a   :  { %v1965_v47 = vpop.permute.xlu2 %1964 }
0x120b   :  { %v1970_v6 = vmul.f32 %v1965_v47, %v3436_v14 }
0x120d   :  { %1974 = vrot.lane.b32.xlu0 %v1970_v6, %s2841_s0  ;;  %v2339_v6 = vld [vmem:[%s3500_s6 + $0x8] sm:$0xff] }
0x120e   :  { %2132 = vmatpush.bf16.msrb.mxu1 %v2339_v6 }
0x1213   :  { %v1989_v28 = vpop.permute.xlu2 %1988 }
0x1214   :  { %v1993_v33 = vmul.f32 %v1989_v28, %v3440_v27 }
0x1216   :  { %1998 = vrot.lane.b32.xlu0 %v1993_v33, %s2841_s0  ;;  %v2582_v33 = vld [vmem:[%s3499_s5] ss:$0 sm:$0xff] }
0x1223   :  { %v1987_v51 = vpop.permute.xlu1 %1986 }
0x1224   :  { %v1992_v26 = vmul.f32 %v1987_v51, %v1939_v32 }
0x1226   :  { %1996 = vrot.lane.b32.xlu2 %v1992_v26, %s2841_s0 }
0x122a   :  { %v1967_v24 = vpop.permute.xlu0 %1966 }
0x122b   :  { %v1971_v41 = vmul.f32 %v1967_v24, %v1916_v48 }
0x122d   :  { %1976 = vrot.lane.b32.xlu1 %v1971_v41, %s2841_s0 }
0x127f   :  { %v1975_v4 = vpop.permute.xlu0 %1974 }
0x1280   :  { %v1997_v46 = vpop.permute.xlu2 %1996  ;;  %v1980_v20 = vadd.f32 %v1975_v4, %v1960_v18 }
0x1281   :  { %v2002_v53 = vadd.f32 %v1997_v46, %v1982_v57 }
0x1282   :  { %2832 = vtanh.f32 %v1980_v20 }
0x1283   :  { %2834 = vtanh.f32 %v2002_v53 }
0x1288   :  { %v2833_v5 = vpop.eup %2832  ;;  %v1999_v55 = vpop.permute.xlu0 %1998 }
0x1289   :  { %v2835_v31 = vpop.eup %2834  ;;  %v2003_v10 = vadd.f32 %v1999_v55, %v1983_v54  ;;  %2008 = vrot.lane.b32.xlu1 %v2833_v5, %s2841_s0 }
0x128a   :  { %2020 = vrot.lane.b32.xlu0 %v2835_v31, %s2841_s0 }
0x128b   :  { %2836 = vtanh.f32 %v2003_v10 }
0x1291   :  { %v2837_v1 = vpop.eup %2836 }
0x1292   :  { %2022 = vrot.lane.b32.xlu1 %v2837_v1, %s2841_s0 }
0x129f   :  { %v1977_v44 = vpop.permute.xlu1 %1976 }
0x12a0   :  { %v1981_v30 = vadd.f32 %v1977_v44, %v1961_v12 }
0x12a2   :  { %2838 = vtanh.f32 %v1981_v30 }
0x12a8   :  { %v2839_v61 = vpop.eup %2838 }
0x12a9   :  { %2010 = vrot.lane.b32.xlu2 %v2839_v61, %s2841_s0 }
0x12fb   :  { %v2009_v3 = vpop.permute.xlu1 %2008 }
0x12fc   :  { %v2021_v2 = vpop.permute.xlu0 %2020  ;;  %v2014_v7 = vmul.f32 %v2009_v3, %v3436_v14  ;;  %v2338_v14 = vld [vmem:[%s3500_s6] sm:$0xff] }
0x12fd   :  { %v2026_v49 = vmul.f32 %v2021_v2, %v1939_v32  ;;  %2133 = vmatpush.bf16.msrb.mxu1 %v2338_v14 }
0x1303   :  { %v2011_v62 = vpop.permute.xlu2 %2010 }
0x1304   :  { %v2023_v13 = vpop.permute.xlu1 %2022  ;;  %v2015_v59 = vmul.f32 %v2011_v62, %v1916_v48 }
0x1305   :  { %v2027_v22 = vmul.f32 %v2023_v13, %v3440_v27 }
0x1306   :  { %v2572_v9 = vpack.i.bf16 %v2015_v59, %v2014_v7 }
0x1307   :  { %v2577_v47 = vpack.i.bf16 %v2027_v22, %v2026_v49 }
0x1308   :  { %2573 = vrot.lane.b32.xlu2 %v2572_v9, %s2842_s2 }
0x1309   :  { %2578 = vrot.lane.b32.xlu0 %v2577_v47, %s2843_s24 }
0x1362   :  { %v2574_v16 = vpop.permute.xlu2 %2573 }
0x1363   :  { %v2576_v50 = vunpack.i.h.bf16 %v2574_v16  ;;  %v2575_v43 = vunpack.i.l.bf16 %v2574_v16 }
0x137b   :  { %v2579_v25 = vpop.permute.xlu0 %2578 }
0x137c   :  { %v2581_v56 = vunpack.i.h.bf16 %v2579_v25  ;;  %v2580_v0 = vunpack.i.l.bf16 %v2579_v25 }
0x137e   :  { %v2044_v23 = vsel %vm116_vm0, %v2575_v43, %v2580_v0  ;;  %v2045_v27 = vsel %vm116_vm0, %v2576_v50, %v2581_v56 }
0x137f   :  { %v2046_v28 = vpack.c.bf16 %v2045_v27, %v2044_v23 }
0x1381   :  { %2304 = vmatmul.msk.bf16.vlgmr.msrb.gmra.mxu0 %vm352_vm2, %v2046_v28 }
0x13fe   :  { %v2095_v29 = vpop.f32.mrf.mxu0 }
0x13ff   :  { %v2096_v15 = vadd.f32 %v2582_v33, %v2095_v29 }
0x1401   :  { %v2100_v63 = vmax.f32 %v2096_v15, 0.0 }
0x1406   :  { %v2097_v34 = vpop.f32.mrf.mxu0 }
0x1407   :  { %v2098_v36 = vadd.f32 %v2582_v33, %v2097_v34 }
0x1409   :  { %v2101_v11 = vmax.f32 %v2098_v36, 0.0 }
0x140b   :  { %v2102_v37 = vpack.c.bf16 %v2101_v11, %v2100_v63 }
0x140d   :  { %2313 = vmatmul.msk.bf16.vlgmr.msrb.gmra.mxu1 %vm116_vm0, %v2102_v37 }
0x148a   :  { %v2135_v39 = vpop.f32.mrf.mxu1 }
0x148b   :  { %v2136_v42 = vadd.f32 %v2583_v60, %v2135_v39 }
0x148d   :  { %2140 = vst [vmem:[%s3502_s8] sm:$0xff] %v2136_v42 }
0x1492   :  { %v2137_v8 = vpop.f32.mrf.mxu1 }
0x1493   :  { %v2138_v51 = vadd.f32 %v2583_v60, %v2137_v8 }
0x1495   :  { %2141 = vst [vmem:[%s3502_s8 + $0x8] sm:$0xff] %v2138_v51 }

</bundles_post_ra>
